<compile_context>
chip_gen: v7x
topology: tpu7x:2x2x1
jax: 0.10.0
libtpu: 0.0.40
codegen_flags: <defaults>
</compile_context>

<pallas_src>
import numpy as np

import jax
import jax.numpy as jnp
from jax.experimental import pallas as pl
from jax.experimental.pallas import tpu as pltpu

F32 = jnp.float32
BF16 = jnp.bfloat16

# ---------------------------------------------------------------------------
# Input / parameter ordering (single fused kernel takes everything at once)
# ---------------------------------------------------------------------------

GRAPH_INPUTS = ("x", "edge_attr", "G_src", "G_dst", "A_lg", "seg", "segT",
                "Scat_node")

VMEM_PARAMS = (
    # DrugEncoder.mlp: Linear -> PReLU -> Linear -> BN -> PReLU -> Linear -> BN
    # (biases of the two Linears feeding straight into BN are dropped: a
    #  per-column bias is cancelled by the BN mean subtraction)
    "mlp_W1", "mlp_b1", "mlp_W2", "mlp_bn1_g", "mlp_bn1_b",
    "mlp_W3", "mlp_bn2_g", "mlp_bn2_b",
    # DMPNN
    "W_u", "W_v", "W_e", "att_w_rel", "att_w_root", "W_gout", "b_gout", "aT",
    # LinearBlock
    "bn1_g", "bn1_b", "lin1_W", "lin1_b",
    "bn2_g", "bn2_b", "lin2_W", "lin2_b",
    "bn3_g", "bn3_b", "lin3_W", "lin3_b",
    "bn4_g", "bn4_b", "lin4_W", "lin4_b",
    "bn5_g", "bn5_b", "lin5_W", "lin5_b",
)

SMEM_PARAMS = ("alphas", "att_b_rel", "a_bias")

ALL_INPUT_NAMES = GRAPH_INPUTS + VMEM_PARAMS + SMEM_PARAMS


# ---------------------------------------------------------------------------
# The fused kernel
# ---------------------------------------------------------------------------

def _fused_drug_encoder_kernel(*refs):
    r = dict(zip(ALL_INPUT_NAMES, refs[:len(ALL_INPUT_NAMES)]))
    y_ref = refs[len(ALL_INPUT_NAMES)]

    def dot(a, b):
        # bf16 MXU operands, f32 accumulation.
        return jnp.dot(a.astype(BF16), b.astype(BF16),
                       preferred_element_type=jnp.float32)

    def batchnorm(h, g, b):
        mean = jnp.mean(h, axis=0, keepdims=True)
        var = jnp.mean((h - mean) ** 2, axis=0, keepdims=True)
        return (h - mean) * jax.lax.rsqrt(var + 1e-5) * g + b

    def prelu(h, alpha):
        return jnp.where(h > 0, h, alpha * h)

    alphas = r["alphas"]           # SMEM (6,) — 2 mlp PReLUs + 4 LinearBlock
    b_rel = r["att_b_rel"][0]      # SMEM scalar (GraphConv lin_rel bias)

    # ---------------- DrugEncoder.mlp ----------------
    h = dot(r["x"][...], r["mlp_W1"][...]) + r["mlp_b1"][...]
    h = prelu(h, alphas[0])
    h = dot(h, r["mlp_W2"][...])                       # bias cancelled by BN
    h = batchnorm(h, r["mlp_bn1_g"][...], r["mlp_bn1_b"][...])
    h = prelu(h, alphas[1])
    h = dot(h, r["mlp_W3"][...])                       # bias cancelled by BN
    x = batchnorm(h, r["mlp_bn2_g"][...], r["mlp_bn2_b"][...])      # (N, FP)

    T = r["aT"].shape[0]

    # ---------------- DMPNN: edge init ----------------
    # Two clean (E,N)@(N,F) matmuls — no lane slice / sublane concat.
    xu = dot(x, r["W_u"][...])                                       # (N, FP)
    xv = dot(x, r["W_v"][...])                                       # (N, FP)
    e0 = (dot(r["G_src"][...], xu)
          + dot(r["G_dst"][...], xv)
          + dot(r["edge_attr"][...], r["W_e"][...])) * (1.0 / 3.0)   # (E, FP)

    A = r["A_lg"][...]                                               # (E, E) bf16
    seg = r["seg"][...].astype(jnp.float32)                          # (E, B)
    segT = r["segT"][...]                                            # (B, E) bf16
    w_rel = r["att_w_rel"][...]                                      # (1, FP)
    w_root = r["att_w_root"][...]                                    # (1, FP)
    W_gout = r["W_gout"][...]
    b_gout = r["b_gout"][...]
    aT = r["aT"][...]                                                # (T, FP)

    out = e0
    out_list = []
    s_cols = []
    for t in range(T):                 # n_iter is small & static -> unroll
        # line-graph scatter-add + residual
        out = e0 + dot(A, out)
        # GlobalAttentionPool: GraphConv(F -> 1) with w_rel folded through A:
        #   sum((A@out) * w_rel) == A @ (out . w_rel^T)
        # -> one (E,E)@(E,1) matmul instead of a dense (E,E)@(E,F) pass.
        rel = jnp.sum(out * w_rel, axis=1, keepdims=True)            # (E, 1)
        root = jnp.sum(out * w_root, axis=1, keepdims=True)          # (E, 1)
        xc = dot(A, rel) + root + b_rel                              # (E, 1)
        # segment softmax with per-graph max; finite mask value avoids
        # 0*(-inf)=NaN for empty graphs.
        masked = jnp.where(seg > 0, xc, -1e30)                       # (E, B)
        m_g = jnp.max(masked, axis=0, keepdims=True)                 # (1, B)
        m_e = jnp.sum(seg * m_g, axis=1, keepdims=True)              # (E, 1)
        p = jnp.exp(xc - m_e)                                        # (E, 1)
        den_g = jnp.sum(seg * p, axis=0, keepdims=True)              # (1, B)
        den_e = jnp.sum(seg * den_g, axis=1, keepdims=True)          # (E, 1)
        scores = p / den_e                                           # (E, 1)
        gx = dot(segT, out * scores)                                 # (B, FP)
        g = jnp.tanh(dot(gx, W_gout) + b_gout)                       # (B, FP)
        out_list.append(out)
        # readout logit for iteration t: sum_F(g * a[:, t]) + a_bias[t] (VPU)
        s_cols.append(jnp.sum(g * aT[t:t + 1, :], axis=1, keepdims=True)
                      + r["a_bias"][t])                              # (B, 1)

    # ---------------- readout over iterations ----------------
    s = jnp.concatenate(s_cols, axis=1)                              # (B, T)
    s = s - jnp.max(s, axis=1, keepdims=True)
    es = jnp.exp(s)
    sm = es / jnp.sum(es, axis=1, keepdims=True)                     # (B, T)
    esc = dot(seg, sm)                                               # (E, T)
    out_final = out_list[0] * esc[:, 0:1]
    for t in range(1, T):
        out_final = out_final + out_list[t] * esc[:, t:t + 1]        # (E, FP)

    # node scatter-add + residual
    xn = x + dot(r["Scat_node"][...], out_final)                     # (N, FP)

    # ---------------- LinearBlock ----------------
    h1 = dot(batchnorm(xn, r["bn1_g"][...], r["bn1_b"][...]),
             r["lin1_W"][...]) + r["lin1_b"][...]                    # (N, SP)
    h2 = dot(prelu(batchnorm(h1, r["bn2_g"][...], r["bn2_b"][...]), alphas[2]),
             r["lin2_W"][...]) + r["lin2_b"][...]
    h3 = dot(prelu(batchnorm(h2, r["bn3_g"][...], r["bn3_b"][...]), alphas[3]),
             r["lin3_W"][...]) + r["lin3_b"][...]
    hm = (h3 + h1) * 0.5
    h4 = dot(prelu(batchnorm(hm, r["bn4_g"][...], r["bn4_b"][...]), alphas[4]),
             r["lin4_W"][...]) + r["lin4_b"][...]
    hm = (h4 + hm) * 0.5
    y = dot(prelu(batchnorm(hm, r["bn5_g"][...], r["bn5_b"][...]), alphas[5]),
            r["lin5_W"][...]) + r["lin5_b"][...]                     # (N, FP)
    y_ref[...] = y


# ---------------------------------------------------------------------------
# Wrapper: pad feature dims to 128-lane multiples, cast matmul operands to
# bf16, one pallas_call, everything VMEM-resident, scalars in SMEM.
# ---------------------------------------------------------------------------

def _round_up(n, m=128):
    return ((n + m - 1) // m) * m


def _pad2(a, rows, cols):
    a = jnp.asarray(a, F32)
    return jnp.pad(a, ((0, rows - a.shape[0]), (0, cols - a.shape[1])))


def _prepare_inputs(params, graph, n_feats):
    DIN = graph["x"].shape[1]
    DE = graph["edge_attr"].shape[1]
    F_, S_ = n_feats, 6 * n_feats
    T = params["aT"].shape[0]
    DIN_P, DE_P, FP, SP = (_round_up(DIN), _round_up(DE),
                           _round_up(F_), _round_up(S_))

    def w(a, rows, cols):           # bf16 MXU weight, zero-padded
        return _pad2(a, rows, cols).astype(BF16)

    def v(a, cols):                 # f32 row vector (bias / BN gamma / beta)
        return _pad2(a, 1, cols)

    p = {
        "mlp_W1": w(params["mlp_W1"], DIN_P, FP), "mlp_b1": v(params["mlp_b1"], FP),
        "mlp_W2": w(params["mlp_W2"], FP, FP),
        "mlp_bn1_g": v(params["mlp_bn1_g"], FP), "mlp_bn1_b": v(params["mlp_bn1_b"], FP),
        "mlp_W3": w(params["mlp_W3"], FP, FP),
        "mlp_bn2_g": v(params["mlp_bn2_g"], FP), "mlp_bn2_b": v(params["mlp_bn2_b"], FP),
        "W_u": w(params["W_u"], FP, FP), "W_v": w(params["W_v"], FP, FP),
        "W_e": w(params["W_e"], DE_P, FP),
        "att_w_rel": v(params["att_w_rel"], FP),
        "att_w_root": v(params["att_w_root"], FP),
        "W_gout": w(params["W_gout"], FP, FP), "b_gout": v(params["b_gout"], FP),
        "aT": _pad2(params["aT"], T, FP),
        "bn1_g": v(params["bn1_g"], FP), "bn1_b": v(params["bn1_b"], FP),
        "lin1_W": w(params["lin1_W"], FP, SP), "lin1_b": v(params["lin1_b"], SP),
        "bn5_g": v(params["bn5_g"], SP), "bn5_b": v(params["bn5_b"], SP),
        "lin5_W": w(params["lin5_W"], SP, FP), "lin5_b": v(params["lin5_b"], FP),
        "alphas": params["alphas"], "att_b_rel": params["att_b_rel"],
        "a_bias": params["a_bias"],
    }
    for i in (2, 3, 4):
        p[f"bn{i}_g"] = v(params[f"bn{i}_g"], SP)
        p[f"bn{i}_b"] = v(params[f"bn{i}_b"], SP)
        p[f"lin{i}_W"] = w(params[f"lin{i}_W"], SP, SP)
        p[f"lin{i}_b"] = v(params[f"lin{i}_b"], SP)

    N, E = graph["x"].shape[0], graph["edge_attr"].shape[0]
    # Connectivity / one-hot matrices are exact in bf16 (values 0/1); halves
    # their VMEM/DMA footprint and works on all generations (v7x has no int
    # MXU path, so bf16 rather than int8).
    g = {
        "x": _pad2(graph["x"], N, DIN_P).astype(BF16),
        "edge_attr": _pad2(graph["edge_attr"], E, DE_P).astype(BF16),
        "G_src": jnp.asarray(graph["G_src"]).astype(BF16),
        "G_dst": jnp.asarray(graph["G_dst"]).astype(BF16),
        "A_lg": jnp.asarray(graph["A_lg"]).astype(BF16),
        "seg": jnp.asarray(graph["seg"]).astype(BF16),
        "segT": jnp.asarray(graph["segT"]).astype(BF16),
        "Scat_node": jnp.asarray(graph["Scat_node"]).astype(BF16),
    }
    return p, g, FP


def drug_encoder_forward(params, graph, n_feats):
    p, g, FP = _prepare_inputs(params, graph, n_feats)
    args = ([g[k] for k in GRAPH_INPUTS]
            + [p[k] for k in VMEM_PARAMS]
            + [p[k] for k in SMEM_PARAMS])
    N = graph["x"].shape[0]

    in_specs = (
        [pl.BlockSpec(memory_space=pltpu.MemorySpace.VMEM)]
        * (len(GRAPH_INPUTS) + len(VMEM_PARAMS))
        + [pl.BlockSpec(memory_space=pltpu.MemorySpace.SMEM)] * len(SMEM_PARAMS)
    )
    y_pad = pl.pallas_call(
        _fused_drug_encoder_kernel,
        out_shape=jax.ShapeDtypeStruct((N, FP), F32),   # lane-dense (N, 128k)
        in_specs=in_specs,
        out_specs=pl.BlockSpec(memory_space=pltpu.MemorySpace.VMEM),
    )(*args)
    # Padded columns are exactly zero; return the true feature width.
    return y_pad[:, :n_feats]


# ---------------------------------------------------------------------------
# Deterministic parameter init (true module shapes; wrapper pads/casts)
# ---------------------------------------------------------------------------

def init_params(key, in_dim, edge_dim, n_feats, n_iter):
    F_, De, T, S = n_feats, edge_dim, n_iter, 6 * n_feats
    keys = iter(jax.random.split(key, 64))

    def w(shape, scale=0.1):
        return jax.random.normal(next(keys), shape, dtype=F32) * scale

    glorot = float(np.sqrt(6.0 / (F_ + T)))
    p = {}
    # DrugEncoder.mlp (b2/b3 omitted: immediately followed by BatchNorm)
    p["mlp_W1"] = w((in_dim, F_)); p["mlp_b1"] = jnp.zeros((1, F_), F32)
    p["mlp_W2"] = w((F_, F_))
    p["mlp_bn1_g"] = jnp.ones((1, F_), F32)
    p["mlp_bn1_b"] = jnp.zeros((1, F_), F32)
    p["mlp_W3"] = w((F_, F_))
    p["mlp_bn2_g"] = jnp.ones((1, F_), F32)
    p["mlp_bn2_b"] = jnp.zeros((1, F_), F32)
    # DMPNN
    p["W_u"] = w((F_, F_)); p["W_v"] = w((F_, F_)); p["W_e"] = w((De, F_))
    p["att_w_rel"] = w((1, F_))       # GraphConv(F,1) lin_rel weight as row
    p["att_w_root"] = w((1, F_))      # GraphConv(F,1) lin_root weight as row
    p["W_gout"] = w((F_, F_)); p["b_gout"] = jnp.zeros((1, F_), F32)
    p["aT"] = jax.random.uniform(next(keys), (T, F_), F32, -glorot, glorot)
    # LinearBlock
    p["bn1_g"] = jnp.ones((1, F_), F32); p["bn1_b"] = jnp.zeros((1, F_), F32)
    p["lin1_W"] = w((F_, S)); p["lin1_b"] = jnp.zeros((1, S), F32)
    for i in (2, 3, 4):
        p[f"bn{i}_g"] = jnp.ones((1, S), F32)
        p[f"bn{i}_b"] = jnp.zeros((1, S), F32)
        p[f"lin{i}_W"] = w((S, S))
        p[f"lin{i}_b"] = jnp.zeros((1, S), F32)
    p["bn5_g"] = jnp.ones((1, S), F32); p["bn5_b"] = jnp.zeros((1, S), F32)
    p["lin5_W"] = w((S, F_)); p["lin5_b"] = jnp.zeros((1, F_), F32)
    # SMEM scalars: PReLU alphas (2 mlp + 4 LinearBlock), GraphConv bias,
    # readout attention bias.
    p["alphas"] = jnp.full((6,), 0.25, F32)
    p["att_b_rel"] = jnp.zeros((1,), F32)
    p["a_bias"] = jnp.zeros((n_iter,), F32)
    return p


# ---------------------------------------------------------------------------
# Synthetic batched graph (two 4-node bidirectional path graphs)
# ---------------------------------------------------------------------------

def build_graph_batch(in_dim, edge_dim, key):
    pattern = [(0, 1), (1, 0), (1, 2), (2, 1), (2, 3), (3, 2)]
    edges = pattern + [(a + 4, b + 4) for a, b in pattern]
    edge_index = np.array(edges, dtype=np.int32).T               # (2, E)
    N, E, B = 8, edge_index.shape[1], 2
    edge_batch = np.array([0] * 6 + [1] * 6, dtype=np.int32)

    # line graph adjacency: a -> b if dst(a) == src(b) and b is not reverse
    A_lg = np.zeros((E, E), np.float32)
    for a in range(E):
        for b in range(E):
            if (edge_index[1, a] == edge_index[0, b]
                    and edge_index[0, a] != edge_index[1, b]):
                A_lg[b, a] += 1.0
    G_src = np.zeros((E, N), np.float32)
    G_src[np.arange(E), edge_index[0]] = 1.0
    G_dst = np.zeros((E, N), np.float32)
    G_dst[np.arange(E), edge_index[1]] = 1.0
    Scat_node = np.zeros((N, E), np.float32)
    np.add.at(Scat_node, (edge_index[1], np.arange(E)), 1.0)
    seg = np.zeros((E, B), np.float32)
    seg[np.arange(E), edge_batch] = 1.0
    segT = np.ascontiguousarray(seg.T)

    k_x, k_e = jax.random.split(key)
    return {
        "x": jax.random.normal(k_x, (N, in_dim), dtype=F32),
        "edge_attr": jax.random.normal(k_e, (E, edge_dim), dtype=F32),
        "G_src": jnp.asarray(G_src),
        "G_dst": jnp.asarray(G_dst),
        "A_lg": jnp.asarray(A_lg),
        "seg": jnp.asarray(seg),
        "segT": jnp.asarray(segT),
        "Scat_node": jnp.asarray(Scat_node),
    }


if __name__ == "__main__":
    in_dim, edge_dim, hidden_dim, n_iter = 48, 16, 32, 3

    key = jax.random.PRNGKey(0)
    k_g, k_p = jax.random.split(key)
    graph = build_graph_batch(in_dim, edge_dim, k_g)
    params = init_params(k_p, in_dim, edge_dim, hidden_dim, n_iter)

    y = drug_encoder_forward(params, graph, hidden_dim)
    jax.block_until_ready(y)

    assert y.shape == (graph["x"].shape[0], hidden_dim)
    assert bool(jnp.all(jnp.isfinite(y)))
    print("KERNEL_OK")
</pallas_src>

<mosaic_0001>
module attributes {stable_mosaic.version = 11 : i64} {
  func.func @_fused_drug_encoder_kernel(%arg0: memref<8x128xbf16, #tpu.memory_space<vmem>>, %arg1: memref<12x128xbf16, #tpu.memory_space<vmem>>, %arg2: memref<12x8xbf16, #tpu.memory_space<vmem>>, %arg3: memref<12x8xbf16, #tpu.memory_space<vmem>>, %arg4: memref<12x12xbf16, #tpu.memory_space<vmem>>, %arg5: memref<12x2xbf16, #tpu.memory_space<vmem>>, %arg6: memref<2x12xbf16, #tpu.memory_space<vmem>>, %arg7: memref<8x12xbf16, #tpu.memory_space<vmem>>, %arg8: memref<128x128xbf16, #tpu.memory_space<vmem>>, %arg9: memref<1x128xf32, #tpu.memory_space<vmem>>, %arg10: memref<128x128xbf16, #tpu.memory_space<vmem>>, %arg11: memref<1x128xf32, #tpu.memory_space<vmem>>, %arg12: memref<1x128xf32, #tpu.memory_space<vmem>>, %arg13: memref<128x128xbf16, #tpu.memory_space<vmem>>, %arg14: memref<1x128xf32, #tpu.memory_space<vmem>>, %arg15: memref<1x128xf32, #tpu.memory_space<vmem>>, %arg16: memref<128x128xbf16, #tpu.memory_space<vmem>>, %arg17: memref<128x128xbf16, #tpu.memory_space<vmem>>, %arg18: memref<128x128xbf16, #tpu.memory_space<vmem>>, %arg19: memref<1x128xf32, #tpu.memory_space<vmem>>, %arg20: memref<1x128xf32, #tpu.memory_space<vmem>>, %arg21: memref<128x128xbf16, #tpu.memory_space<vmem>>, %arg22: memref<1x128xf32, #tpu.memory_space<vmem>>, %arg23: memref<3x128xf32, #tpu.memory_space<vmem>>, %arg24: memref<1x128xf32, #tpu.memory_space<vmem>>, %arg25: memref<1x128xf32, #tpu.memory_space<vmem>>, %arg26: memref<128x256xbf16, #tpu.memory_space<vmem>>, %arg27: memref<1x256xf32, #tpu.memory_space<vmem>>, %arg28: memref<1x256xf32, #tpu.memory_space<vmem>>, %arg29: memref<1x256xf32, #tpu.memory_space<vmem>>, %arg30: memref<256x256xbf16, #tpu.memory_space<vmem>>, %arg31: memref<1x256xf32, #tpu.memory_space<vmem>>, %arg32: memref<1x256xf32, #tpu.memory_space<vmem>>, %arg33: memref<1x256xf32, #tpu.memory_space<vmem>>, %arg34: memref<256x256xbf16, #tpu.memory_space<vmem>>, %arg35: memref<1x256xf32, #tpu.memory_space<vmem>>, %arg36: memref<1x256xf32, #tpu.memory_space<vmem>>, %arg37: memref<1x256xf32, #tpu.memory_space<vmem>>, %arg38: memref<256x256xbf16, #tpu.memory_space<vmem>>, %arg39: memref<1x256xf32, #tpu.memory_space<vmem>>, %arg40: memref<1x256xf32, #tpu.memory_space<vmem>>, %arg41: memref<1x256xf32, #tpu.memory_space<vmem>>, %arg42: memref<256x128xbf16, #tpu.memory_space<vmem>>, %arg43: memref<1x128xf32, #tpu.memory_space<vmem>>, %arg44: memref<6xf32, #tpu.memory_space<smem>>, %arg45: memref<1xf32, #tpu.memory_space<smem>>, %arg46: memref<3xf32, #tpu.memory_space<smem>>, %arg47: memref<8x128xf32, #tpu.memory_space<vmem>>) attributes {dimension_semantics = [], scalar_prefetch = 0 : i64, scratch_operands = 0 : i64, tpu.core_type = #tpu.core_type<tc>} {
    %c0 = arith.constant 0 : index
    %0 = memref.load %arg45[%c0] : memref<1xf32, #tpu.memory_space<smem>>
    %c0_0 = arith.constant 0 : index
    %c0_1 = arith.constant 0 : index
    %1 = vector.load %arg0[%c0_0, %c0_1] : memref<8x128xbf16, #tpu.memory_space<vmem>>, vector<8x128xbf16>
    %c0_2 = arith.constant 0 : index
    %c0_3 = arith.constant 0 : index
    %2 = vector.load %arg8[%c0_2, %c0_3] : memref<128x128xbf16, #tpu.memory_space<vmem>>, vector<128x128xbf16>
    %cst = arith.constant dense<0.000000e+00> : vector<8x128xf32>
    %3 = tpu.matmul %1, %2, %cst {dimension_numbers = #tpu.dot_dimension_numbers<[1], [0], [0], [1], [0, 0, 1, 1], [], []>} : vector<8x128xbf16>, vector<128x128xbf16>, vector<8x128xf32> -> vector<8x128xf32>
    %c0_4 = arith.constant 0 : index
    %c0_5 = arith.constant 0 : index
    %4 = vector.load %arg9[%c0_4, %c0_5] : memref<1x128xf32, #tpu.memory_space<vmem>>, vector<1x128xf32>
    %5 = vector.broadcast %4 : vector<1x128xf32> to vector<8x128xf32>
    %6 = arith.addf %3, %5 : vector<8x128xf32>
    %c0_6 = arith.constant 0 : index
    %7 = memref.load %arg44[%c0_6] : memref<6xf32, #tpu.memory_space<smem>>
    %cst_7 = arith.constant 0.000000e+00 : f32
    %8 = vector.broadcast %cst_7 : f32 to vector<8x128xf32>
    %9 = arith.cmpf ogt, %6, %8 : vector<8x128xf32>
    %10 = vector.broadcast %7 : f32 to vector<8x128xf32>
    %11 = arith.mulf %10, %6 : vector<8x128xf32>
    %12 = arith.select %9, %6, %11 : vector<8x128xi1>, vector<8x128xf32>
    %c0_8 = arith.constant 0 : index
    %c0_9 = arith.constant 0 : index
    %13 = vector.load %arg10[%c0_8, %c0_9] : memref<128x128xbf16, #tpu.memory_space<vmem>>, vector<128x128xbf16>
    %14 = arith.truncf %12 : vector<8x128xf32> to vector<8x128xbf16>
    %cst_10 = arith.constant dense<0.000000e+00> : vector<8x128xf32>
    %15 = tpu.matmul %14, %13, %cst_10 {dimension_numbers = #tpu.dot_dimension_numbers<[1], [0], [0], [1], [0, 0, 1, 1], [], []>} : vector<8x128xbf16>, vector<128x128xbf16>, vector<8x128xf32> -> vector<8x128xf32>
    %c0_11 = arith.constant 0 : index
    %c0_12 = arith.constant 0 : index
    %16 = vector.load %arg11[%c0_11, %c0_12] : memref<1x128xf32, #tpu.memory_space<vmem>>, vector<1x128xf32>
    %c0_13 = arith.constant 0 : index
    %c0_14 = arith.constant 0 : index
    %17 = vector.load %arg12[%c0_13, %c0_14] : memref<1x128xf32, #tpu.memory_space<vmem>>, vector<1x128xf32>
    %cst_15 = arith.constant dense<0.000000e+00> : vector<128xf32>
    %18 = vector.multi_reduction <add>, %15, %cst_15 [0] : vector<8x128xf32> to vector<128xf32>
    %19 = vector.shape_cast %18 : vector<128xf32> to vector<1x128xf32>
    %cst_16 = arith.constant 8.000000e+00 : f32
    %20 = vector.broadcast %cst_16 : f32 to vector<1x128xf32>
    %21 = arith.divf %19, %20 : vector<1x128xf32>
    %22 = vector.broadcast %21 : vector<1x128xf32> to vector<8x128xf32>
    %23 = arith.subf %15, %22 : vector<8x128xf32>
    %24 = arith.mulf %23, %23 : vector<8x128xf32>
    %cst_17 = arith.constant dense<0.000000e+00> : vector<128xf32>
    %25 = vector.multi_reduction <add>, %24, %cst_17 [0] : vector<8x128xf32> to vector<128xf32>
    %26 = vector.shape_cast %25 : vector<128xf32> to vector<1x128xf32>
    %cst_18 = arith.constant 8.000000e+00 : f32
    %27 = vector.broadcast %cst_18 : f32 to vector<1x128xf32>
    %28 = arith.divf %26, %27 : vector<1x128xf32>
    %29 = vector.broadcast %21 : vector<1x128xf32> to vector<8x128xf32>
    %30 = arith.subf %15, %29 : vector<8x128xf32>
    %cst_19 = arith.constant 9.99999974E-6 : f32
    %31 = vector.broadcast %cst_19 : f32 to vector<1x128xf32>
    %32 = arith.addf %28, %31 : vector<1x128xf32>
    %33 = math.rsqrt %32 : vector<1x128xf32>
    %34 = vector.broadcast %33 : vector<1x128xf32> to vector<8x128xf32>
    %35 = arith.mulf %30, %34 : vector<8x128xf32>
    %36 = vector.broadcast %16 : vector<1x128xf32> to vector<8x128xf32>
    %37 = arith.mulf %35, %36 : vector<8x128xf32>
    %38 = vector.broadcast %17 : vector<1x128xf32> to vector<8x128xf32>
    %39 = arith.addf %37, %38 : vector<8x128xf32>
    %c1 = arith.constant 1 : index
    %40 = memref.load %arg44[%c1] : memref<6xf32, #tpu.memory_space<smem>>
    %cst_20 = arith.constant 0.000000e+00 : f32
    %41 = vector.broadcast %cst_20 : f32 to vector<8x128xf32>
    %42 = arith.cmpf ogt, %39, %41 : vector<8x128xf32>
    %43 = vector.broadcast %40 : f32 to vector<8x128xf32>
    %44 = arith.mulf %43, %39 : vector<8x128xf32>
    %45 = arith.select %42, %39, %44 : vector<8x128xi1>, vector<8x128xf32>
    %c0_21 = arith.constant 0 : index
    %c0_22 = arith.constant 0 : index
    %46 = vector.load %arg13[%c0_21, %c0_22] : memref<128x128xbf16, #tpu.memory_space<vmem>>, vector<128x128xbf16>
    %47 = arith.truncf %45 : vector<8x128xf32> to vector<8x128xbf16>
    %cst_23 = arith.constant dense<0.000000e+00> : vector<8x128xf32>
    %48 = tpu.matmul %47, %46, %cst_23 {dimension_numbers = #tpu.dot_dimension_numbers<[1], [0], [0], [1], [0, 0, 1, 1], [], []>} : vector<8x128xbf16>, vector<128x128xbf16>, vector<8x128xf32> -> vector<8x128xf32>
    %c0_24 = arith.constant 0 : index
    %c0_25 = arith.constant 0 : index
    %49 = vector.load %arg14[%c0_24, %c0_25] : memref<1x128xf32, #tpu.memory_space<vmem>>, vector<1x128xf32>
    %c0_26 = arith.constant 0 : index
    %c0_27 = arith.constant 0 : index
    %50 = vector.load %arg15[%c0_26, %c0_27] : memref<1x128xf32, #tpu.memory_space<vmem>>, vector<1x128xf32>
    %cst_28 = arith.constant dense<0.000000e+00> : vector<128xf32>
    %51 = vector.multi_reduction <add>, %48, %cst_28 [0] : vector<8x128xf32> to vector<128xf32>
    %52 = vector.shape_cast %51 : vector<128xf32> to vector<1x128xf32>
    %cst_29 = arith.constant 8.000000e+00 : f32
    %53 = vector.broadcast %cst_29 : f32 to vector<1x128xf32>
    %54 = arith.divf %52, %53 : vector<1x128xf32>
    %55 = vector.broadcast %54 : vector<1x128xf32> to vector<8x128xf32>
    %56 = arith.subf %48, %55 : vector<8x128xf32>
    %57 = arith.mulf %56, %56 : vector<8x128xf32>
    %cst_30 = arith.constant dense<0.000000e+00> : vector<128xf32>
    %58 = vector.multi_reduction <add>, %57, %cst_30 [0] : vector<8x128xf32> to vector<128xf32>
    %59 = vector.shape_cast %58 : vector<128xf32> to vector<1x128xf32>
    %cst_31 = arith.constant 8.000000e+00 : f32
    %60 = vector.broadcast %cst_31 : f32 to vector<1x128xf32>
    %61 = arith.divf %59, %60 : vector<1x128xf32>
    %62 = vector.broadcast %54 : vector<1x128xf32> to vector<8x128xf32>
    %63 = arith.subf %48, %62 : vector<8x128xf32>
    %cst_32 = arith.constant 9.99999974E-6 : f32
    %64 = vector.broadcast %cst_32 : f32 to vector<1x128xf32>
    %65 = arith.addf %61, %64 : vector<1x128xf32>
    %66 = math.rsqrt %65 : vector<1x128xf32>
    %67 = vector.broadcast %66 : vector<1x128xf32> to vector<8x128xf32>
    %68 = arith.mulf %63, %67 : vector<8x128xf32>
    %69 = vector.broadcast %49 : vector<1x128xf32> to vector<8x128xf32>
    %70 = arith.mulf %68, %69 : vector<8x128xf32>
    %71 = vector.broadcast %50 : vector<1x128xf32> to vector<8x128xf32>
    %72 = arith.addf %70, %71 : vector<8x128xf32>
    %c0_33 = arith.constant 0 : index
    %c0_34 = arith.constant 0 : index
    %73 = vector.load %arg16[%c0_33, %c0_34] : memref<128x128xbf16, #tpu.memory_space<vmem>>, vector<128x128xbf16>
    %74 = arith.truncf %72 : vector<8x128xf32> to vector<8x128xbf16>
    %cst_35 = arith.constant dense<0.000000e+00> : vector<8x128xf32>
    %75 = tpu.matmul %74, %73, %cst_35 {dimension_numbers = #tpu.dot_dimension_numbers<[1], [0], [0], [1], [0, 0, 1, 1], [], []>} : vector<8x128xbf16>, vector<128x128xbf16>, vector<8x128xf32> -> vector<8x128xf32>
    %c0_36 = arith.constant 0 : index
    %c0_37 = arith.constant 0 : index
    %76 = vector.load %arg17[%c0_36, %c0_37] : memref<128x128xbf16, #tpu.memory_space<vmem>>, vector<128x128xbf16>
    %77 = arith.truncf %72 : vector<8x128xf32> to vector<8x128xbf16>
    %cst_38 = arith.constant dense<0.000000e+00> : vector<8x128xf32>
    %78 = tpu.matmul %77, %76, %cst_38 {dimension_numbers = #tpu.dot_dimension_numbers<[1], [0], [0], [1], [0, 0, 1, 1], [], []>} : vector<8x128xbf16>, vector<128x128xbf16>, vector<8x128xf32> -> vector<8x128xf32>
    %c0_39 = arith.constant 0 : index
    %c0_40 = arith.constant 0 : index
    %79 = vector.load %arg2[%c0_39, %c0_40] : memref<12x8xbf16, #tpu.memory_space<vmem>>, vector<12x8xbf16>
    %80 = arith.truncf %75 : vector<8x128xf32> to vector<8x128xbf16>
    %cst_41 = arith.constant dense<0.000000e+00> : vector<12x128xf32>
    %81 = tpu.matmul %79, %80, %cst_41 {dimension_numbers = #tpu.dot_dimension_numbers<[1], [0], [0], [1], [0, 0, 1, 1], [], []>} : vector<12x8xbf16>, vector<8x128xbf16>, vector<12x128xf32> -> vector<12x128xf32>
    %c0_42 = arith.constant 0 : index
    %c0_43 = arith.constant 0 : index
    %82 = vector.load %arg3[%c0_42, %c0_43] : memref<12x8xbf16, #tpu.memory_space<vmem>>, vector<12x8xbf16>
    %83 = arith.truncf %78 : vector<8x128xf32> to vector<8x128xbf16>
    %cst_44 = arith.constant dense<0.000000e+00> : vector<12x128xf32>
    %84 = tpu.matmul %82, %83, %cst_44 {dimension_numbers = #tpu.dot_dimension_numbers<[1], [0], [0], [1], [0, 0, 1, 1], [], []>} : vector<12x8xbf16>, vector<8x128xbf16>, vector<12x128xf32> -> vector<12x128xf32>
    %85 = arith.addf %81, %84 : vector<12x128xf32>
    %c0_45 = arith.constant 0 : index
    %c0_46 = arith.constant 0 : index
    %86 = vector.load %arg1[%c0_45, %c0_46] : memref<12x128xbf16, #tpu.memory_space<vmem>>, vector<12x128xbf16>
    %c0_47 = arith.constant 0 : index
    %c0_48 = arith.constant 0 : index
    %87 = vector.load %arg18[%c0_47, %c0_48] : memref<128x128xbf16, #tpu.memory_space<vmem>>, vector<128x128xbf16>
    %cst_49 = arith.constant dense<0.000000e+00> : vector<12x128xf32>
    %88 = tpu.matmul %86, %87, %cst_49 {dimension_numbers = #tpu.dot_dimension_numbers<[1], [0], [0], [1], [0, 0, 1, 1], [], []>} : vector<12x128xbf16>, vector<128x128xbf16>, vector<12x128xf32> -> vector<12x128xf32>
    %89 = arith.addf %85, %88 : vector<12x128xf32>
    %cst_50 = arith.constant 0.333333343 : f32
    %90 = vector.broadcast %cst_50 : f32 to vector<12x128xf32>
    %91 = arith.mulf %89, %90 : vector<12x128xf32>
    %c0_51 = arith.constant 0 : index
    %c0_52 = arith.constant 0 : index
    %92 = vector.load %arg4[%c0_51, %c0_52] : memref<12x12xbf16, #tpu.memory_space<vmem>>, vector<12x12xbf16>
    %c0_53 = arith.constant 0 : index
    %c0_54 = arith.constant 0 : index
    %93 = vector.load %arg5[%c0_53, %c0_54] : memref<12x2xbf16, #tpu.memory_space<vmem>>, vector<12x2xbf16>
    %94 = arith.extf %93 : vector<12x2xbf16> to vector<12x2xf32>
    %c0_55 = arith.constant 0 : index
    %c0_56 = arith.constant 0 : index
    %95 = vector.load %arg6[%c0_55, %c0_56] : memref<2x12xbf16, #tpu.memory_space<vmem>>, vector<2x12xbf16>
    %c0_57 = arith.constant 0 : index
    %c0_58 = arith.constant 0 : index
    %96 = vector.load %arg19[%c0_57, %c0_58] : memref<1x128xf32, #tpu.memory_space<vmem>>, vector<1x128xf32>
    %c0_59 = arith.constant 0 : index
    %c0_60 = arith.constant 0 : index
    %97 = vector.load %arg20[%c0_59, %c0_60] : memref<1x128xf32, #tpu.memory_space<vmem>>, vector<1x128xf32>
    %c0_61 = arith.constant 0 : index
    %c0_62 = arith.constant 0 : index
    %98 = vector.load %arg21[%c0_61, %c0_62] : memref<128x128xbf16, #tpu.memory_space<vmem>>, vector<128x128xbf16>
    %c0_63 = arith.constant 0 : index
    %c0_64 = arith.constant 0 : index
    %99 = vector.load %arg22[%c0_63, %c0_64] : memref<1x128xf32, #tpu.memory_space<vmem>>, vector<1x128xf32>
    %c0_65 = arith.constant 0 : index
    %c0_66 = arith.constant 0 : index
    %100 = vector.load %arg23[%c0_65, %c0_66] : memref<3x128xf32, #tpu.memory_space<vmem>>, vector<3x128xf32>
    %101 = arith.truncf %91 : vector<12x128xf32> to vector<12x128xbf16>
    %cst_67 = arith.constant dense<0.000000e+00> : vector<12x128xf32>
    %102 = tpu.matmul %92, %101, %cst_67 {dimension_numbers = #tpu.dot_dimension_numbers<[1], [0], [0], [1], [0, 0, 1, 1], [], []>} : vector<12x12xbf16>, vector<12x128xbf16>, vector<12x128xf32> -> vector<12x128xf32>
    %103 = arith.addf %91, %102 : vector<12x128xf32>
    %104 = vector.broadcast %96 : vector<1x128xf32> to vector<12x128xf32>
    %105 = arith.mulf %103, %104 : vector<12x128xf32>
    %cst_68 = arith.constant dense<0.000000e+00> : vector<12xf32>
    %106 = vector.multi_reduction <add>, %105, %cst_68 [1] : vector<12x128xf32> to vector<12xf32>
    %107 = vector.shape_cast %106 : vector<12xf32> to vector<12x1xf32>
    %108 = vector.broadcast %97 : vector<1x128xf32> to vector<12x128xf32>
    %109 = arith.mulf %103, %108 : vector<12x128xf32>
    %cst_69 = arith.constant dense<0.000000e+00> : vector<12xf32>
    %110 = vector.multi_reduction <add>, %109, %cst_69 [1] : vector<12x128xf32> to vector<12xf32>
    %111 = vector.shape_cast %110 : vector<12xf32> to vector<12x1xf32>
    %112 = arith.truncf %107 : vector<12x1xf32> to vector<12x1xbf16>
    %cst_70 = arith.constant dense<0.000000e+00> : vector<12x1xf32>
    %113 = tpu.matmul %92, %112, %cst_70 {dimension_numbers = #tpu.dot_dimension_numbers<[1], [0], [0], [1], [0, 0, 1, 1], [], []>} : vector<12x12xbf16>, vector<12x1xbf16>, vector<12x1xf32> -> vector<12x1xf32>
    %114 = arith.addf %113, %111 : vector<12x1xf32>
    %115 = vector.broadcast %0 : f32 to vector<12x1xf32>
    %116 = arith.addf %114, %115 : vector<12x1xf32>
    %cst_71 = arith.constant 0.000000e+00 : f32
    %117 = vector.broadcast %cst_71 : f32 to vector<12x2xf32>
    %118 = arith.cmpf ogt, %94, %117 : vector<12x2xf32>
    %cst_72 = arith.constant -1.000000e+30 : f32
    %119 = vector.shape_cast %116 : vector<12x1xf32> to vector<12x1xf32>
    %120 = vector.broadcast %119 : vector<12x1xf32> to vector<12x2xf32>
    %121 = vector.broadcast %cst_72 : f32 to vector<12x2xf32>
    %122 = arith.select %118, %120, %121 : vector<12x2xi1>, vector<12x2xf32>
    %cst_73 = arith.constant dense<0xFF800000> : vector<2xf32>
    %123 = vector.multi_reduction <maximumf>, %122, %cst_73 [0] : vector<12x2xf32> to vector<2xf32>
    %124 = vector.shape_cast %123 : vector<2xf32> to vector<1x2xf32>
    %125 = vector.broadcast %124 : vector<1x2xf32> to vector<12x2xf32>
    %126 = arith.mulf %94, %125 : vector<12x2xf32>
    %cst_74 = arith.constant dense<0.000000e+00> : vector<12xf32>
    %127 = vector.multi_reduction <add>, %126, %cst_74 [1] : vector<12x2xf32> to vector<12xf32>
    %128 = vector.shape_cast %127 : vector<12xf32> to vector<12x1xf32>
    %129 = arith.subf %116, %128 : vector<12x1xf32>
    %130 = math.exp %129 : vector<12x1xf32>
    %131 = vector.broadcast %130 : vector<12x1xf32> to vector<12x2xf32>
    %132 = arith.mulf %94, %131 : vector<12x2xf32>
    %cst_75 = arith.constant dense<0.000000e+00> : vector<2xf32>
    %133 = vector.multi_reduction <add>, %132, %cst_75 [0] : vector<12x2xf32> to vector<2xf32>
    %134 = vector.shape_cast %133 : vector<2xf32> to vector<1x2xf32>
    %135 = vector.broadcast %134 : vector<1x2xf32> to vector<12x2xf32>
    %136 = arith.mulf %94, %135 : vector<12x2xf32>
    %cst_76 = arith.constant dense<0.000000e+00> : vector<12xf32>
    %137 = vector.multi_reduction <add>, %136, %cst_76 [1] : vector<12x2xf32> to vector<12xf32>
    %138 = vector.shape_cast %137 : vector<12xf32> to vector<12x1xf32>
    %139 = arith.divf %130, %138 : vector<12x1xf32>
    %140 = vector.broadcast %139 : vector<12x1xf32> to vector<12x128xf32>
    %141 = arith.mulf %103, %140 : vector<12x128xf32>
    %142 = arith.truncf %141 : vector<12x128xf32> to vector<12x128xbf16>
    %cst_77 = arith.constant dense<0.000000e+00> : vector<2x128xf32>
    %143 = tpu.matmul %95, %142, %cst_77 {dimension_numbers = #tpu.dot_dimension_numbers<[1], [0], [0], [1], [0, 0, 1, 1], [], []>} : vector<2x12xbf16>, vector<12x128xbf16>, vector<2x128xf32> -> vector<2x128xf32>
    %144 = arith.truncf %143 : vector<2x128xf32> to vector<2x128xbf16>
    %cst_78 = arith.constant dense<0.000000e+00> : vector<2x128xf32>
    %145 = tpu.matmul %144, %98, %cst_78 {dimension_numbers = #tpu.dot_dimension_numbers<[1], [0], [0], [1], [0, 0, 1, 1], [], []>} : vector<2x128xbf16>, vector<128x128xbf16>, vector<2x128xf32> -> vector<2x128xf32>
    %146 = vector.broadcast %99 : vector<1x128xf32> to vector<2x128xf32>
    %147 = arith.addf %145, %146 : vector<2x128xf32>
    %148 = math.tanh %147 : vector<2x128xf32>
    %149 = vector.extract_strided_slice %100 {offsets = [0, 0], sizes = [1, 128], strides = [1, 1]} : vector<3x128xf32> to vector<1x128xf32>
    %150 = vector.broadcast %149 : vector<1x128xf32> to vector<2x128xf32>
    %151 = arith.mulf %148, %150 : vector<2x128xf32>
    %cst_79 = arith.constant dense<0.000000e+00> : vector<2xf32>
    %152 = vector.multi_reduction <add>, %151, %cst_79 [1] : vector<2x128xf32> to vector<2xf32>
    %153 = vector.shape_cast %152 : vector<2xf32> to vector<2x1xf32>
    %c0_80 = arith.constant 0 : index
    %154 = memref.load %arg46[%c0_80] : memref<3xf32, #tpu.memory_space<smem>>
    %155 = vector.broadcast %154 : f32 to vector<2x1xf32>
    %156 = arith.addf %153, %155 : vector<2x1xf32>
    %157 = arith.truncf %103 : vector<12x128xf32> to vector<12x128xbf16>
    %cst_81 = arith.constant dense<0.000000e+00> : vector<12x128xf32>
    %158 = tpu.matmul %92, %157, %cst_81 {dimension_numbers = #tpu.dot_dimension_numbers<[1], [0], [0], [1], [0, 0, 1, 1], [], []>} : vector<12x12xbf16>, vector<12x128xbf16>, vector<12x128xf32> -> vector<12x128xf32>
    %159 = arith.addf %91, %158 : vector<12x128xf32>
    %160 = vector.broadcast %96 : vector<1x128xf32> to vector<12x128xf32>
    %161 = arith.mulf %159, %160 : vector<12x128xf32>
    %cst_82 = arith.constant dense<0.000000e+00> : vector<12xf32>
    %162 = vector.multi_reduction <add>, %161, %cst_82 [1] : vector<12x128xf32> to vector<12xf32>
    %163 = vector.shape_cast %162 : vector<12xf32> to vector<12x1xf32>
    %164 = vector.broadcast %97 : vector<1x128xf32> to vector<12x128xf32>
    %165 = arith.mulf %159, %164 : vector<12x128xf32>
    %cst_83 = arith.constant dense<0.000000e+00> : vector<12xf32>
    %166 = vector.multi_reduction <add>, %165, %cst_83 [1] : vector<12x128xf32> to vector<12xf32>
    %167 = vector.shape_cast %166 : vector<12xf32> to vector<12x1xf32>
    %168 = arith.truncf %163 : vector<12x1xf32> to vector<12x1xbf16>
    %cst_84 = arith.constant dense<0.000000e+00> : vector<12x1xf32>
    %169 = tpu.matmul %92, %168, %cst_84 {dimension_numbers = #tpu.dot_dimension_numbers<[1], [0], [0], [1], [0, 0, 1, 1], [], []>} : vector<12x12xbf16>, vector<12x1xbf16>, vector<12x1xf32> -> vector<12x1xf32>
    %170 = arith.addf %169, %167 : vector<12x1xf32>
    %171 = vector.broadcast %0 : f32 to vector<12x1xf32>
    %172 = arith.addf %170, %171 : vector<12x1xf32>
    %cst_85 = arith.constant 0.000000e+00 : f32
    %173 = vector.broadcast %cst_85 : f32 to vector<12x2xf32>
    %174 = arith.cmpf ogt, %94, %173 : vector<12x2xf32>
    %cst_86 = arith.constant -1.000000e+30 : f32
    %175 = vector.shape_cast %172 : vector<12x1xf32> to vector<12x1xf32>
    %176 = vector.broadcast %175 : vector<12x1xf32> to vector<12x2xf32>
    %177 = vector.broadcast %cst_86 : f32 to vector<12x2xf32>
    %178 = arith.select %174, %176, %177 : vector<12x2xi1>, vector<12x2xf32>
    %cst_87 = arith.constant dense<0xFF800000> : vector<2xf32>
    %179 = vector.multi_reduction <maximumf>, %178, %cst_87 [0] : vector<12x2xf32> to vector<2xf32>
    %180 = vector.shape_cast %179 : vector<2xf32> to vector<1x2xf32>
    %181 = vector.broadcast %180 : vector<1x2xf32> to vector<12x2xf32>
    %182 = arith.mulf %94, %181 : vector<12x2xf32>
    %cst_88 = arith.constant dense<0.000000e+00> : vector<12xf32>
    %183 = vector.multi_reduction <add>, %182, %cst_88 [1] : vector<12x2xf32> to vector<12xf32>
    %184 = vector.shape_cast %183 : vector<12xf32> to vector<12x1xf32>
    %185 = arith.subf %172, %184 : vector<12x1xf32>
    %186 = math.exp %185 : vector<12x1xf32>
    %187 = vector.broadcast %186 : vector<12x1xf32> to vector<12x2xf32>
    %188 = arith.mulf %94, %187 : vector<12x2xf32>
    %cst_89 = arith.constant dense<0.000000e+00> : vector<2xf32>
    %189 = vector.multi_reduction <add>, %188, %cst_89 [0] : vector<12x2xf32> to vector<2xf32>
    %190 = vector.shape_cast %189 : vector<2xf32> to vector<1x2xf32>
    %191 = vector.broadcast %190 : vector<1x2xf32> to vector<12x2xf32>
    %192 = arith.mulf %94, %191 : vector<12x2xf32>
    %cst_90 = arith.constant dense<0.000000e+00> : vector<12xf32>
    %193 = vector.multi_reduction <add>, %192, %cst_90 [1] : vector<12x2xf32> to vector<12xf32>
    %194 = vector.shape_cast %193 : vector<12xf32> to vector<12x1xf32>
    %195 = arith.divf %186, %194 : vector<12x1xf32>
    %196 = vector.broadcast %195 : vector<12x1xf32> to vector<12x128xf32>
    %197 = arith.mulf %159, %196 : vector<12x128xf32>
    %198 = arith.truncf %197 : vector<12x128xf32> to vector<12x128xbf16>
    %cst_91 = arith.constant dense<0.000000e+00> : vector<2x128xf32>
    %199 = tpu.matmul %95, %198, %cst_91 {dimension_numbers = #tpu.dot_dimension_numbers<[1], [0], [0], [1], [0, 0, 1, 1], [], []>} : vector<2x12xbf16>, vector<12x128xbf16>, vector<2x128xf32> -> vector<2x128xf32>
    %200 = arith.truncf %199 : vector<2x128xf32> to vector<2x128xbf16>
    %cst_92 = arith.constant dense<0.000000e+00> : vector<2x128xf32>
    %201 = tpu.matmul %200, %98, %cst_92 {dimension_numbers = #tpu.dot_dimension_numbers<[1], [0], [0], [1], [0, 0, 1, 1], [], []>} : vector<2x128xbf16>, vector<128x128xbf16>, vector<2x128xf32> -> vector<2x128xf32>
    %202 = vector.broadcast %99 : vector<1x128xf32> to vector<2x128xf32>
    %203 = arith.addf %201, %202 : vector<2x128xf32>
    %204 = math.tanh %203 : vector<2x128xf32>
    %205 = vector.extract_strided_slice %100 {offsets = [1, 0], sizes = [1, 128], strides = [1, 1]} : vector<3x128xf32> to vector<1x128xf32>
    %206 = vector.broadcast %205 : vector<1x128xf32> to vector<2x128xf32>
    %207 = arith.mulf %204, %206 : vector<2x128xf32>
    %cst_93 = arith.constant dense<0.000000e+00> : vector<2xf32>
    %208 = vector.multi_reduction <add>, %207, %cst_93 [1] : vector<2x128xf32> to vector<2xf32>
    %209 = vector.shape_cast %208 : vector<2xf32> to vector<2x1xf32>
    %c1_94 = arith.constant 1 : index
    %210 = memref.load %arg46[%c1_94] : memref<3xf32, #tpu.memory_space<smem>>
    %211 = vector.broadcast %210 : f32 to vector<2x1xf32>
    %212 = arith.addf %209, %211 : vector<2x1xf32>
    %213 = arith.truncf %159 : vector<12x128xf32> to vector<12x128xbf16>
    %cst_95 = arith.constant dense<0.000000e+00> : vector<12x128xf32>
    %214 = tpu.matmul %92, %213, %cst_95 {dimension_numbers = #tpu.dot_dimension_numbers<[1], [0], [0], [1], [0, 0, 1, 1], [], []>} : vector<12x12xbf16>, vector<12x128xbf16>, vector<12x128xf32> -> vector<12x128xf32>
    %215 = arith.addf %91, %214 : vector<12x128xf32>
    %216 = vector.broadcast %96 : vector<1x128xf32> to vector<12x128xf32>
    %217 = arith.mulf %215, %216 : vector<12x128xf32>
    %cst_96 = arith.constant dense<0.000000e+00> : vector<12xf32>
    %218 = vector.multi_reduction <add>, %217, %cst_96 [1] : vector<12x128xf32> to vector<12xf32>
    %219 = vector.shape_cast %218 : vector<12xf32> to vector<12x1xf32>
    %220 = vector.broadcast %97 : vector<1x128xf32> to vector<12x128xf32>
    %221 = arith.mulf %215, %220 : vector<12x128xf32>
    %cst_97 = arith.constant dense<0.000000e+00> : vector<12xf32>
    %222 = vector.multi_reduction <add>, %221, %cst_97 [1] : vector<12x128xf32> to vector<12xf32>
    %223 = vector.shape_cast %222 : vector<12xf32> to vector<12x1xf32>
    %224 = arith.truncf %219 : vector<12x1xf32> to vector<12x1xbf16>
    %cst_98 = arith.constant dense<0.000000e+00> : vector<12x1xf32>
    %225 = tpu.matmul %92, %224, %cst_98 {dimension_numbers = #tpu.dot_dimension_numbers<[1], [0], [0], [1], [0, 0, 1, 1], [], []>} : vector<12x12xbf16>, vector<12x1xbf16>, vector<12x1xf32> -> vector<12x1xf32>
    %226 = arith.addf %225, %223 : vector<12x1xf32>
    %227 = vector.broadcast %0 : f32 to vector<12x1xf32>
    %228 = arith.addf %226, %227 : vector<12x1xf32>
    %cst_99 = arith.constant 0.000000e+00 : f32
    %229 = vector.broadcast %cst_99 : f32 to vector<12x2xf32>
    %230 = arith.cmpf ogt, %94, %229 : vector<12x2xf32>
    %cst_100 = arith.constant -1.000000e+30 : f32
    %231 = vector.shape_cast %228 : vector<12x1xf32> to vector<12x1xf32>
    %232 = vector.broadcast %231 : vector<12x1xf32> to vector<12x2xf32>
    %233 = vector.broadcast %cst_100 : f32 to vector<12x2xf32>
    %234 = arith.select %230, %232, %233 : vector<12x2xi1>, vector<12x2xf32>
    %cst_101 = arith.constant dense<0xFF800000> : vector<2xf32>
    %235 = vector.multi_reduction <maximumf>, %234, %cst_101 [0] : vector<12x2xf32> to vector<2xf32>
    %236 = vector.shape_cast %235 : vector<2xf32> to vector<1x2xf32>
    %237 = vector.broadcast %236 : vector<1x2xf32> to vector<12x2xf32>
    %238 = arith.mulf %94, %237 : vector<12x2xf32>
    %cst_102 = arith.constant dense<0.000000e+00> : vector<12xf32>
    %239 = vector.multi_reduction <add>, %238, %cst_102 [1] : vector<12x2xf32> to vector<12xf32>
    %240 = vector.shape_cast %239 : vector<12xf32> to vector<12x1xf32>
    %241 = arith.subf %228, %240 : vector<12x1xf32>
    %242 = math.exp %241 : vector<12x1xf32>
    %243 = vector.broadcast %242 : vector<12x1xf32> to vector<12x2xf32>
    %244 = arith.mulf %94, %243 : vector<12x2xf32>
    %cst_103 = arith.constant dense<0.000000e+00> : vector<2xf32>
    %245 = vector.multi_reduction <add>, %244, %cst_103 [0] : vector<12x2xf32> to vector<2xf32>
    %246 = vector.shape_cast %245 : vector<2xf32> to vector<1x2xf32>
    %247 = vector.broadcast %246 : vector<1x2xf32> to vector<12x2xf32>
    %248 = arith.mulf %94, %247 : vector<12x2xf32>
    %cst_104 = arith.constant dense<0.000000e+00> : vector<12xf32>
    %249 = vector.multi_reduction <add>, %248, %cst_104 [1] : vector<12x2xf32> to vector<12xf32>
    %250 = vector.shape_cast %249 : vector<12xf32> to vector<12x1xf32>
    %251 = arith.divf %242, %250 : vector<12x1xf32>
    %252 = vector.broadcast %251 : vector<12x1xf32> to vector<12x128xf32>
    %253 = arith.mulf %215, %252 : vector<12x128xf32>
    %254 = arith.truncf %253 : vector<12x128xf32> to vector<12x128xbf16>
    %cst_105 = arith.constant dense<0.000000e+00> : vector<2x128xf32>
    %255 = tpu.matmul %95, %254, %cst_105 {dimension_numbers = #tpu.dot_dimension_numbers<[1], [0], [0], [1], [0, 0, 1, 1], [], []>} : vector<2x12xbf16>, vector<12x128xbf16>, vector<2x128xf32> -> vector<2x128xf32>
    %256 = arith.truncf %255 : vector<2x128xf32> to vector<2x128xbf16>
    %cst_106 = arith.constant dense<0.000000e+00> : vector<2x128xf32>
    %257 = tpu.matmul %256, %98, %cst_106 {dimension_numbers = #tpu.dot_dimension_numbers<[1], [0], [0], [1], [0, 0, 1, 1], [], []>} : vector<2x128xbf16>, vector<128x128xbf16>, vector<2x128xf32> -> vector<2x128xf32>
    %258 = vector.broadcast %99 : vector<1x128xf32> to vector<2x128xf32>
    %259 = arith.addf %257, %258 : vector<2x128xf32>
    %260 = math.tanh %259 : vector<2x128xf32>
    %261 = vector.extract_strided_slice %100 {offsets = [2, 0], sizes = [1, 128], strides = [1, 1]} : vector<3x128xf32> to vector<1x128xf32>
    %262 = vector.broadcast %261 : vector<1x128xf32> to vector<2x128xf32>
    %263 = arith.mulf %260, %262 : vector<2x128xf32>
    %cst_107 = arith.constant dense<0.000000e+00> : vector<2xf32>
    %264 = vector.multi_reduction <add>, %263, %cst_107 [1] : vector<2x128xf32> to vector<2xf32>
    %265 = vector.shape_cast %264 : vector<2xf32> to vector<2x1xf32>
    %c2 = arith.constant 2 : index
    %266 = memref.load %arg46[%c2] : memref<3xf32, #tpu.memory_space<smem>>
    %267 = vector.broadcast %266 : f32 to vector<2x1xf32>
    %268 = arith.addf %265, %267 : vector<2x1xf32>
    %269 = tpu.concatenate %156, %212, %268 in 1 : vector<2x1xf32>, vector<2x1xf32>, vector<2x1xf32> -> vector<2x3xf32>
    %cst_108 = arith.constant dense<0xFF800000> : vector<2xf32>
    %270 = vector.multi_reduction <maximumf>, %269, %cst_108 [1] : vector<2x3xf32> to vector<2xf32>
    %271 = vector.shape_cast %270 : vector<2xf32> to vector<2x1xf32>
    %272 = vector.broadcast %271 : vector<2x1xf32> to vector<2x3xf32>
    %273 = arith.subf %269, %272 : vector<2x3xf32>
    %274 = math.exp %273 : vector<2x3xf32>
    %cst_109 = arith.constant dense<0.000000e+00> : vector<2xf32>
    %275 = vector.multi_reduction <add>, %274, %cst_109 [1] : vector<2x3xf32> to vector<2xf32>
    %276 = vector.shape_cast %275 : vector<2xf32> to vector<2x1xf32>
    %277 = vector.broadcast %276 : vector<2x1xf32> to vector<2x3xf32>
    %278 = arith.divf %274, %277 : vector<2x3xf32>
    %279 = arith.truncf %94 : vector<12x2xf32> to vector<12x2xbf16>
    %280 = arith.truncf %278 : vector<2x3xf32> to vector<2x3xbf16>
    %cst_110 = arith.constant dense<0.000000e+00> : vector<12x3xf32>
    %281 = tpu.matmul %279, %280, %cst_110 {dimension_numbers = #tpu.dot_dimension_numbers<[1], [0], [0], [1], [0, 0, 1, 1], [], []>} : vector<12x2xbf16>, vector<2x3xbf16>, vector<12x3xf32> -> vector<12x3xf32>
    %282 = vector.extract_strided_slice %281 {offsets = [0, 0], sizes = [12, 1], strides = [1, 1]} : vector<12x3xf32> to vector<12x1xf32>
    %283 = vector.broadcast %282 : vector<12x1xf32> to vector<12x128xf32>
    %284 = arith.mulf %103, %283 : vector<12x128xf32>
    %285 = vector.extract_strided_slice %281 {offsets = [0, 1], sizes = [12, 1], strides = [1, 1]} : vector<12x3xf32> to vector<12x1xf32>
    %286 = vector.broadcast %285 : vector<12x1xf32> to vector<12x128xf32>
    %287 = arith.mulf %159, %286 : vector<12x128xf32>
    %288 = arith.addf %284, %287 : vector<12x128xf32>
    %289 = vector.extract_strided_slice %281 {offsets = [0, 2], sizes = [12, 1], strides = [1, 1]} : vector<12x3xf32> to vector<12x1xf32>
    %290 = vector.broadcast %289 : vector<12x1xf32> to vector<12x128xf32>
    %291 = arith.mulf %215, %290 : vector<12x128xf32>
    %292 = arith.addf %288, %291 : vector<12x128xf32>
    %c0_111 = arith.constant 0 : index
    %c0_112 = arith.constant 0 : index
    %293 = vector.load %arg7[%c0_111, %c0_112] : memref<8x12xbf16, #tpu.memory_space<vmem>>, vector<8x12xbf16>
    %294 = arith.truncf %292 : vector<12x128xf32> to vector<12x128xbf16>
    %cst_113 = arith.constant dense<0.000000e+00> : vector<8x128xf32>
    %295 = tpu.matmul %293, %294, %cst_113 {dimension_numbers = #tpu.dot_dimension_numbers<[1], [0], [0], [1], [0, 0, 1, 1], [], []>} : vector<8x12xbf16>, vector<12x128xbf16>, vector<8x128xf32> -> vector<8x128xf32>
    %296 = arith.addf %72, %295 : vector<8x128xf32>
    %c0_114 = arith.constant 0 : index
    %c0_115 = arith.constant 0 : index
    %297 = vector.load %arg24[%c0_114, %c0_115] : memref<1x128xf32, #tpu.memory_space<vmem>>, vector<1x128xf32>
    %c0_116 = arith.constant 0 : index
    %c0_117 = arith.constant 0 : index
    %298 = vector.load %arg25[%c0_116, %c0_117] : memref<1x128xf32, #tpu.memory_space<vmem>>, vector<1x128xf32>
    %cst_118 = arith.constant dense<0.000000e+00> : vector<128xf32>
    %299 = vector.multi_reduction <add>, %296, %cst_118 [0] : vector<8x128xf32> to vector<128xf32>
    %300 = vector.shape_cast %299 : vector<128xf32> to vector<1x128xf32>
    %cst_119 = arith.constant 8.000000e+00 : f32
    %301 = vector.broadcast %cst_119 : f32 to vector<1x128xf32>
    %302 = arith.divf %300, %301 : vector<1x128xf32>
    %303 = vector.broadcast %302 : vector<1x128xf32> to vector<8x128xf32>
    %304 = arith.subf %296, %303 : vector<8x128xf32>
    %305 = arith.mulf %304, %304 : vector<8x128xf32>
    %cst_120 = arith.constant dense<0.000000e+00> : vector<128xf32>
    %306 = vector.multi_reduction <add>, %305, %cst_120 [0] : vector<8x128xf32> to vector<128xf32>
    %307 = vector.shape_cast %306 : vector<128xf32> to vector<1x128xf32>
    %cst_121 = arith.constant 8.000000e+00 : f32
    %308 = vector.broadcast %cst_121 : f32 to vector<1x128xf32>
    %309 = arith.divf %307, %308 : vector<1x128xf32>
    %310 = vector.broadcast %302 : vector<1x128xf32> to vector<8x128xf32>
    %311 = arith.subf %296, %310 : vector<8x128xf32>
    %cst_122 = arith.constant 9.99999974E-6 : f32
    %312 = vector.broadcast %cst_122 : f32 to vector<1x128xf32>
    %313 = arith.addf %309, %312 : vector<1x128xf32>
    %314 = math.rsqrt %313 : vector<1x128xf32>
    %315 = vector.broadcast %314 : vector<1x128xf32> to vector<8x128xf32>
    %316 = arith.mulf %311, %315 : vector<8x128xf32>
    %317 = vector.broadcast %297 : vector<1x128xf32> to vector<8x128xf32>
    %318 = arith.mulf %316, %317 : vector<8x128xf32>
    %319 = vector.broadcast %298 : vector<1x128xf32> to vector<8x128xf32>
    %320 = arith.addf %318, %319 : vector<8x128xf32>
    %c0_123 = arith.constant 0 : index
    %c0_124 = arith.constant 0 : index
    %321 = vector.load %arg26[%c0_123, %c0_124] : memref<128x256xbf16, #tpu.memory_space<vmem>>, vector<128x256xbf16>
    %322 = arith.truncf %320 : vector<8x128xf32> to vector<8x128xbf16>
    %cst_125 = arith.constant dense<0.000000e+00> : vector<8x256xf32>
    %323 = tpu.matmul %322, %321, %cst_125 {dimension_numbers = #tpu.dot_dimension_numbers<[1], [0], [0], [1], [0, 0, 1, 1], [], []>} : vector<8x128xbf16>, vector<128x256xbf16>, vector<8x256xf32> -> vector<8x256xf32>
    %c0_126 = arith.constant 0 : index
    %c0_127 = arith.constant 0 : index
    %324 = vector.load %arg27[%c0_126, %c0_127] : memref<1x256xf32, #tpu.memory_space<vmem>>, vector<1x256xf32>
    %325 = vector.broadcast %324 : vector<1x256xf32> to vector<8x256xf32>
    %326 = arith.addf %323, %325 : vector<8x256xf32>
    %c0_128 = arith.constant 0 : index
    %c0_129 = arith.constant 0 : index
    %327 = vector.load %arg28[%c0_128, %c0_129] : memref<1x256xf32, #tpu.memory_space<vmem>>, vector<1x256xf32>
    %c0_130 = arith.constant 0 : index
    %c0_131 = arith.constant 0 : index
    %328 = vector.load %arg29[%c0_130, %c0_131] : memref<1x256xf32, #tpu.memory_space<vmem>>, vector<1x256xf32>
    %cst_132 = arith.constant dense<0.000000e+00> : vector<256xf32>
    %329 = vector.multi_reduction <add>, %326, %cst_132 [0] : vector<8x256xf32> to vector<256xf32>
    %330 = vector.shape_cast %329 : vector<256xf32> to vector<1x256xf32>
    %cst_133 = arith.constant 8.000000e+00 : f32
    %331 = vector.broadcast %cst_133 : f32 to vector<1x256xf32>
    %332 = arith.divf %330, %331 : vector<1x256xf32>
    %333 = vector.broadcast %332 : vector<1x256xf32> to vector<8x256xf32>
    %334 = arith.subf %326, %333 : vector<8x256xf32>
    %335 = arith.mulf %334, %334 : vector<8x256xf32>
    %cst_134 = arith.constant dense<0.000000e+00> : vector<256xf32>
    %336 = vector.multi_reduction <add>, %335, %cst_134 [0] : vector<8x256xf32> to vector<256xf32>
    %337 = vector.shape_cast %336 : vector<256xf32> to vector<1x256xf32>
    %cst_135 = arith.constant 8.000000e+00 : f32
    %338 = vector.broadcast %cst_135 : f32 to vector<1x256xf32>
    %339 = arith.divf %337, %338 : vector<1x256xf32>
    %340 = vector.broadcast %332 : vector<1x256xf32> to vector<8x256xf32>
    %341 = arith.subf %326, %340 : vector<8x256xf32>
    %cst_136 = arith.constant 9.99999974E-6 : f32
    %342 = vector.broadcast %cst_136 : f32 to vector<1x256xf32>
    %343 = arith.addf %339, %342 : vector<1x256xf32>
    %344 = math.rsqrt %343 : vector<1x256xf32>
    %345 = vector.broadcast %344 : vector<1x256xf32> to vector<8x256xf32>
    %346 = arith.mulf %341, %345 : vector<8x256xf32>
    %347 = vector.broadcast %327 : vector<1x256xf32> to vector<8x256xf32>
    %348 = arith.mulf %346, %347 : vector<8x256xf32>
    %349 = vector.broadcast %328 : vector<1x256xf32> to vector<8x256xf32>
    %350 = arith.addf %348, %349 : vector<8x256xf32>
    %c2_137 = arith.constant 2 : index
    %351 = memref.load %arg44[%c2_137] : memref<6xf32, #tpu.memory_space<smem>>
    %cst_138 = arith.constant 0.000000e+00 : f32
    %352 = vector.broadcast %cst_138 : f32 to vector<8x256xf32>
    %353 = arith.cmpf ogt, %350, %352 : vector<8x256xf32>
    %354 = vector.broadcast %351 : f32 to vector<8x256xf32>
    %355 = arith.mulf %354, %350 : vector<8x256xf32>
    %356 = arith.select %353, %350, %355 : vector<8x256xi1>, vector<8x256xf32>
    %c0_139 = arith.constant 0 : index
    %c0_140 = arith.constant 0 : index
    %357 = vector.load %arg30[%c0_139, %c0_140] : memref<256x256xbf16, #tpu.memory_space<vmem>>, vector<256x256xbf16>
    %358 = arith.truncf %356 : vector<8x256xf32> to vector<8x256xbf16>
    %cst_141 = arith.constant dense<0.000000e+00> : vector<8x256xf32>
    %359 = tpu.matmul %358, %357, %cst_141 {dimension_numbers = #tpu.dot_dimension_numbers<[1], [0], [0], [1], [0, 0, 1, 1], [], []>} : vector<8x256xbf16>, vector<256x256xbf16>, vector<8x256xf32> -> vector<8x256xf32>
    %c0_142 = arith.constant 0 : index
    %c0_143 = arith.constant 0 : index
    %360 = vector.load %arg31[%c0_142, %c0_143] : memref<1x256xf32, #tpu.memory_space<vmem>>, vector<1x256xf32>
    %361 = vector.broadcast %360 : vector<1x256xf32> to vector<8x256xf32>
    %362 = arith.addf %359, %361 : vector<8x256xf32>
    %c0_144 = arith.constant 0 : index
    %c0_145 = arith.constant 0 : index
    %363 = vector.load %arg32[%c0_144, %c0_145] : memref<1x256xf32, #tpu.memory_space<vmem>>, vector<1x256xf32>
    %c0_146 = arith.constant 0 : index
    %c0_147 = arith.constant 0 : index
    %364 = vector.load %arg33[%c0_146, %c0_147] : memref<1x256xf32, #tpu.memory_space<vmem>>, vector<1x256xf32>
    %cst_148 = arith.constant dense<0.000000e+00> : vector<256xf32>
    %365 = vector.multi_reduction <add>, %362, %cst_148 [0] : vector<8x256xf32> to vector<256xf32>
    %366 = vector.shape_cast %365 : vector<256xf32> to vector<1x256xf32>
    %cst_149 = arith.constant 8.000000e+00 : f32
    %367 = vector.broadcast %cst_149 : f32 to vector<1x256xf32>
    %368 = arith.divf %366, %367 : vector<1x256xf32>
    %369 = vector.broadcast %368 : vector<1x256xf32> to vector<8x256xf32>
    %370 = arith.subf %362, %369 : vector<8x256xf32>
    %371 = arith.mulf %370, %370 : vector<8x256xf32>
    %cst_150 = arith.constant dense<0.000000e+00> : vector<256xf32>
    %372 = vector.multi_reduction <add>, %371, %cst_150 [0] : vector<8x256xf32> to vector<256xf32>
    %373 = vector.shape_cast %372 : vector<256xf32> to vector<1x256xf32>
    %cst_151 = arith.constant 8.000000e+00 : f32
    %374 = vector.broadcast %cst_151 : f32 to vector<1x256xf32>
    %375 = arith.divf %373, %374 : vector<1x256xf32>
    %376 = vector.broadcast %368 : vector<1x256xf32> to vector<8x256xf32>
    %377 = arith.subf %362, %376 : vector<8x256xf32>
    %cst_152 = arith.constant 9.99999974E-6 : f32
    %378 = vector.broadcast %cst_152 : f32 to vector<1x256xf32>
    %379 = arith.addf %375, %378 : vector<1x256xf32>
    %380 = math.rsqrt %379 : vector<1x256xf32>
    %381 = vector.broadcast %380 : vector<1x256xf32> to vector<8x256xf32>
    %382 = arith.mulf %377, %381 : vector<8x256xf32>
    %383 = vector.broadcast %363 : vector<1x256xf32> to vector<8x256xf32>
    %384 = arith.mulf %382, %383 : vector<8x256xf32>
    %385 = vector.broadcast %364 : vector<1x256xf32> to vector<8x256xf32>
    %386 = arith.addf %384, %385 : vector<8x256xf32>
    %c3 = arith.constant 3 : index
    %387 = memref.load %arg44[%c3] : memref<6xf32, #tpu.memory_space<smem>>
    %cst_153 = arith.constant 0.000000e+00 : f32
    %388 = vector.broadcast %cst_153 : f32 to vector<8x256xf32>
    %389 = arith.cmpf ogt, %386, %388 : vector<8x256xf32>
    %390 = vector.broadcast %387 : f32 to vector<8x256xf32>
    %391 = arith.mulf %390, %386 : vector<8x256xf32>
    %392 = arith.select %389, %386, %391 : vector<8x256xi1>, vector<8x256xf32>
    %c0_154 = arith.constant 0 : index
    %c0_155 = arith.constant 0 : index
    %393 = vector.load %arg34[%c0_154, %c0_155] : memref<256x256xbf16, #tpu.memory_space<vmem>>, vector<256x256xbf16>
    %394 = arith.truncf %392 : vector<8x256xf32> to vector<8x256xbf16>
    %cst_156 = arith.constant dense<0.000000e+00> : vector<8x256xf32>
    %395 = tpu.matmul %394, %393, %cst_156 {dimension_numbers = #tpu.dot_dimension_numbers<[1], [0], [0], [1], [0, 0, 1, 1], [], []>} : vector<8x256xbf16>, vector<256x256xbf16>, vector<8x256xf32> -> vector<8x256xf32>
    %c0_157 = arith.constant 0 : index
    %c0_158 = arith.constant 0 : index
    %396 = vector.load %arg35[%c0_157, %c0_158] : memref<1x256xf32, #tpu.memory_space<vmem>>, vector<1x256xf32>
    %397 = vector.broadcast %396 : vector<1x256xf32> to vector<8x256xf32>
    %398 = arith.addf %395, %397 : vector<8x256xf32>
    %399 = arith.addf %398, %326 : vector<8x256xf32>
    %cst_159 = arith.constant 5.000000e-01 : f32
    %400 = vector.broadcast %cst_159 : f32 to vector<8x256xf32>
    %401 = arith.mulf %399, %400 : vector<8x256xf32>
    %c0_160 = arith.constant 0 : index
    %c0_161 = arith.constant 0 : index
    %402 = vector.load %arg36[%c0_160, %c0_161] : memref<1x256xf32, #tpu.memory_space<vmem>>, vector<1x256xf32>
    %c0_162 = arith.constant 0 : index
    %c0_163 = arith.constant 0 : index
    %403 = vector.load %arg37[%c0_162, %c0_163] : memref<1x256xf32, #tpu.memory_space<vmem>>, vector<1x256xf32>
    %cst_164 = arith.constant dense<0.000000e+00> : vector<256xf32>
    %404 = vector.multi_reduction <add>, %401, %cst_164 [0] : vector<8x256xf32> to vector<256xf32>
    %405 = vector.shape_cast %404 : vector<256xf32> to vector<1x256xf32>
    %cst_165 = arith.constant 8.000000e+00 : f32
    %406 = vector.broadcast %cst_165 : f32 to vector<1x256xf32>
    %407 = arith.divf %405, %406 : vector<1x256xf32>
    %408 = vector.broadcast %407 : vector<1x256xf32> to vector<8x256xf32>
    %409 = arith.subf %401, %408 : vector<8x256xf32>
    %410 = arith.mulf %409, %409 : vector<8x256xf32>
    %cst_166 = arith.constant dense<0.000000e+00> : vector<256xf32>
    %411 = vector.multi_reduction <add>, %410, %cst_166 [0] : vector<8x256xf32> to vector<256xf32>
    %412 = vector.shape_cast %411 : vector<256xf32> to vector<1x256xf32>
    %cst_167 = arith.constant 8.000000e+00 : f32
    %413 = vector.broadcast %cst_167 : f32 to vector<1x256xf32>
    %414 = arith.divf %412, %413 : vector<1x256xf32>
    %415 = vector.broadcast %407 : vector<1x256xf32> to vector<8x256xf32>
    %416 = arith.subf %401, %415 : vector<8x256xf32>
    %cst_168 = arith.constant 9.99999974E-6 : f32
    %417 = vector.broadcast %cst_168 : f32 to vector<1x256xf32>
    %418 = arith.addf %414, %417 : vector<1x256xf32>
    %419 = math.rsqrt %418 : vector<1x256xf32>
    %420 = vector.broadcast %419 : vector<1x256xf32> to vector<8x256xf32>
    %421 = arith.mulf %416, %420 : vector<8x256xf32>
    %422 = vector.broadcast %402 : vector<1x256xf32> to vector<8x256xf32>
    %423 = arith.mulf %421, %422 : vector<8x256xf32>
    %424 = vector.broadcast %403 : vector<1x256xf32> to vector<8x256xf32>
    %425 = arith.addf %423, %424 : vector<8x256xf32>
    %c4 = arith.constant 4 : index
    %426 = memref.load %arg44[%c4] : memref<6xf32, #tpu.memory_space<smem>>
    %cst_169 = arith.constant 0.000000e+00 : f32
    %427 = vector.broadcast %cst_169 : f32 to vector<8x256xf32>
    %428 = arith.cmpf ogt, %425, %427 : vector<8x256xf32>
    %429 = vector.broadcast %426 : f32 to vector<8x256xf32>
    %430 = arith.mulf %429, %425 : vector<8x256xf32>
    %431 = arith.select %428, %425, %430 : vector<8x256xi1>, vector<8x256xf32>
    %c0_170 = arith.constant 0 : index
    %c0_171 = arith.constant 0 : index
    %432 = vector.load %arg38[%c0_170, %c0_171] : memref<256x256xbf16, #tpu.memory_space<vmem>>, vector<256x256xbf16>
    %433 = arith.truncf %431 : vector<8x256xf32> to vector<8x256xbf16>
    %cst_172 = arith.constant dense<0.000000e+00> : vector<8x256xf32>
    %434 = tpu.matmul %433, %432, %cst_172 {dimension_numbers = #tpu.dot_dimension_numbers<[1], [0], [0], [1], [0, 0, 1, 1], [], []>} : vector<8x256xbf16>, vector<256x256xbf16>, vector<8x256xf32> -> vector<8x256xf32>
    %c0_173 = arith.constant 0 : index
    %c0_174 = arith.constant 0 : index
    %435 = vector.load %arg39[%c0_173, %c0_174] : memref<1x256xf32, #tpu.memory_space<vmem>>, vector<1x256xf32>
    %436 = vector.broadcast %435 : vector<1x256xf32> to vector<8x256xf32>
    %437 = arith.addf %434, %436 : vector<8x256xf32>
    %438 = arith.addf %437, %401 : vector<8x256xf32>
    %cst_175 = arith.constant 5.000000e-01 : f32
    %439 = vector.broadcast %cst_175 : f32 to vector<8x256xf32>
    %440 = arith.mulf %438, %439 : vector<8x256xf32>
    %c0_176 = arith.constant 0 : index
    %c0_177 = arith.constant 0 : index
    %441 = vector.load %arg40[%c0_176, %c0_177] : memref<1x256xf32, #tpu.memory_space<vmem>>, vector<1x256xf32>
    %c0_178 = arith.constant 0 : index
    %c0_179 = arith.constant 0 : index
    %442 = vector.load %arg41[%c0_178, %c0_179] : memref<1x256xf32, #tpu.memory_space<vmem>>, vector<1x256xf32>
    %cst_180 = arith.constant dense<0.000000e+00> : vector<256xf32>
    %443 = vector.multi_reduction <add>, %440, %cst_180 [0] : vector<8x256xf32> to vector<256xf32>
    %444 = vector.shape_cast %443 : vector<256xf32> to vector<1x256xf32>
    %cst_181 = arith.constant 8.000000e+00 : f32
    %445 = vector.broadcast %cst_181 : f32 to vector<1x256xf32>
    %446 = arith.divf %444, %445 : vector<1x256xf32>
    %447 = vector.broadcast %446 : vector<1x256xf32> to vector<8x256xf32>
    %448 = arith.subf %440, %447 : vector<8x256xf32>
    %449 = arith.mulf %448, %448 : vector<8x256xf32>
    %cst_182 = arith.constant dense<0.000000e+00> : vector<256xf32>
    %450 = vector.multi_reduction <add>, %449, %cst_182 [0] : vector<8x256xf32> to vector<256xf32>
    %451 = vector.shape_cast %450 : vector<256xf32> to vector<1x256xf32>
    %cst_183 = arith.constant 8.000000e+00 : f32
    %452 = vector.broadcast %cst_183 : f32 to vector<1x256xf32>
    %453 = arith.divf %451, %452 : vector<1x256xf32>
    %454 = vector.broadcast %446 : vector<1x256xf32> to vector<8x256xf32>
    %455 = arith.subf %440, %454 : vector<8x256xf32>
    %cst_184 = arith.constant 9.99999974E-6 : f32
    %456 = vector.broadcast %cst_184 : f32 to vector<1x256xf32>
    %457 = arith.addf %453, %456 : vector<1x256xf32>
    %458 = math.rsqrt %457 : vector<1x256xf32>
    %459 = vector.broadcast %458 : vector<1x256xf32> to vector<8x256xf32>
    %460 = arith.mulf %455, %459 : vector<8x256xf32>
    %461 = vector.broadcast %441 : vector<1x256xf32> to vector<8x256xf32>
    %462 = arith.mulf %460, %461 : vector<8x256xf32>
    %463 = vector.broadcast %442 : vector<1x256xf32> to vector<8x256xf32>
    %464 = arith.addf %462, %463 : vector<8x256xf32>
    %c5 = arith.constant 5 : index
    %465 = memref.load %arg44[%c5] : memref<6xf32, #tpu.memory_space<smem>>
    %cst_185 = arith.constant 0.000000e+00 : f32
    %466 = vector.broadcast %cst_185 : f32 to vector<8x256xf32>
    %467 = arith.cmpf ogt, %464, %466 : vector<8x256xf32>
    %468 = vector.broadcast %465 : f32 to vector<8x256xf32>
    %469 = arith.mulf %468, %464 : vector<8x256xf32>
    %470 = arith.select %467, %464, %469 : vector<8x256xi1>, vector<8x256xf32>
    %c0_186 = arith.constant 0 : index
    %c0_187 = arith.constant 0 : index
    %471 = vector.load %arg42[%c0_186, %c0_187] : memref<256x128xbf16, #tpu.memory_space<vmem>>, vector<256x128xbf16>
    %472 = arith.truncf %470 : vector<8x256xf32> to vector<8x256xbf16>
    %cst_188 = arith.constant dense<0.000000e+00> : vector<8x128xf32>
    %473 = tpu.matmul %472, %471, %cst_188 {dimension_numbers = #tpu.dot_dimension_numbers<[1], [0], [0], [1], [0, 0, 1, 1], [], []>} : vector<8x256xbf16>, vector<256x128xbf16>, vector<8x128xf32> -> vector<8x128xf32>
    %c0_189 = arith.constant 0 : index
    %c0_190 = arith.constant 0 : index
    %474 = vector.load %arg43[%c0_189, %c0_190] : memref<1x128xf32, #tpu.memory_space<vmem>>, vector<1x128xf32>
    %475 = vector.broadcast %474 : vector<1x128xf32> to vector<8x128xf32>
    %476 = arith.addf %473, %475 : vector<8x128xf32>
    %c0_191 = arith.constant 0 : index
    %c0_192 = arith.constant 0 : index
    %477 = vector.load %arg47[%c0_191, %c0_192] : memref<8x128xf32, #tpu.memory_space<vmem>>, vector<8x128xf32>
    tpu.vector_store %arg47[%c0_191, %c0_192], %476 {strides = array<i32>} : memref<8x128xf32, #tpu.memory_space<vmem>>, vector<8x128xf32>,
    return
  }
}

</mosaic_0001>

<bundles_post_ra>
// kernel: tpu_custom_call.1
= control target key start
LH: loop header
LB: loop body
LE: loop exit
PB: predicated region body
PF: predicated region fallthrough
CT: control target
= control target key end

     0   :  { %s5654_s6 = smov 1   ;;  %s5655_s10 = smov 2   ;;  %s6611_s0 = inlined_call_operand.smem [shape: u32[48], index: -1, kind: input, shape index: {}] }
   0x1   :  { %s5747_s5 = sld [smem:[%s6611_s0]]   ;;  %s5656_s14 = smov 3  }
   0x2   :  { %s5752_s9 = sld [smem:[%s6611_s0 + %s5654_s6]]   ;;  %s5657_s18 = smov 4  }
   0x3   :  { %s5757_s13 = sld [smem:[%s6611_s0 + %s5655_s10]]   ;;  %s5658_s22 = smov 5  }
   0x4   :  { %s5762_s17 = sld [smem:[%s6611_s0 + %s5656_s14]]   ;;  %s5659_s26 = smov 6  }
   0x5   :  { %s5767_s21 = sld [smem:[%s6611_s0 + %s5657_s18]]   ;;  %s5660_s30 = smov 7  }
   0x6   :  { %s5772_s25 = sld [smem:[%s6611_s0 + %s5658_s22]]   ;;  %s5661_s4 = smov 8  }
   0x7   :  { %6626 = sst [smem:[#allocation66_spill]] %s5747_s5  ;;  %s5662_s10 = smov 9  }
   0x8   :  { %s5777_s29 = sld [smem:[%s6611_s0 + %s5659_s26]]   ;;  %s5663_s15 = smov 10  }
   0x9   :  { %6627 = sst [smem:[#allocation67_spill]] %s5757_s13  ;;  %s5664_s20 = smov 11  }
   0xa   :  { %6628 = sst [smem:[#allocation68_spill]] %s5762_s17  ;;  %s5665_s26 = smov 12  }
   0xb   :  { %s5782_s3 = sld [smem:[%s6611_s0 + %s5660_s30]]   ;;  %s5666_s1 = smov 13  }
   0xc   :  { %6629 = sst [smem:[#allocation69_spill]] %s5772_s25  ;;  %s5667_s7 = smov 14  }
   0xd   :  { %s5787_s8 = sld [smem:[%s6611_s0 + %s5661_s4]]   ;;  %s5669_s22 = smov 16  }
   0xe   :  { %s5792_s14 = sld [smem:[%s6611_s0 + %s5662_s10]]   ;;  %s5670_s28 = smov 17  }
   0xf   :  { %s5797_s19 = sld [smem:[%s6611_s0 + %s5663_s15]]   ;;  %s5668_s15 = smov 15  }
  0x10   :  { %s5802_s24 = sld [smem:[%s6611_s0 + %s5664_s20]]  }
  0x11   :  { %s5807_s30 = sld [smem:[%s6611_s0 + %s5665_s26]]  }
  0x12   :  { %s5812_s6 = sld [smem:[%s6611_s0 + %s5666_s1]]  }
  0x13   :  { %6630 = sst [smem:[#allocation70_spill]] %s5787_s8 }
  0x14   :  { %s5817_s12 = sld [smem:[%s6611_s0 + %s5667_s7]]   ;;  %s5671_s7 = smov 18  }
  0x15   :  { %6631 = sst [smem:[#allocation71_spill]] %s5797_s19 }
  0x16   :  { %s5822_s20 = sld [smem:[%s6611_s0 + %s5668_s15]]   ;;  %s5672_s15 = smov 19  }
  0x17   :  { %6632 = sst [smem:[#allocation72_spill]] %s5807_s30 }
  0x18   :  { %s5827_s27 = sld [smem:[%s6611_s0 + %s5669_s22]]   ;;  %s5673_s22 = smov 20  }
  0x19   :  { %s5832_s4 = sld [smem:[%s6611_s0 + %s5670_s28]]   ;;  %s5674_s28 = smov 21  }
  0x1a   :  { %6633 = sst [smem:[#allocation73_spill]] %s5817_s12 }
  0x1b   :  { %s5837_s25 = sld [smem:[%s6611_s0 + %s5671_s7]]   ;;  %s5675_s7 = smov 22  }
  0x1c   :  { %s5842_s13 = sld [smem:[%s6611_s0 + %s5672_s15]]   ;;  %s5676_s15 = smov 23  }
  0x1d   :  { %s5847_s17 = sld [smem:[%s6611_s0 + %s5673_s22]]   ;;  %s5677_s22 = smov 24  }
  0x1e   :  { %6634 = sst [smem:[#allocation74_spill]] %s5827_s27 }
  0x1f   :  { %s5852_s5 = sld [smem:[%s6611_s0 + %s5674_s28]]   ;;  %s5678_s28 = smov 25  }
  0x20   :  { %s5862_s27 = sld [smem:[%s6611_s0 + %s5676_s15]]   ;;  %s5680_s15 = smov 27  }
  0x21   :  { %6635 = sst [smem:[#allocation75_spill]] %s5837_s25 }
  0x22   :  { %s5857_s25 = sld [smem:[%s6611_s0 + %s5675_s7]]   ;;  %s5679_s7 = smov 26  }
  0x23   :  { %6636 = sst [smem:[#allocation76_spill]] %s5847_s17 }
  0x24   :  { %s5867_s17 = sld [smem:[%s6611_s0 + %s5677_s22]]   ;;  %s5681_s22 = smov 28  }
  0x25   :  { %s5872_s12 = sld [smem:[%s6611_s0 + %s5678_s28]]   ;;  %s5682_s28 = smov 29  }
  0x26   :  { %s5882_s30 = sld [smem:[%s6611_s0 + %s5680_s15]]   ;;  %s5684_s15 = smov 31  }
  0x27   :  { %s5892_s19 = sld [smem:[%s6611_s0 + %s5682_s28]]   ;;  %s5686_s28 = smov 33  }
  0x28   :  { %6637 = sst [smem:[#allocation77_spill]] %s5857_s25 }
  0x29   :  { %s5877_s25 = sld [smem:[%s6611_s0 + %s5679_s7]]   ;;  %s5683_s7 = smov 30  }
  0x2a   :  { %6638 = sst [smem:[#allocation78_spill]] %s5867_s17 }
  0x2b   :  { %s5887_s17 = sld [smem:[%s6611_s0 + %s5681_s22]]   ;;  %s5685_s22 = smov 32  }
  0x2c   :  { %6640 = sst [smem:[#allocation80_spill]] %s5882_s30 }
  0x2d   :  { %6642 = sst [smem:[#allocation82_spill]] %s5892_s19 }
  0x2e   :  { %s5902_s30 = sld [smem:[%s6611_s0 + %s5684_s15]]   ;;  %s5688_s15 = smov 35  }
  0x2f   :  { %6639 = sst [smem:[#allocation79_spill]] %s5877_s25 }
  0x30   :  { %s5897_s25 = sld [smem:[%s6611_s0 + %s5683_s7]]   ;;  %s5687_s7 = smov 34  }
  0x31   :  { %6641 = sst [smem:[#allocation81_spill]] %s5887_s17 }
  0x32   :  { %s5907_s17 = sld [smem:[%s6611_s0 + %s5685_s22]]   ;;  %s5689_s22 = smov 36  }
  0x33   :  { %s5912_s19 = sld [smem:[%s6611_s0 + %s5686_s28]]   ;;  %s5690_s28 = smov 37  }
  0x34   :  { %6644 = sst [smem:[#allocation84_spill]] %s5902_s30 }
  0x35   :  { %s5922_s30 = sld [smem:[%s6611_s0 + %s5688_s15]]   ;;  %s5692_s15 = smov 39  }
  0x36   :  { %6643 = sst [smem:[#allocation83_spill]] %s5897_s25 }
  0x37   :  { %s5917_s25 = sld [smem:[%s6611_s0 + %s5687_s7]]   ;;  %s5691_s7 = smov 38  }
  0x38   :  { %6645 = sst [smem:[#allocation85_spill]] %s5907_s17 }
  0x39   :  { %6646 = sst [smem:[#allocation86_spill]] %s5912_s19 }
  0x3a   :  { %s5927_s17 = sld [smem:[%s6611_s0 + %s5689_s22]]   ;;  %s5693_s22 = smov 40  }
  0x3b   :  { %6647 = sst [smem:[#allocation87_spill]] %s5922_s30 }
  0x3c   :  { %s5932_s19 = sld [smem:[%s6611_s0 + %s5690_s28]]   ;;  %s5694_s28 = smov 41  }
  0x3d   :  { %s5937_s8 = sld [smem:[%s6611_s0 + %s5691_s7]]   ;;  %s5695_s7 = smov 42  }
  0x3e   :  { %s5942_s30 = sld [smem:[%s6611_s0 + %s5692_s15]]   ;;  %s5696_s15 = smov 43  }
  0x40   :  { %6648 = sst [smem:[#allocation88_spill]] %s5927_s17 }
  0x41   :  { %s5947_s17 = sld [smem:[%s6611_s0 + %s5693_s22]]   ;;  %s5697_s22 = smov 44  }
  0x42   :  { %6649 = sst [smem:[#allocation89_spill]] %s5932_s19 }
  0x43   :  { %6650 = sst [smem:[#allocation90_spill]] %s5937_s8 }
  0x44   :  { %6651 = sst [smem:[#allocation91_spill]] %s5942_s30 }
  0x45   :  { %s5952_s19 = sld [smem:[%s6611_s0 + %s5694_s28]]   ;;  %s5698_s28 = smov 45  }
  0x46   :  { %s5957_s8 = sld [smem:[%s6611_s0 + %s5695_s7]]   ;;  %s5699_s7 = smov 46  }
  0x47   :  { %6652 = sst [smem:[#allocation92_spill]] %s5947_s17 }
  0x48   :  { %s5962_s30 = sld [smem:[%s6611_s0 + %s5696_s15]]   ;;  %s5700_s15 = smov 47  }
  0x49   :  { %s5967_s17 = sld [smem:[%s6611_s0 + %s5697_s22]]  }
  0x4b   :  { %6653 = sst [smem:[#allocation93_spill]] %s5952_s19 }
  0x4c   :  { %6654 = sst [smem:[#allocation94_spill]] %s5957_s8 }
  0x4d   :  { %s5972_s19 = sld [smem:[%s6611_s0 + %s5698_s28]]  }
  0x4e   :  { %6655 = sst [smem:[#allocation95_spill]] %s5962_s30 }
  0x4f   :  { %s5977_s8 = sld [smem:[%s6611_s0 + %s5699_s7]]  }
  0x50   :  { %s5982_s30 = sld [smem:[%s6611_s0 + %s5700_s15]]  }
  0x51   :  { %101 = vsyncpa [#allocation4], 0 }
  0x52   :  { %102 = vsyncpa [#allocation8], 0 }
  0x53   :  { %103 = vsyncpa [#allocation11], 0 }
  0x54   :  { %104 = vsyncpa [#allocation14], 0 }
  0x55   :  { %105 = vsyncpa [#allocation17], 0 }
  0x56   :  { %106 = vsyncpa [#allocation20], 0 }
  0x57   :  { %107 = vsyncpa [#allocation23], 0 }
  0x58   :  { %108 = vsyncpa [#allocation26], 0 }
  0x59   :  { %109 = vsyncpa [#allocation29], 0 }
  0x5a   :  { %110 = vsyncpa [#allocation32], 0 }
  0x5b   :  { %111 = vsyncpa [#allocation35], 0 }
  0x5c   :  { %112 = vsyncpa [#allocation38], 0 }
  0x5d   :  { %113 = vsyncpa [#allocation41], 0 }
  0x5e   :  { %114 = vsyncpa [#allocation44], 0 }
  0x5f   :  { %115 = vsyncpa [#allocation6], 0 }
  0x60   :  { %116 = vsyncpa [#allocation47], 0 }
  0x61   :  { %117 = vsyncpa [#allocation5], 0  ;;  %s5701_s0 = smov [#allocation7]   ;;  %s5702_s23 = smov [#allocation10]  }
  0x62   :  { %s141_s22 = sshll.u32 %s5701_s0, 4  ;;  %s166_s26 = sshll.u32 %s5702_s23, 4  ;;  %s142_s22 = int_to_ptr.vmem [resolvable:$true] %s141_s22  ;;  %s167_s26 = int_to_ptr.vmem [resolvable:$true] %s166_s26 }
  0x63   :  { %s5002_s28 = scalar_lea.hbm %s5767_s21, 128 }
  0x64   :  { %p5003_p0 = scmp.ne.s32.totalorder %s5767_s21, %s5002_s28  ;;  %p5006_p1 = scmp.lt.u32.totalorder %s5002_s28, %s5767_s21 }
  0x66   :  { %p5008_p2 = pnand %p5006_p1, %p5003_p0 }
  0x68   :  { %5011 = shalt.err (!%p5008_p2)
}
  0x69   :  { %s5012_s1 = scalar_lea.vmem %s142_s22, 128  ;;  %p5017_p4 = scmp.lt.s32.totalorder %s142_s22, %s142_s22 }
  0x6a   :  { %p5013_p3 = scmp.ne.s32.totalorder %s142_s22, %s5012_s1  ;;  %p5018_p5 = scmp.lt.s32.totalorder %s5012_s1, %s5012_s1 }
  0x6c   :  { %p5019_p6 = por %p5018_p5, %p5017_p4 }
  0x6e   :  { %p5020_p7 = pnand %p5019_p6, %p5013_p3 }
  0x70   :  { %5023 = shalt.err (!%p5020_p7)
}
  0x71   :  { %s5703_s2 = smov 64   ;;  %s5704_s7 = smov 4  }
  0x72   :  { %147 = dma.hbm_to_vmem [thread:$0]  %s5767_s21, 128, %s142_s22, [#allocation8], %s5703_s2, %s5703_s2, %s5704_s7  }
  0x73   :  { %s5024_s10 = scalar_lea.hbm %s5782_s3, 64 }
  0x74   :  { %p5025_p8 = scmp.ne.s32.totalorder %s5782_s3, %s5024_s10  ;;  %p5028_p9 = scmp.lt.u32.totalorder %s5024_s10, %s5782_s3 }
  0x76   :  { %p5030_p10 = pnand %p5028_p9, %p5025_p8 }
  0x78   :  { %5033 = shalt.err (!%p5030_p10)
}
  0x79   :  { %s5034_s11 = scalar_lea.vmem %s167_s26, 64  ;;  %p5039_p12 = scmp.lt.s32.totalorder %s167_s26, %s167_s26 }
  0x7a   :  { %p5035_p11 = scmp.ne.s32.totalorder %s167_s26, %s5034_s11  ;;  %p5040_p13 = scmp.lt.s32.totalorder %s5034_s11, %s5034_s11 }
  0x7c   :  { %p5041_p0 = por %p5040_p13, %p5039_p12 }
  0x7e   :  { %p5042_p1 = pnand %p5041_p0, %p5035_p11 }
  0x80   :  { %5045 = shalt.err (!%p5042_p1)
}
  0x81   :  { %169 = dma.hbm_to_vmem [thread:$0]  %s5782_s3, 64, %s167_s26, [#allocation11]  }
  0x82   :  { %s5705_s15 = smov [#allocation13]   ;;  %s5706_s21 = smov [#allocation16]  }
  0x83   :  { %s188_s16 = sshll.u32 %s5705_s15, 4  ;;  %s210_s18 = sshll.u32 %s5706_s21, 4  ;;  %s189_s16 = int_to_ptr.vmem [resolvable:$true] %s188_s16  ;;  %s211_s18 = int_to_ptr.vmem [resolvable:$true] %s210_s18 }
  0x84   :  { %s5046_s0 = scalar_lea.hbm %s5792_s14, 16 }
  0x85   :  { %p5047_p2 = scmp.ne.s32.totalorder %s5792_s14, %s5046_s0  ;;  %p5050_p3 = scmp.lt.u32.totalorder %s5046_s0, %s5792_s14 }
  0x87   :  { %p5052_p4 = pnand %p5050_p3, %p5047_p2 }
  0x89   :  { %5055 = shalt.err (!%p5052_p4)
}
  0x8a   :  { %s5056_s22 = scalar_lea.vmem %s189_s16, 16  ;;  %s5060_s23 = scalar_lea.vmem %s189_s16, 32 }
  0x8b   :  { %p5057_p5 = scmp.ne.s32.totalorder %s189_s16, %s5056_s22  ;;  %p5061_p6 = scmp.lt.s32.totalorder %s189_s16, %s189_s16 }
  0x8c   :  { %p5062_p7 = scmp.lt.s32.totalorder %s5060_s23, %s5056_s22 }
  0x8e   :  { %p5063_p8 = por %p5062_p7, %p5061_p6 }
  0x90   :  { %p5064_p9 = pnand %p5063_p8, %p5057_p5 }
  0x92   :  { %5067 = shalt.err (!%p5064_p9)
}
  0x93   :  { %191 = dma.hbm_to_vmem [thread:$0]  %s5792_s14, 16, %s189_s16, [#allocation14]  }
  0x94   :  { %s5068_s3 = scalar_lea.hbm %s5802_s24, 16 }
  0x95   :  { %p5069_p10 = scmp.ne.s32.totalorder %s5802_s24, %s5068_s3  ;;  %p5072_p11 = scmp.lt.u32.totalorder %s5068_s3, %s5802_s24 }
  0x97   :  { %p5074_p12 = pnand %p5072_p11, %p5069_p10 }
  0x99   :  { %5077 = shalt.err (!%p5074_p12)
}
  0x9a   :  { %s5078_s26 = scalar_lea.vmem %s211_s18, 16  ;;  %s5082_s28 = scalar_lea.vmem %s211_s18, 32 }
  0x9b   :  { %p5079_p13 = scmp.ne.s32.totalorder %s211_s18, %s5078_s26  ;;  %p5083_p0 = scmp.lt.s32.totalorder %s211_s18, %s211_s18 }
  0x9c   :  { %p5084_p1 = scmp.lt.s32.totalorder %s5082_s28, %s5078_s26 }
  0x9e   :  { %p5085_p2 = por %p5084_p1, %p5083_p0 }
  0xa0   :  { %p5086_p3 = pnand %p5085_p2, %p5079_p13 }
  0xa2   :  { %5089 = shalt.err (!%p5086_p3)
}
  0xa3   :  { %213 = dma.hbm_to_vmem [thread:$0]  %s5802_s24, 16, %s211_s18, [#allocation17]  }
  0xa4   :  { %s5707_s1 = smov [#allocation19]   ;;  %s5708_s10 = smov [#allocation22]  }
  0xa5   :  { %s229_s14 = sshll.u32 %s5707_s1, 4  ;;  %s252_s11 = sshll.u32 %s5708_s10, 4  ;;  %s230_s14 = int_to_ptr.vmem [resolvable:$true] %s229_s14  ;;  %s253_s11 = int_to_ptr.vmem [resolvable:$true] %s252_s11 }
  0xa6   :  { %s5090_s15 = scalar_lea.hbm %s5812_s6, 1024 }
  0xa7   :  { %p5091_p4 = scmp.ne.s32.totalorder %s5812_s6, %s5090_s15  ;;  %p5094_p5 = scmp.lt.u32.totalorder %s5090_s15, %s5812_s6 }
  0xa9   :  { %p5096_p6 = pnand %p5094_p5, %p5091_p4 }
  0xab   :  { %5099 = shalt.err (!%p5096_p6)
}
  0xac   :  { %s5100_s16 = scalar_lea.vmem %s230_s14, 1024  ;;  %p5105_p8 = scmp.lt.s32.totalorder %s230_s14, %s230_s14 }
  0xad   :  { %p5101_p7 = scmp.ne.s32.totalorder %s230_s14, %s5100_s16  ;;  %p5106_p9 = scmp.lt.s32.totalorder %s5100_s16, %s5100_s16 }
  0xaf   :  { %p5107_p10 = por %p5106_p9, %p5105_p8 }
  0xb1   :  { %p5108_p11 = pnand %p5107_p10, %p5101_p7 }
  0xb3   :  { %5111 = shalt.err (!%p5108_p11)
}
  0xb4   :  { %235 = dma.hbm_to_vmem [thread:$0]  %s5812_s6, 1024, %s230_s14, [#allocation20], %s5703_s2, %s5703_s2, %s5704_s7  }
  0xb5   :  { %s5112_s24 = scalar_lea.hbm %s5822_s20, 16 }
  0xb6   :  { %p5113_p12 = scmp.ne.s32.totalorder %s5822_s20, %s5112_s24  ;;  %p5116_p13 = scmp.lt.u32.totalorder %s5112_s24, %s5822_s20 }
  0xb8   :  { %p5118_p0 = pnand %p5116_p13, %p5113_p12 }
  0xba   :  { %5121 = shalt.err (!%p5118_p0)
}
  0xbb   :  { %s5122_s21 = scalar_lea.vmem %s253_s11, 16  ;;  %s5126_s18 = scalar_lea.vmem %s253_s11, 32 }
  0xbc   :  { %p5123_p1 = scmp.ne.s32.totalorder %s253_s11, %s5122_s21  ;;  %p5127_p2 = scmp.lt.s32.totalorder %s253_s11, %s253_s11 }
  0xbd   :  { %p5128_p3 = scmp.lt.s32.totalorder %s5126_s18, %s5122_s21 }
  0xbf   :  { %p5129_p4 = por %p5128_p3, %p5127_p2 }
  0xc1   :  { %p5130_p5 = pnand %p5129_p4, %p5123_p1 }
  0xc3   :  { %5133 = shalt.err (!%p5130_p5)
}
  0xc4   :  { %255 = dma.hbm_to_vmem [thread:$0]  %s5822_s20, 16, %s253_s11, [#allocation23]  }
  0xc5   :  { %s5709_s0 = smov [#allocation25]   ;;  %s5710_s22 = smov [#allocation28]  }
  0xc6   :  { %s273_s6 = sshll.u32 %s5709_s0, 4  ;;  %s298_s23 = sshll.u32 %s5710_s22, 4  ;;  %s274_s6 = int_to_ptr.vmem [resolvable:$true] %s273_s6  ;;  %s299_s23 = int_to_ptr.vmem [resolvable:$true] %s298_s23 }
  0xc7   :  { %s5134_s3 = scalar_lea.hbm %s5832_s4, 1024 }
  0xc8   :  { %p5135_p6 = scmp.ne.s32.totalorder %s5832_s4, %s5134_s3  ;;  %p5138_p7 = scmp.lt.u32.totalorder %s5134_s3, %s5832_s4 }
  0xca   :  { %p5140_p8 = pnand %p5138_p7, %p5135_p6 }
  0xcc   :  { %5143 = shalt.err (!%p5140_p8)
}
  0xcd   :  { %s5144_s26 = scalar_lea.vmem %s274_s6, 1024  ;;  %p5149_p10 = scmp.lt.s32.totalorder %s274_s6, %s274_s6 }
  0xce   :  { %p5145_p9 = scmp.ne.s32.totalorder %s274_s6, %s5144_s26  ;;  %p5150_p11 = scmp.lt.s32.totalorder %s5144_s26, %s5144_s26 }
  0xd0   :  { %p5151_p12 = por %p5150_p11, %p5149_p10 }
  0xd2   :  { %p5152_p13 = pnand %p5151_p12, %p5145_p9 }
  0xd4   :  { %5155 = shalt.err (!%p5152_p13)
}
  0xd5   :  { %279 = dma.hbm_to_vmem [thread:$0]  %s5832_s4, 1024, %s274_s6, [#allocation26], %s5703_s2, %s5703_s2, %s5704_s7  }
  0xd6   :  { %s5156_s20 = scalar_lea.hbm %s5842_s13, 16 }
  0xd7   :  { %p5157_p0 = scmp.ne.s32.totalorder %s5842_s13, %s5156_s20  ;;  %p5160_p1 = scmp.lt.u32.totalorder %s5156_s20, %s5842_s13 }
  0xd9   :  { %p5162_p2 = pnand %p5160_p1, %p5157_p0 }
  0xdb   :  { %5165 = shalt.err (!%p5162_p2)
}
  0xdc   :  { %s5166_s28 = scalar_lea.vmem %s299_s23, 16  ;;  %s5170_s1 = scalar_lea.vmem %s299_s23, 32 }
  0xdd   :  { %p5167_p3 = scmp.ne.s32.totalorder %s299_s23, %s5166_s28  ;;  %p5171_p4 = scmp.lt.s32.totalorder %s299_s23, %s299_s23 }
  0xde   :  { %p5172_p5 = scmp.lt.s32.totalorder %s5170_s1, %s5166_s28 }
  0xe0   :  { %p5173_p6 = por %p5172_p5, %p5171_p4 }
  0xe2   :  { %p5174_p7 = pnand %p5173_p6, %p5167_p3 }
  0xe4   :  { %5177 = shalt.err (!%p5174_p7)
}
  0xe5   :  { %301 = dma.hbm_to_vmem [thread:$0]  %s5842_s13, 16, %s299_s23, [#allocation29]  }
  0xe6   :  { %s5711_s14 = smov [#allocation31]   ;;  %s5712_s10 = smov [#allocation34]  }
  0xe7   :  { %s317_s4 = sshll.u32 %s5711_s14, 4  ;;  %s340_s11 = sshll.u32 %s5712_s10, 4  ;;  %s318_s4 = int_to_ptr.vmem [resolvable:$true] %s317_s4  ;;  %s341_s11 = int_to_ptr.vmem [resolvable:$true] %s340_s11 }
  0xe8   :  { %s5178_s15 = scalar_lea.hbm %s5852_s5, 1024 }
  0xe9   :  { %p5179_p8 = scmp.ne.s32.totalorder %s5852_s5, %s5178_s15  ;;  %p5182_p9 = scmp.lt.u32.totalorder %s5178_s15, %s5852_s5 }
  0xeb   :  { %p5184_p10 = pnand %p5182_p9, %p5179_p8 }
  0xed   :  { %5187 = shalt.err (!%p5184_p10)
}
  0xee   :  { %s5188_s16 = scalar_lea.vmem %s318_s4, 1024  ;;  %p5193_p12 = scmp.lt.s32.totalorder %s318_s4, %s318_s4 }
  0xef   :  { %p5189_p11 = scmp.ne.s32.totalorder %s318_s4, %s5188_s16  ;;  %p5194_p13 = scmp.lt.s32.totalorder %s5188_s16, %s5188_s16 }
  0xf1   :  { %p5195_p0 = por %p5194_p13, %p5193_p12 }
  0xf3   :  { %p5196_p1 = pnand %p5195_p0, %p5189_p11 }
  0xf5   :  { %5199 = shalt.err (!%p5196_p1)
}
  0xf6   :  { %323 = dma.hbm_to_vmem [thread:$0]  %s5852_s5, 1024, %s318_s4, [#allocation32], %s5703_s2, %s5703_s2, %s5704_s7  }
  0xf7   :  { %s5200_s13 = scalar_lea.hbm %s5862_s27, 64 }
  0xf8   :  { %p5201_p2 = scmp.ne.s32.totalorder %s5862_s27, %s5200_s13  ;;  %p5204_p3 = scmp.lt.u32.totalorder %s5200_s13, %s5862_s27 }
  0xfa   :  { %p5206_p4 = pnand %p5204_p3, %p5201_p2 }
  0xfc   :  { %5209 = shalt.err (!%p5206_p4)
}
  0xfd   :  { %s5210_s24 = scalar_lea.vmem %s341_s11, 64  ;;  %p5215_p6 = scmp.lt.s32.totalorder %s341_s11, %s341_s11 }
  0xfe   :  { %p5211_p5 = scmp.ne.s32.totalorder %s341_s11, %s5210_s24  ;;  %p5216_p7 = scmp.lt.s32.totalorder %s5210_s24, %s5210_s24 }
 0x100   :  { %p5217_p8 = por %p5216_p7, %p5215_p6 }
 0x102   :  { %p5218_p9 = pnand %p5217_p8, %p5211_p5 }
 0x104   :  { %5221 = shalt.err (!%p5218_p9)
}
 0x105   :  { %343 = dma.hbm_to_vmem [thread:$0]  %s5862_s27, 64, %s341_s11, [#allocation35]  }
 0x106   :  { %s5713_s21 = smov [#allocation37]   ;;  %s5222_s5 = scalar_lea.hbm %s5872_s12, 16 }
 0x107   :  { %s360_s18 = sshll.u32 %s5713_s21, 4  ;;  %p5223_p10 = scmp.ne.s32.totalorder %s5872_s12, %s5222_s5  ;;  %s361_s18 = int_to_ptr.vmem [resolvable:$true] %s360_s18 }
 0x108   :  { %p5226_p11 = scmp.lt.u32.totalorder %s5222_s5, %s5872_s12 }
 0x10a   :  { %p5228_p12 = pnand %p5226_p11, %p5223_p10 }
 0x10c   :  { %5231 = shalt.err (!%p5228_p12)
}
 0x10d   :  { %s5232_s0 = scalar_lea.vmem %s361_s18, 16  ;;  %s5236_s6 = scalar_lea.vmem %s361_s18, 32 }
 0x10e   :  { %p5233_p13 = scmp.ne.s32.totalorder %s361_s18, %s5232_s0  ;;  %p5237_p0 = scmp.lt.s32.totalorder %s361_s18, %s361_s18 }
 0x10f   :  { %p5238_p1 = scmp.lt.s32.totalorder %s5236_s6, %s5232_s0 }
 0x111   :  { %p5239_p2 = por %p5238_p1, %p5237_p0 }
 0x113   :  { %p5240_p3 = pnand %p5239_p2, %p5233_p13 }
 0x115   :  { %5243 = shalt.err (!%p5240_p3)
}
 0x116   :  { %363 = dma.hbm_to_vmem [thread:$0]  %s5872_s12, 16, %s361_s18, [#allocation38]  }
 0x117   :  { %s5714_s27 = smov [#allocation40]   ;;  %s5715_s23 = smov [#allocation3]  }
 0x118   :  { %s395_s22 = sshll.u32 %s5714_s27, 4  ;;  %s125_s3 = sshll.u32 %s5715_s23, 4  ;;  %s396_s22 = int_to_ptr.vmem [resolvable:$true] %s395_s22  ;;  %s126_s3 = int_to_ptr.vmem [resolvable:$true] %s125_s3 }
 0x119   :  { %s5244_s26 = scalar_lea.hbm %s5917_s25, 4096 }
 0x11a   :  { %p5245_p4 = scmp.ne.s32.totalorder %s5917_s25, %s5244_s26  ;;  %p5248_p5 = scmp.lt.u32.totalorder %s5244_s26, %s5917_s25 }
 0x11c   :  { %p5250_p6 = pnand %p5248_p5, %p5245_p4 }
 0x11e   :  { %5253 = shalt.err (!%p5250_p6)
}
 0x11f   :  { %s5254_s20 = scalar_lea.vmem %s396_s22, 4096  ;;  %p5259_p8 = scmp.lt.s32.totalorder %s396_s22, %s396_s22 }
 0x120   :  { %p5255_p7 = scmp.ne.s32.totalorder %s396_s22, %s5254_s20  ;;  %p5260_p9 = scmp.lt.s32.totalorder %s5254_s20, %s5254_s20 }
 0x122   :  { %p5261_p10 = por %p5260_p9, %p5259_p8 }
 0x124   :  { %p5262_p11 = pnand %p5261_p10, %p5255_p7 }
 0x126   :  { %5265 = shalt.err (!%p5262_p11)
}
 0x127   :  { %s5716_s28 = smov 128   ;;  %s5717_s12 = smov 8  }
 0x128   :  { %401 = dma.hbm_to_vmem [thread:$0]  %s5917_s25, 4096, %s396_s22, [#allocation41], %s5716_s28, %s5716_s28, %s5717_s12  }
 0x129   :  { %s5266_s1 = scalar_lea.hbm %s5752_s9, 128 }
 0x12a   :  { %p5267_p12 = scmp.ne.s32.totalorder %s5752_s9, %s5266_s1  ;;  %p5270_p13 = scmp.lt.u32.totalorder %s5266_s1, %s5752_s9 }
 0x12c   :  { %p5272_p0 = pnand %p5270_p13, %p5267_p12 }
 0x12e   :  { %5275 = shalt.err (!%p5272_p0)
}
 0x12f   :  { %s5276_s14 = scalar_lea.vmem %s126_s3, 128  ;;  %p5281_p2 = scmp.lt.s32.totalorder %s126_s3, %s126_s3 }
 0x130   :  { %p5277_p1 = scmp.ne.s32.totalorder %s126_s3, %s5276_s14  ;;  %p5282_p3 = scmp.lt.s32.totalorder %s5276_s14, %s5276_s14 }
 0x132   :  { %p5283_p4 = por %p5282_p3, %p5281_p2 }
 0x134   :  { %p5284_p5 = pnand %p5283_p4, %p5277_p1 }
 0x136   :  { %5287 = shalt.err (!%p5284_p5)
}
 0x137   :  { %131 = dma.hbm_to_vmem [thread:$0]  %s5752_s9, 128, %s126_s3, [#allocation4], %s5703_s2, %s5703_s2, %s5704_s7  }
 0x138   :  { %s5718_s25 = smov [#allocation9]   ;;  %s5719_s10 = smov [#allocation12]  }
 0x139   :  { %s156_s4 = sshll.u32 %s5718_s25, 4  ;;  %s175_s11 = sshll.u32 %s5719_s10, 4  ;;  %s157_s4 = int_to_ptr.vmem [resolvable:$true] %s156_s4  ;;  %s176_s11 = int_to_ptr.vmem [resolvable:$true] %s175_s11 }
 0x13a   :  { %s5288_s15 = scalar_lea.hbm %s5777_s29, 16 }
 0x13b   :  { %p5289_p6 = scmp.ne.s32.totalorder %s5777_s29, %s5288_s15  ;;  %p5292_p7 = scmp.lt.u32.totalorder %s5288_s15, %s5777_s29 }
 0x13d   :  { %p5294_p8 = pnand %p5292_p7, %p5289_p6 }
 0x13f   :  { %5297 = shalt.err (!%p5294_p8)
}
 0x140   :  { %s5298_s16 = scalar_lea.vmem %s157_s4, 16  ;;  %s5302_s13 = scalar_lea.vmem %s157_s4, 32 }
 0x141   :  { %p5299_p9 = scmp.ne.s32.totalorder %s157_s4, %s5298_s16  ;;  %p5303_p10 = scmp.lt.s32.totalorder %s157_s4, %s157_s4 }
 0x142   :  { %p5304_p11 = scmp.lt.s32.totalorder %s5302_s13, %s5298_s16 }
 0x144   :  { %p5305_p12 = por %p5304_p11, %p5303_p10 }
 0x146   :  { %p5306_p13 = pnand %p5305_p12, %p5299_p9 }
 0x148   :  { %5309 = shalt.err (!%p5306_p13)
}
 0x149   :  { %s6656_s9 = sld [smem:[#allocation70_spill]] }
 0x14a   :  { %159 = dma.hbm_to_vmem [thread:$0]  %s5777_s29, 16, %s157_s4, [#allocation8]  }
 0x14f   :  { %s5310_s24 = scalar_lea.hbm %s6656_s9, 1024 }
 0x150   :  { %p5311_p0 = scmp.ne.s32.totalorder %s6656_s9, %s5310_s24  ;;  %p5314_p1 = scmp.lt.u32.totalorder %s5310_s24, %s6656_s9 }
 0x152   :  { %p5316_p2 = pnand %p5314_p1, %p5311_p0 }
 0x154   :  { %5319 = shalt.err (!%p5316_p2)
}
 0x155   :  { %s5320_s21 = scalar_lea.vmem %s176_s11, 1024  ;;  %p5325_p4 = scmp.lt.s32.totalorder %s176_s11, %s176_s11 }
 0x156   :  { %p5321_p3 = scmp.ne.s32.totalorder %s176_s11, %s5320_s21  ;;  %p5326_p5 = scmp.lt.s32.totalorder %s5320_s21, %s5320_s21 }
 0x158   :  { %p5327_p6 = por %p5326_p5, %p5325_p4 }
 0x15a   :  { %p5328_p7 = pnand %p5327_p6, %p5321_p3 }
 0x15c   :  { %5331 = shalt.err (!%p5328_p7)
}
 0x15d   :  { %s6657_s18 = sld [smem:[#allocation71_spill]]  ;;  %s5720_s29 = smov [#allocation15]  }
 0x15e   :  { %181 = dma.hbm_to_vmem [thread:$0]  %s6656_s9, 1024, %s176_s11, [#allocation11], %s5703_s2, %s5703_s2, %s5704_s7  }
 0x15f   :  { %s197_s5 = sshll.u32 %s5720_s29, 4  ;;  %s5721_s0 = smov [#allocation18]   ;;  %s198_s5 = int_to_ptr.vmem [resolvable:$true] %s197_s5 }
 0x160   :  { %s220_s6 = sshll.u32 %s5721_s0, 4  ;;  %s221_s6 = int_to_ptr.vmem [resolvable:$true] %s220_s6 }
 0x163   :  { %s5332_s27 = scalar_lea.hbm %s6657_s18, 1024 }
 0x164   :  { %p5333_p8 = scmp.ne.s32.totalorder %s6657_s18, %s5332_s27  ;;  %p5336_p9 = scmp.lt.u32.totalorder %s5332_s27, %s6657_s18 }
 0x166   :  { %p5338_p10 = pnand %p5336_p9, %p5333_p8 }
 0x168   :  { %5341 = shalt.err (!%p5338_p10)
}
 0x169   :  { %s5342_s22 = scalar_lea.vmem %s198_s5, 1024  ;;  %p5347_p12 = scmp.lt.s32.totalorder %s198_s5, %s198_s5 }
 0x16a   :  { %p5343_p11 = scmp.ne.s32.totalorder %s198_s5, %s5342_s22  ;;  %p5348_p13 = scmp.lt.s32.totalorder %s5342_s22, %s5342_s22 }
 0x16c   :  { %p5349_p0 = por %p5348_p13, %p5347_p12 }
 0x16e   :  { %p5350_p1 = pnand %p5349_p0, %p5343_p11 }
 0x170   :  { %5353 = shalt.err (!%p5350_p1)
}
 0x171   :  { %s6658_s23 = sld [smem:[#allocation72_spill]] }
 0x172   :  { %203 = dma.hbm_to_vmem [thread:$0]  %s6657_s18, 1024, %s198_s5, [#allocation14], %s5703_s2, %s5703_s2, %s5704_s7  }
 0x177   :  { %s5354_s3 = scalar_lea.hbm %s6658_s23, 16 }
 0x178   :  { %p5355_p2 = scmp.ne.s32.totalorder %s6658_s23, %s5354_s3  ;;  %p5358_p3 = scmp.lt.u32.totalorder %s5354_s3, %s6658_s23 }
 0x17a   :  { %p5360_p4 = pnand %p5358_p3, %p5355_p2 }
 0x17c   :  { %5363 = shalt.err (!%p5360_p4)
}
 0x17d   :  { %s5364_s26 = scalar_lea.vmem %s221_s6, 16  ;;  %s5368_s20 = scalar_lea.vmem %s221_s6, 32 }
 0x17e   :  { %p5365_p5 = scmp.ne.s32.totalorder %s221_s6, %s5364_s26  ;;  %p5369_p6 = scmp.lt.s32.totalorder %s221_s6, %s221_s6 }
 0x17f   :  { %p5370_p7 = scmp.lt.s32.totalorder %s5368_s20, %s5364_s26 }
 0x181   :  { %p5371_p8 = por %p5370_p7, %p5369_p6 }
 0x183   :  { %p5372_p9 = pnand %p5371_p8, %p5365_p5 }
 0x185   :  { %5375 = shalt.err (!%p5372_p9)
}
 0x186   :  { %s6659_s1 = sld [smem:[#allocation73_spill]]  ;;  %s5722_s14 = smov [#allocation21]  }
 0x187   :  { %223 = dma.hbm_to_vmem [thread:$0]  %s6658_s23, 16, %s221_s6, [#allocation17]  }
 0x188   :  { %s242_s25 = sshll.u32 %s5722_s14, 4  ;;  %s5723_s4 = smov [#allocation24]   ;;  %s243_s25 = int_to_ptr.vmem [resolvable:$true] %s242_s25 }
 0x189   :  { %s261_s10 = sshll.u32 %s5723_s4, 4  ;;  %s262_s10 = int_to_ptr.vmem [resolvable:$true] %s261_s10 }
 0x18c   :  { %s5376_s11 = scalar_lea.hbm %s6659_s1, 16 }
 0x18d   :  { %p5377_p10 = scmp.ne.s32.totalorder %s6659_s1, %s5376_s11  ;;  %p5380_p11 = scmp.lt.u32.totalorder %s5376_s11, %s6659_s1 }
 0x18f   :  { %p5382_p12 = pnand %p5380_p11, %p5377_p10 }
 0x191   :  { %5385 = shalt.err (!%p5382_p12)
}
 0x192   :  { %s5386_s15 = scalar_lea.vmem %s243_s25, 16  ;;  %s5390_s16 = scalar_lea.vmem %s243_s25, 32 }
 0x193   :  { %p5387_p13 = scmp.ne.s32.totalorder %s243_s25, %s5386_s15  ;;  %p5391_p0 = scmp.lt.s32.totalorder %s243_s25, %s243_s25 }
 0x194   :  { %p5392_p1 = scmp.lt.s32.totalorder %s5390_s16, %s5386_s15 }
 0x196   :  { %p5393_p2 = por %p5392_p1, %p5391_p0 }
 0x198   :  { %p5394_p3 = pnand %p5393_p2, %p5387_p13 }
 0x19a   :  { %5397 = shalt.err (!%p5394_p3)
}
 0x19b   :  { %s6660_s13 = sld [smem:[#allocation74_spill]] }
 0x19c   :  { %245 = dma.hbm_to_vmem [thread:$0]  %s6659_s1, 16, %s243_s25, [#allocation20]  }
 0x1a1   :  { %s5398_s9 = scalar_lea.hbm %s6660_s13, 1024 }
 0x1a2   :  { %p5399_p4 = scmp.ne.s32.totalorder %s6660_s13, %s5398_s9  ;;  %p5402_p5 = scmp.lt.u32.totalorder %s5398_s9, %s6660_s13 }
 0x1a4   :  { %p5404_p6 = pnand %p5402_p5, %p5399_p4 }
 0x1a6   :  { %5407 = shalt.err (!%p5404_p6)
}
 0x1a7   :  { %s5408_s24 = scalar_lea.vmem %s262_s10, 1024  ;;  %p5413_p8 = scmp.lt.s32.totalorder %s262_s10, %s262_s10 }
 0x1a8   :  { %p5409_p7 = scmp.ne.s32.totalorder %s262_s10, %s5408_s24  ;;  %p5414_p9 = scmp.lt.s32.totalorder %s5408_s24, %s5408_s24 }
 0x1aa   :  { %p5415_p10 = por %p5414_p9, %p5413_p8 }
 0x1ac   :  { %p5416_p11 = pnand %p5415_p10, %p5409_p7 }
 0x1ae   :  { %5419 = shalt.err (!%p5416_p11)
}
 0x1af   :  { %s6661_s21 = sld [smem:[#allocation75_spill]]  ;;  %s5724_s18 = smov [#allocation27]  }
 0x1b0   :  { %267 = dma.hbm_to_vmem [thread:$0]  %s6660_s13, 1024, %s262_s10, [#allocation23], %s5703_s2, %s5703_s2, %s5704_s7  }
 0x1b1   :  { %s285_s29 = sshll.u32 %s5724_s18, 4  ;;  %s5725_s5 = smov [#allocation30]   ;;  %s286_s29 = int_to_ptr.vmem [resolvable:$true] %s285_s29 }
 0x1b2   :  { %s308_s0 = sshll.u32 %s5725_s5, 4  ;;  %s309_s0 = int_to_ptr.vmem [resolvable:$true] %s308_s0 }
 0x1b5   :  { %s5420_s6 = scalar_lea.hbm %s6661_s21, 1024 }
 0x1b6   :  { %p5421_p12 = scmp.ne.s32.totalorder %s6661_s21, %s5420_s6  ;;  %p5424_p13 = scmp.lt.u32.totalorder %s5420_s6, %s6661_s21 }
 0x1b8   :  { %p5426_p0 = pnand %p5424_p13, %p5421_p12 }
 0x1ba   :  { %5429 = shalt.err (!%p5426_p0)
}
 0x1bb   :  { %s5430_s27 = scalar_lea.vmem %s286_s29, 1024  ;;  %p5435_p2 = scmp.lt.s32.totalorder %s286_s29, %s286_s29 }
 0x1bc   :  { %p5431_p1 = scmp.ne.s32.totalorder %s286_s29, %s5430_s27  ;;  %p5436_p3 = scmp.lt.s32.totalorder %s5430_s27, %s5430_s27 }
 0x1be   :  { %p5437_p4 = por %p5436_p3, %p5435_p2 }
 0x1c0   :  { %p5438_p5 = pnand %p5437_p4, %p5431_p1 }
 0x1c2   :  { %5441 = shalt.err (!%p5438_p5)
}
 0x1c3   :  { %s6662_s22 = sld [smem:[#allocation76_spill]] }
 0x1c4   :  { %291 = dma.hbm_to_vmem [thread:$0]  %s6661_s21, 1024, %s286_s29, [#allocation26], %s5703_s2, %s5703_s2, %s5704_s7  }
 0x1c9   :  { %s5442_s23 = scalar_lea.hbm %s6662_s22, 16 }
 0x1ca   :  { %p5443_p6 = scmp.ne.s32.totalorder %s6662_s22, %s5442_s23  ;;  %p5446_p7 = scmp.lt.u32.totalorder %s5442_s23, %s6662_s22 }
 0x1cc   :  { %p5448_p8 = pnand %p5446_p7, %p5443_p6 }
 0x1ce   :  { %5451 = shalt.err (!%p5448_p8)
}
 0x1cf   :  { %s5452_s3 = scalar_lea.vmem %s309_s0, 16  ;;  %s5456_s26 = scalar_lea.vmem %s309_s0, 32 }
 0x1d0   :  { %p5453_p9 = scmp.ne.s32.totalorder %s309_s0, %s5452_s3  ;;  %p5457_p10 = scmp.lt.s32.totalorder %s309_s0, %s309_s0 }
 0x1d1   :  { %p5458_p11 = scmp.lt.s32.totalorder %s5456_s26, %s5452_s3 }
 0x1d3   :  { %p5459_p12 = por %p5458_p11, %p5457_p10 }
 0x1d5   :  { %p5460_p13 = pnand %p5459_p12, %p5453_p9 }
 0x1d7   :  { %5463 = shalt.err (!%p5460_p13)
}
 0x1d8   :  { %s6663_s20 = sld [smem:[#allocation77_spill]]  ;;  %s5726_s1 = smov [#allocation33]  }
 0x1d9   :  { %311 = dma.hbm_to_vmem [thread:$0]  %s6662_s22, 16, %s309_s0, [#allocation29]  }
 0x1da   :  { %s330_s14 = sshll.u32 %s5726_s1, 4  ;;  %s5727_s25 = smov [#allocation36]   ;;  %s331_s14 = int_to_ptr.vmem [resolvable:$true] %s330_s14 }
 0x1db   :  { %s350_s4 = sshll.u32 %s5727_s25, 4  ;;  %s351_s4 = int_to_ptr.vmem [resolvable:$true] %s350_s4 }
 0x1de   :  { %s5464_s10 = scalar_lea.hbm %s6663_s20, 16 }
 0x1df   :  { %p5465_p0 = scmp.ne.s32.totalorder %s6663_s20, %s5464_s10  ;;  %p5468_p1 = scmp.lt.u32.totalorder %s5464_s10, %s6663_s20 }
 0x1e1   :  { %p5470_p2 = pnand %p5468_p1, %p5465_p0 }
 0x1e3   :  { %5473 = shalt.err (!%p5470_p2)
}
 0x1e4   :  { %s5474_s11 = scalar_lea.vmem %s331_s14, 16  ;;  %s5478_s15 = scalar_lea.vmem %s331_s14, 32 }
 0x1e5   :  { %p5475_p3 = scmp.ne.s32.totalorder %s331_s14, %s5474_s11  ;;  %p5479_p4 = scmp.lt.s32.totalorder %s331_s14, %s331_s14 }
 0x1e6   :  { %p5480_p5 = scmp.lt.s32.totalorder %s5478_s15, %s5474_s11 }
 0x1e8   :  { %p5481_p6 = por %p5480_p5, %p5479_p4 }
 0x1ea   :  { %p5482_p7 = pnand %p5481_p6, %p5475_p3 }
 0x1ec   :  { %5485 = shalt.err (!%p5482_p7)
}
 0x1ed   :  { %s6664_s16 = sld [smem:[#allocation78_spill]] }
 0x1ee   :  { %333 = dma.hbm_to_vmem [thread:$0]  %s6663_s20, 16, %s331_s14, [#allocation32]  }
 0x1f3   :  { %s5486_s13 = scalar_lea.hbm %s6664_s16, 16 }
 0x1f4   :  { %p5487_p8 = scmp.ne.s32.totalorder %s6664_s16, %s5486_s13  ;;  %p5490_p9 = scmp.lt.u32.totalorder %s5486_s13, %s6664_s16 }
 0x1f6   :  { %p5492_p10 = pnand %p5490_p9, %p5487_p8 }
 0x1f8   :  { %5495 = shalt.err (!%p5492_p10)
}
 0x1f9   :  { %s5496_s9 = scalar_lea.vmem %s351_s4, 16  ;;  %s5500_s24 = scalar_lea.vmem %s351_s4, 32 }
 0x1fa   :  { %p5497_p11 = scmp.ne.s32.totalorder %s351_s4, %s5496_s9  ;;  %p5501_p12 = scmp.lt.s32.totalorder %s351_s4, %s351_s4 }
 0x1fb   :  { %p5502_p13 = scmp.lt.s32.totalorder %s5500_s24, %s5496_s9 }
 0x1fd   :  { %p5503_p0 = por %p5502_p13, %p5501_p12 }
 0x1ff   :  { %p5504_p1 = pnand %p5503_p0, %p5497_p11 }
 0x201   :  { %5507 = shalt.err (!%p5504_p1)
}
 0x202   :  { %s6665_s21 = sld [smem:[#allocation83_spill]]  ;;  %s5728_s18 = smov [#allocation39]  }
 0x203   :  { %353 = dma.hbm_to_vmem [thread:$0]  %s6664_s16, 16, %s351_s4, [#allocation35]  }
 0x204   :  { %s377_s29 = sshll.u32 %s5728_s18, 4  ;;  %s5729_s5 = smov [#allocation42]   ;;  %s378_s29 = int_to_ptr.vmem [resolvable:$true] %s377_s29 }
 0x205   :  { %s413_s0 = sshll.u32 %s5729_s5, 4  ;;  %s414_s0 = int_to_ptr.vmem [resolvable:$true] %s413_s0 }
 0x208   :  { %s5508_s6 = scalar_lea.hbm %s6665_s21, 4096 }
 0x209   :  { %p5509_p2 = scmp.ne.s32.totalorder %s6665_s21, %s5508_s6  ;;  %p5512_p3 = scmp.lt.u32.totalorder %s5508_s6, %s6665_s21 }
 0x20b   :  { %p5514_p4 = pnand %p5512_p3, %p5509_p2 }
 0x20d   :  { %5517 = shalt.err (!%p5514_p4)
}
 0x20e   :  { %s5518_s27 = scalar_lea.vmem %s378_s29, 4096  ;;  %p5523_p6 = scmp.lt.s32.totalorder %s378_s29, %s378_s29 }
 0x20f   :  { %p5519_p5 = scmp.ne.s32.totalorder %s378_s29, %s5518_s27  ;;  %p5524_p7 = scmp.lt.s32.totalorder %s5518_s27, %s5518_s27 }
 0x211   :  { %p5525_p8 = por %p5524_p7, %p5523_p6 }
 0x213   :  { %p5526_p9 = pnand %p5525_p8, %p5519_p5 }
 0x215   :  { %5529 = shalt.err (!%p5526_p9)
}
 0x216   :  { %s6666_s22 = sld [smem:[#allocation90_spill]] }
 0x217   :  { %383 = dma.hbm_to_vmem [thread:$0]  %s6665_s21, 4096, %s378_s29, [#allocation38], %s5716_s28, %s5716_s28, %s5717_s12  }
 0x21c   :  { %s5530_s23 = scalar_lea.hbm %s6666_s22, 4096 }
 0x21d   :  { %p5531_p10 = scmp.ne.s32.totalorder %s6666_s22, %s5530_s23  ;;  %p5534_p11 = scmp.lt.u32.totalorder %s5530_s23, %s6666_s22 }
 0x21f   :  { %p5536_p12 = pnand %p5534_p11, %p5531_p10 }
 0x221   :  { %5539 = shalt.err (!%p5536_p12)
}
 0x222   :  { %s5540_s3 = scalar_lea.vmem %s414_s0, 4096  ;;  %p5545_p0 = scmp.lt.s32.totalorder %s414_s0, %s414_s0 }
 0x223   :  { %p5541_p13 = scmp.ne.s32.totalorder %s414_s0, %s5540_s3  ;;  %p5546_p1 = scmp.lt.s32.totalorder %s5540_s3, %s5540_s3 }
 0x225   :  { %p5547_p2 = por %p5546_p1, %p5545_p0 }
 0x227   :  { %p5548_p3 = pnand %p5547_p2, %p5541_p13 }
 0x229   :  { %5551 = shalt.err (!%p5548_p3)
}
 0x22a   :  { %s6667_s26 = sld [smem:[#allocation94_spill]]  ;;  %s5730_s20 = smov [#allocation43]  }
 0x22b   :  { %419 = dma.hbm_to_vmem [thread:$0]  %s6666_s22, 4096, %s414_s0, [#allocation41], %s5716_s28, %s5716_s28, %s5717_s12  }
 0x22c   :  { %s431_s1 = sshll.u32 %s5730_s20, 4  ;;  %s446_s14 = sshll.u32 %s5967_s17, 4  ;;  %s432_s1 = int_to_ptr.vmem [resolvable:$true] %s431_s1  ;;  %s447_s14 = int_to_ptr.vmem [resolvable:$true] %s446_s14 }
 0x230   :  { %s5552_s25 = scalar_lea.hbm %s6667_s26, 2048 }
 0x231   :  { %p5553_p4 = scmp.ne.s32.totalorder %s6667_s26, %s5552_s25  ;;  %p5556_p5 = scmp.lt.u32.totalorder %s5552_s25, %s6667_s26 }
 0x233   :  { %p5558_p6 = pnand %p5556_p5, %p5553_p4 }
 0x235   :  { %5561 = shalt.err (!%p5558_p6)
}
 0x236   :  { %s5562_s4 = scalar_lea.vmem %s432_s1, 2048  ;;  %p5567_p8 = scmp.lt.s32.totalorder %s432_s1, %s432_s1 }
 0x237   :  { %p5563_p7 = scmp.ne.s32.totalorder %s432_s1, %s5562_s4  ;;  %p5568_p9 = scmp.lt.s32.totalorder %s5562_s4, %s5562_s4 }
 0x239   :  { %p5569_p10 = por %p5568_p9, %p5567_p8 }
 0x23b   :  { %p5570_p11 = pnand %p5569_p10, %p5563_p7 }
 0x23d   :  { %5573 = shalt.err (!%p5570_p11)
}
 0x23e   :  { %437 = dma.hbm_to_vmem [thread:$0]  %s6667_s26, 2048, %s432_s1, [#allocation44], %s5703_s2, %s5703_s2, %s5704_s7  }
 0x23f   :  { %s458_s17 = sshll.u32 %s5977_s8, 4  ;;  %s5574_s28 = scalar_lea.vmem %s447_s14, 16  ;;  %s459_s17 = int_to_ptr.vmem [resolvable:$true] %s458_s17 }
 0x240   :  { %p5575_p12 = scmp.ne.s32.totalorder %s447_s14, %s5574_s28  ;;  %p5579_p13 = scmp.lt.s32.totalorder %s447_s14, %s447_s14 }
 0x241   :  { %p5580_p0 = scmp.lt.s32.totalorder %s5574_s28, %s5574_s28 }
 0x243   :  { %p5581_p1 = por %p5580_p0, %p5579_p13 }
 0x245   :  { %p5582_p2 = pnand %p5581_p1, %p5575_p12 }
 0x247   :  { %5585 = shalt.err (!%p5582_p2)
}
 0x248   :  { %s5731_s12 = smov [#allocation45]   ;;  %s5586_s10 = scalar_lea.vmem %s459_s17, 16 }
 0x249   :  { %449 = dma.vmem_to_smem %s447_s14, 16, %s5731_s12, [#allocation6]  }
 0x24a   :  { %p5587_p3 = scmp.ne.s32.totalorder %s459_s17, %s5586_s10  ;;  %p5591_p4 = scmp.lt.s32.totalorder %s459_s17, %s459_s17 }
 0x24b   :  { %p5592_p5 = scmp.lt.s32.totalorder %s5586_s10, %s5586_s10 }
 0x24d   :  { %p5593_p6 = por %p5592_p5, %p5591_p4 }
 0x24f   :  { %p5594_p7 = pnand %p5593_p6, %p5587_p3 }
 0x251   :  { %5597 = shalt.err (!%p5594_p7)
}
 0x252   :  { %s5732_s11 = smov [#allocation46]  }
 0x253   :  { %461 = dma.vmem_to_smem %s459_s17, 16, %s5732_s11, [#allocation47]  }
 0x254   :  { %5620 = dma.done.wait [#allocation4], 128  }
 0x255   :  { %5621 = vsyncadd [#allocation4], 4294967168 }
 0x256   :  { %5622 = dma.done.wait [#allocation8], 144  }
 0x257   :  { %5623 = vsyncadd [#allocation8], 4294967152 }
 0x258   :  { %5624 = dma.done.wait [#allocation11], 1088  }
 0x259   :  { %5625 = vsyncadd [#allocation11], 4294966208 }
 0x25a   :  { %5626 = dma.done.wait [#allocation14], 1040  }
 0x25b   :  { %5627 = vsyncadd [#allocation14], 4294966256 }
 0x25c   :  { %5628 = dma.done.wait [#allocation17], 32  }
 0x25d   :  { %5629 = vsyncadd [#allocation17], 4294967264 }
 0x25e   :  { %5630 = dma.done.wait [#allocation20], 1040  }
 0x25f   :  { %5631 = vsyncadd [#allocation20], 4294966256 }
 0x260   :  { %5632 = dma.done.wait [#allocation23], 1040  }
 0x261   :  { %5633 = vsyncadd [#allocation23], 4294966256 }
 0x262   :  { %5634 = dma.done.wait [#allocation26], 2048  }
 0x263   :  { %5635 = vsyncadd [#allocation26], 4294965248 }
 0x264   :  { %5636 = dma.done.wait [#allocation29], 32  }
 0x265   :  { %5637 = vsyncadd [#allocation29], 4294967264 }
 0x266   :  { %5638 = dma.done.wait [#allocation32], 1040  }
 0x267   :  { %5639 = vsyncadd [#allocation32], 4294966256 }
 0x268   :  { %5640 = dma.done.wait [#allocation35], 80  }
 0x269   :  { %5641 = vsyncadd [#allocation35], 4294967216 }
 0x26a   :  { %5642 = dma.done.wait [#allocation38], 4112  }
 0x26b   :  { %5643 = vsyncadd [#allocation38], 4294963184 }
 0x26c   :  { %5644 = dma.done.wait [#allocation41], 8192  }
 0x26d   :  { %5645 = vsyncadd [#allocation41], 4294959104 }
 0x26e   :  { %5646 = dma.done.wait [#allocation44], 2048  }
 0x26f   :  { %5647 = vsyncadd [#allocation44], 4294965248 }
 0x270   :  { %5648 = dma.done.wait [#allocation6], 16  }
 0x271   :  { %5649 = vsyncadd [#allocation6], 4294967280 }
 0x272   :  { %5650 = dma.done.wait [#allocation47], 16  }
 0x273   :  { %5651 = vsyncadd [#allocation47], 4294967280 }
 0x274   :  { %546 = sfence }
 0x275   :  { %v4701_v0 = vld [vmem:[#allocation12] sm:$0xff]   ;;  %v5733_v1 = vmov 0.0   ;;  %v4702_v2 = vld [vmem:[#allocation12 + $0x8] sm:$0xff]   ;;  %vm5734_vm0 = vmmov 0   ;;  %v4703_v3 = vld [vmem:[#allocation12 + $0x10] sm:$0xff]   ;;  %s6668_s8 = sld [smem:[#allocation66_spill]] }
 0x276   :  { %4345 = vmatprep.subr.bf16.mxu0 %v5733_v1  ;;  %4365 = vmatprep.subr.bf16.mxu1 %v5733_v1  ;;  %v4709_v4 = vld [vmem:[#allocation15] sm:$0xff]   ;;  %v4704_v5 = vld [vmem:[#allocation12 + $0x18] sm:$0xff]   ;;  %v4710_v6 = vld [vmem:[#allocation15 + $0x8] sm:$0xff]   ;;  %s661_s2 = sld [smem:[#allocation45]]  ;;  %s4015_s7 = sld [smem:[#allocation45 + $0x1]]  ;;  %vm1176_vm3 = vcmask 1043456  }
 0x277   :  { %4346 = vmatpush3.bf16.msra.mxu0 %v4701_v0  ;;  %4361 = vmatprep.mubr.msk.bf16.mxu0 %vm5734_vm0, %v5733_v1  ;;  %v4705_v7 = vld [vmem:[#allocation12 + $0x20] sm:$0xff]   ;;  %v4711_v8 = vld [vmem:[#allocation15 + $0x10] sm:$0xff]   ;;  %v4706_v9 = vld [vmem:[#allocation12 + $0x28] sm:$0xff]   ;;  %s6669_s15 = sld [smem:[#allocation68_spill]]  ;;  %s6670_s16 = sld [smem:[#allocation67_spill]]  ;;  %vm1172_vm4 = vcmask 64512  }
 0x278   :  { %4347 = vmatprep.subr.bf16.mxu0 %v5733_v1  ;;  %4381 = vmatprep.mubr.msk.bf16.mxu1 %vm5734_vm0, %v5733_v1  ;;  %v4712_v10 = vld [vmem:[#allocation15 + $0x18] sm:$0xff]   ;;  %v4707_v11 = vld [vmem:[#allocation12 + $0x30] sm:$0xff]   ;;  %v4713_v12 = vld [vmem:[#allocation15 + $0x20] sm:$0xff]   ;;  %vm1427_vm5 = vcmask 1045504   ;;  %vm1423_vm6 = vcmask 97280   ;;  %s6671_s13 = sld [smem:[#allocation69_spill]] }
 0x279   :  { %4366 = vmatpush3.bf16.msra.mxu1 %v4709_v4  ;;  %v4708_v13 = vld [vmem:[#allocation12 + $0x38] sm:$0xff]   ;;  %v4714_v14 = vld [vmem:[#allocation15 + $0x28] sm:$0xff]   ;;  %v3996_v18 = vld [vmem:[#allocation13] ss:$0 sm:$0xff]  ;;  %vm1562_vm9 = vcmask 15360   ;;  %vm1564_vm10 = vcmask 11264  }
 0x27a   :  { %4367 = vmatprep.subr.bf16.mxu1 %v5733_v1  ;;  %v4715_v16 = vld [vmem:[#allocation15 + $0x30] sm:$0xff]   ;;  %v4716_v17 = vld [vmem:[#allocation15 + $0x38] sm:$0xff]   ;;  %v4717_v28 = vld [vmem:[#allocation19] sm:$0xff]   ;;  %vm1780_vm11 = vcmask 1041408   ;;  %s1784_s9 = sld [smem:[#allocation46]]  ;;  %s4077_s24 = sld [smem:[#allocation46 + $0x2]] }
 0x27b   :  { %4348 = vmatpush3.bf16.msra.mxu0 %v4702_v2  ;;  %v549_v15 = vld [vmem:[%s6668_s8] sm:$0xf]  ;;  %v4718_v29 = vld [vmem:[#allocation19 + $0x8] sm:$0xff]   ;;  %v4719_v30 = vld [vmem:[#allocation19 + $0x10] sm:$0xff]   ;;  %vm2357_vm12 = vcmask 7168   ;;  %vm2360_vm13 = vcmask 17408  }
 0x27c   :  { %4349 = vmatprep.subr.bf16.mxu0 %v5733_v1  ;;  %v663_v20 = vstv %s661_s2  ;;  %v4720_v31 = vld [vmem:[#allocation19 + $0x18] sm:$0xff]   ;;  %v4721_v32 = vld [vmem:[#allocation19 + $0x20] sm:$0xff]   ;;  %v4722_v33 = vld [vmem:[#allocation19 + $0x28] sm:$0xff]   ;;  %v809_v62 = vstv %s4015_s7  ;;  %vm2381_vm14 = vcmask 1040384   ;;  %s6672_s21 = sld [smem:[#allocation79_spill]]  ;;  %s6673_s18 = sld [smem:[#allocation80_spill]] }
 0x27d   :  { %4368 = vmatpush3.bf16.msra.mxu1 %v4710_v6  ;;  %v4723_v34 = vld [vmem:[#allocation19 + $0x30] sm:$0xff]   ;;  %v4724_v35 = vld [vmem:[#allocation19 + $0x38] sm:$0xff]   ;;  %v4725_v4 = vld [vmem:[#allocation24] sm:$0xff]   ;;  %s6674_s29 = sld [smem:[#allocation81_spill]]  ;;  %s6675_s5 = sld [smem:[#allocation82_spill]] }
 0x27e   :  { %4369 = vmatprep.subr.bf16.mxu1 %v5733_v1  ;;  %v4013_v58 = vld [vmem:[#allocation16] ss:$0 sm:$0xff]  ;;  %v4014_v60 = vld [vmem:[#allocation18] ss:$0 sm:$0xff]  ;;  %v4727_v6 = vld [vmem:[#allocation24 + $0x8] sm:$0xff]   ;;  %s4099_s0 = sld [smem:[#allocation45 + $0x2]] }
 0x27f   :  { %4350 = vmatpush3.bf16.msra.mxu0 %v4703_v3  ;;  %s6676_s6 = sld [smem:[#allocation84_spill]]  ;;  %s6677_s27 = sld [smem:[#allocation85_spill]] }
 0x280   :  { %4351 = vmatprep.subr.bf16.mxu0 %v5733_v1  ;;  %s6678_s22 = sld [smem:[#allocation86_spill]]  ;;  %s4132_s23 = sld [smem:[#allocation45 + $0x3]] }
 0x281   :  { %4370 = vmatpush3.bf16.msra.mxu1 %v4711_v8  ;;  %v4729_v8 = vld [vmem:[#allocation24 + $0x10] sm:$0xff]   ;;  %s6679_s3 = sld [smem:[#allocation87_spill]]  ;;  %s6680_s26 = sld [smem:[#allocation88_spill]] }
 0x282   :  { %4371 = vmatprep.subr.bf16.mxu1 %v5733_v1  ;;  %s6681_s20 = sld [smem:[#allocation89_spill]]  ;;  %s4165_s1 = sld [smem:[#allocation45 + $0x4]] }
 0x283   :  { %4352 = vmatpush3.bf16.msra.mxu0 %v4704_v5  ;;  %v4726_v5 = vld [vmem:[#allocation25] sm:$0xff]   ;;  %s6682_s14 = sld [smem:[#allocation91_spill]]  ;;  %s6683_s25 = sld [smem:[#allocation92_spill]] }
 0x284   :  { %4353 = vmatprep.subr.bf16.mxu0 %v5733_v1  ;;  %s6684_s4 = sld [smem:[#allocation93_spill]]  ;;  %s6685_s28 = sld [smem:[#allocation95_spill]] }
 0x285   :  { %4372 = vmatpush3.bf16.msra.mxu1 %v4712_v10  ;;  %v4731_v10 = vld [vmem:[#allocation24 + $0x18] sm:$0xff]   ;;  %s4198_s17 = sld [smem:[#allocation45 + $0x5]]  ;;  %s5738_s12 = smov [#allocation48]  }
 0x286   :  { %4373 = vmatprep.subr.bf16.mxu1 %v5733_v1  ;;  %s3925_s10 = sshll.u32 %s5738_s12, 4  ;;  %s3926_s10 = int_to_ptr.vmem [resolvable:$true] %s3925_s10 }
 0x287   :  { %4354 = vmatpush3.bf16.msra.mxu0 %v4705_v7  ;;  %v4728_v7 = vld [vmem:[#allocation25 + $0x8] sm:$0xff]   ;;  %s5598_s11 = scalar_lea.vmem %s3926_s10, 128  ;;  %p5603_p9 = scmp.lt.s32.totalorder %s3926_s10, %s3926_s10 }
 0x288   :  { %4355 = vmatprep.subr.bf16.mxu0 %v5733_v1  ;;  %p5599_p8 = scmp.ne.s32.totalorder %s3926_s10, %s5598_s11  ;;  %p5604_p10 = scmp.lt.s32.totalorder %s5598_s11, %s5598_s11 }
 0x289   :  { %4374 = vmatpush3.bf16.msra.mxu1 %v4713_v12  ;;  %v4733_v12 = vld [vmem:[#allocation24 + $0x20] sm:$0xff]  }
 0x28a   :  { %4375 = vmatprep.subr.bf16.mxu1 %v5733_v1  ;;  %p5605_p11 = por %p5604_p10, %p5603_p9 }
 0x28b   :  { %4356 = vmatpush3.bf16.msra.mxu0 %v4706_v9  ;;  %v4730_v9 = vld [vmem:[#allocation25 + $0x10] sm:$0xff]  }
 0x28c   :  { %4357 = vmatprep.subr.bf16.mxu0 %v5733_v1  ;;  %p5606_p12 = pnand %p5605_p11, %p5599_p8 }
 0x28d   :  { %4376 = vmatpush3.bf16.msra.mxu1 %v4714_v14  ;;  %v4735_v14 = vld [vmem:[#allocation24 + $0x28] sm:$0xff]  }
 0x28e   :  { %4377 = vmatprep.subr.bf16.mxu1 %v5733_v1 }
 0x28f   :  { %4358 = vmatpush3.bf16.msra.mxu0 %v4707_v11  ;;  %v4732_v11 = vld [vmem:[#allocation25 + $0x18] sm:$0xff]  }
 0x290   :  { %4359 = vmatprep.subr.bf16.mxu0 %v5733_v1 }
 0x291   :  { %4378 = vmatpush3.bf16.msra.mxu1 %v4715_v16  ;;  %v4737_v16 = vld [vmem:[#allocation24 + $0x30] sm:$0xff]  }
 0x292   :  { %4379 = vmatprep.subr.bf16.mxu1 %v5733_v1 }
 0x293   :  { %4360 = vmatpush3.bf16.msra.mxu0 %v4708_v13  ;;  %v4734_v13 = vld [vmem:[#allocation25 + $0x20] sm:$0xff]  }
 0x294   :  { %4385 = vmatprep.subr.bf16.mxu0 %v5733_v1 }
 0x295   :  { %4380 = vmatpush3.bf16.msra.mxu1 %v4716_v17  ;;  %v4738_v17 = vld [vmem:[#allocation25 + $0x30] sm:$0xff]  }
 0x296   :  { %4362 = vmatmul.mubr.bf16.vlgmr.msra.gmra.mrb[0].mxu0 %v549_v15  ;;  %4405 = vmatprep.subr.bf16.mxu1 %v5733_v1  ;;  %v4736_v15 = vld [vmem:[#allocation25 + $0x28] sm:$0xff]  }
 0x297   :  { %4401 = vmatprep.mubr.msk.bf16.mxu0 %vm5734_vm0, %v5733_v1  ;;  %4386 = vmatpush3.bf16.msra.mxu0 %v4717_v28 }
 0x298   :  { %4387 = vmatprep.subr.bf16.mxu0 %v5733_v1 }
 0x29b   :  { %4388 = vmatpush3.bf16.msra.mxu0 %v4718_v29 }
 0x29c   :  { %4389 = vmatprep.subr.bf16.mxu0 %v5733_v1 }
 0x29f   :  { %4390 = vmatpush3.bf16.msra.mxu0 %v4719_v30 }
 0x2a0   :  { %4391 = vmatprep.subr.bf16.mxu0 %v5733_v1 }
 0x2a3   :  { %4392 = vmatpush3.bf16.msra.mxu0 %v4720_v31 }
 0x2a4   :  { %4393 = vmatprep.subr.bf16.mxu0 %v5733_v1 }
 0x2a7   :  { %4394 = vmatpush3.bf16.msra.mxu0 %v4721_v32 }
 0x2a8   :  { %4395 = vmatprep.subr.bf16.mxu0 %v5733_v1 }
 0x2ab   :  { %4396 = vmatpush3.bf16.msra.mxu0 %v4722_v33 }
 0x2ac   :  { %4397 = vmatprep.subr.bf16.mxu0 %v5733_v1 }
 0x2af   :  { %4398 = vmatpush3.bf16.msra.mxu0 %v4723_v34 }
 0x2b0   :  { %4399 = vmatprep.subr.bf16.mxu0 %v5733_v1 }
 0x2b3   :  { %4400 = vmatpush3.bf16.msra.mxu0 %v4724_v35 }
 0x2b4   :  { %4425 = vmatprep.subr.bf16.mxu0 %v5733_v1 }
 0x369   :  { %v655_v19 = vpop.f32.mrb[0].mxu0 }
 0x36a   :  { %v656_v21 = vadd.f32 %v3996_v18, %v655_v19  ;;  %v4363_v22 = vpop.f32.mrb[1].mxu0  ;;  %v4739_v18 = vld [vmem:[#allocation24 + $0x38] sm:$0xff]  }
 0x36b   :  { %v658_v23 = vpop.f32.mrb[2].mxu0  ;;  %v4740_v19 = vld [vmem:[#allocation25 + $0x38] sm:$0xff]  }
 0x36c   :  { %vm662_vm1 = vcmp.gt.f32.partialorder %v656_v21, 0.0  ;;  %v664_v24 = vmul.f32 %v663_v20, %v656_v21  ;;  %v4364_v25 = vpop.f32.mrb[3].mxu0 }
 0x36e   :  { %v665_v26 = vsel %vm662_vm1, %v656_v21, %v664_v24 }
 0x36f   :  { %v682_v27 = vpack.c.bf16 %v665_v26, %v665_v26 }
 0x371   :  { %4382 = vmatmul.mubr.bf16.vlgmr.msra.gmra.mrb[0].mxu1 %v682_v27 }
 0x372   :  { %4421 = vmatprep.mubr.msk.bf16.mxu1 %vm5734_vm0, %v5733_v1  ;;  %4406 = vmatpush3.bf16.msra.mxu1 %v4725_v4  ;;  %v4748_v4 = vld [vmem:[#allocation27 + $0x28] sm:$0xff]  }
 0x373   :  { %4407 = vmatprep.subr.bf16.mxu1 %v5733_v1 }
 0x376   :  { %4408 = vmatpush3.bf16.msra.mxu1 %v4727_v6  ;;  %v4750_v6 = vld [vmem:[#allocation27 + $0x38] sm:$0xff]  }
 0x377   :  { %4409 = vmatprep.subr.bf16.mxu1 %v5733_v1 }
 0x37a   :  { %4410 = vmatpush3.bf16.msra.mxu1 %v4729_v8 }
 0x37b   :  { %4411 = vmatprep.subr.bf16.mxu1 %v5733_v1 }
 0x37e   :  { %4412 = vmatpush3.bf16.msra.mxu1 %v4731_v10 }
 0x37f   :  { %4413 = vmatprep.subr.bf16.mxu1 %v5733_v1 }
 0x382   :  { %4414 = vmatpush3.bf16.msra.mxu1 %v4733_v12 }
 0x383   :  { %4415 = vmatprep.subr.bf16.mxu1 %v5733_v1 }
 0x386   :  { %4416 = vmatpush3.bf16.msra.mxu1 %v4735_v14 }
 0x387   :  { %4417 = vmatprep.subr.bf16.mxu1 %v5733_v1 }
 0x38a   :  { %4418 = vmatpush3.bf16.msra.mxu1 %v4737_v16  ;;  %v6217_v16 = vld [vmem:[#allocation7] sm:$0x3f]  }
 0x38b   :  { %4419 = vmatprep.subr.bf16.mxu1 %v5733_v1 }
 0x38e   :  { %4420 = vmatpush3.bf16.msra.mxu1 %v4739_v18  ;;  %v6224_v18 = vld [vmem:[#allocation30] ss:$0 sm:$0xff] }
 0x38f   :  { %4445 = vmatprep.subr.bf16.mxu1 %v5733_v1 }
 0x444   :  { %v765_v36 = vpop.f32.mrb[0].mxu1 }
 0x445   :  { %v773_v37 = vrot.slane %v765_v36, 4  ;;  %v4383_v38 = vpop.f32.mrb[1].mxu1 }
 0x446   :  { %v768_v39 = vpop.f32.mrb[2].mxu1 }
 0x447   :  { %v774_v40 = vadd.f32 %v773_v37, %v765_v36  ;;  %v4384_v41 = vpop.f32.mrb[3].mxu1 }
 0x449   :  { %v775_v42 = vrot.slane %v774_v40, 2 }
 0x44b   :  { %v776_v43 = vadd.f32 %v775_v42, %v774_v40  ;;  %v4024_v42 = vld [vmem:[#allocation21] ss:$0 sm:$0xff] }
 0x44d   :  { %v777_v44 = vrot.slane %v776_v43, 1 }
 0x44f   :  { %v778_v45 = vadd.f32 %v777_v44, %v776_v43  ;;  %v4025_v44 = vld [vmem:[#allocation22] ss:$0 sm:$0xff] }
 0x451   :  { %v780_v46 = vmul.f32 0.125, %v778_v45 }
 0x453   :  { %v781_v47 = vsub.f32 %v765_v36, %v780_v46 }
 0x455   :  { %v782_v48 = vmul.f32 %v781_v47, %v781_v47 }
 0x457   :  { %v783_v49 = vrot.slane %v782_v48, 4 }
 0x459   :  { %v784_v50 = vadd.f32 %v783_v49, %v782_v48 }
 0x45b   :  { %v785_v51 = vrot.slane %v784_v50, 2 }
 0x45d   :  { %v786_v52 = vadd.f32 %v785_v51, %v784_v50 }
 0x45f   :  { %v787_v53 = vrot.slane %v786_v52, 1 }
 0x461   :  { %v788_v54 = vadd.f32 %v787_v53, %v786_v52 }
 0x463   :  { %v789_v55 = vmul.f32 0.125, %v788_v54 }
 0x465   :  { %v790_v56 = vadd.f32 1e-05, %v789_v55 }
 0x467   :  { %4946 = vrsqrt.f32 %v790_v56 }
 0x471   :  { %v4947_v57 = vpop.eup %4946 }
 0x472   :  { %v792_v59 = vmul.f32 %v4947_v57, %v781_v47 }
 0x474   :  { %v799_v61 = vmul.f32 %v4013_v58, %v792_v59  ;;  %v4741_v59 = vld [vmem:[%s6669_s15] sm:$0x3f]  }
 0x476   :  { %v806_v63 = vadd.f32 %v4014_v60, %v799_v61  ;;  %v4742_v61 = vld [vmem:[%s6670_s16] sm:$0x3f]  }
 0x478   :  { %vm808_vm2 = vcmp.gt.f32.partialorder %v806_v63, 0.0  ;;  %v810_v0 = vmul.f32 %v809_v62, %v806_v63  ;;  %v4743_v62 = vld [vmem:[#allocation27] sm:$0xff]  }
 0x47a   :  { %v811_v2 = vsel %vm808_vm2, %v806_v63, %v810_v0  ;;  %v4744_v63 = vld [vmem:[#allocation27 + $0x8] sm:$0xff]   ;;  %v4745_v0 = vld [vmem:[#allocation27 + $0x10] sm:$0xff]  }
 0x47b   :  { %v828_v3 = vpack.c.bf16 %v811_v2, %v811_v2  ;;  %v4746_v2 = vld [vmem:[#allocation27 + $0x18] sm:$0xff]  }
 0x47d   :  { %4402 = vmatmul.mubr.bf16.vlgmr.msra.gmra.mrb[4].mxu0 %v828_v3  ;;  %v4747_v3 = vld [vmem:[#allocation27 + $0x20] sm:$0xff]  }
 0x47e   :  { %4441 = vmatprep.mubr.msk.bf16.mxu0 %vm5734_vm0, %v5733_v1  ;;  %4426 = vmatpush3.bf16.msra.mxu0 %v4726_v5  ;;  %v4749_v5 = vld [vmem:[#allocation27 + $0x30] sm:$0xff]  }
 0x47f   :  { %4427 = vmatprep.subr.bf16.mxu0 %v5733_v1 }
 0x482   :  { %4428 = vmatpush3.bf16.msra.mxu0 %v4728_v7  ;;  %v4751_v7 = vld [vmem:[#allocation3] sm:$0x3f]  }
 0x483   :  { %4429 = vmatprep.subr.bf16.mxu0 %v5733_v1 }
 0x486   :  { %4430 = vmatpush3.bf16.msra.mxu0 %v4730_v9 }
 0x487   :  { %4431 = vmatprep.subr.bf16.mxu0 %v5733_v1 }
 0x48a   :  { %4432 = vmatpush3.bf16.msra.mxu0 %v4732_v11 }
 0x48b   :  { %4433 = vmatprep.subr.bf16.mxu0 %v5733_v1 }
 0x48e   :  { %4434 = vmatpush3.bf16.msra.mxu0 %v4734_v13 }
 0x48f   :  { %4435 = vmatprep.subr.bf16.mxu0 %v5733_v1 }
 0x492   :  { %4436 = vmatpush3.bf16.msra.mxu0 %v4736_v15 }
 0x493   :  { %4437 = vmatprep.subr.bf16.mxu0 %v5733_v1 }
 0x496   :  { %4438 = vmatpush3.bf16.msra.mxu0 %v4738_v17 }
 0x497   :  { %4439 = vmatprep.subr.bf16.mxu0 %v5733_v1 }
 0x49a   :  { %4440 = vmatpush3.bf16.msra.mxu0 %v4740_v19  ;;  %v6226_v19 = vld [vmem:[#allocation28] ss:$0 sm:$0xff] }
 0x49b   :  { %4477 = vmatprep.subr.bf16.mxu0 %v5733_v1 }
 0x550   :  { %v911_v20 = vpop.f32.mrb[4].mxu0 }
 0x551   :  { %v919_v21 = vrot.slane %v911_v20, 4  ;;  %v4403_v22 = vpop.f32.mrb[5].mxu0 }
 0x552   :  { %v914_v23 = vpop.f32.mrb[6].mxu0 }
 0x553   :  { %v920_v24 = vadd.f32 %v919_v21, %v911_v20  ;;  %v4404_v25 = vpop.f32.mrb[7].mxu0 }
 0x555   :  { %v921_v26 = vrot.slane %v920_v24, 2 }
 0x557   :  { %v922_v27 = vadd.f32 %v921_v26, %v920_v24 }
 0x559   :  { %v923_v28 = vrot.slane %v922_v27, 1 }
 0x55b   :  { %v924_v29 = vadd.f32 %v923_v28, %v922_v27 }
 0x55d   :  { %v925_v30 = vmul.f32 0.125, %v924_v29 }
 0x55f   :  { %v926_v31 = vsub.f32 %v911_v20, %v925_v30 }
 0x561   :  { %v927_v32 = vmul.f32 %v926_v31, %v926_v31 }
 0x563   :  { %v928_v33 = vrot.slane %v927_v32, 4 }
 0x565   :  { %v929_v34 = vadd.f32 %v928_v33, %v927_v32 }
 0x567   :  { %v930_v35 = vrot.slane %v929_v34, 2 }
 0x569   :  { %v931_v36 = vadd.f32 %v930_v35, %v929_v34  ;;  %v5735_v35 = vmov 0  }
 0x56a   :  { %4696 = vset.pattern.permute.xlu0 %v5735_v35  ;;  %4697 = vset.pattern.permute.xlu1 %v5735_v35 }
 0x56b   :  { %v932_v37 = vrot.slane %v931_v36, 1 }
 0x56d   :  { %v933_v38 = vadd.f32 %v932_v37, %v931_v36 }
 0x56f   :  { %v934_v39 = vmul.f32 0.125, %v933_v38  ;;  %v6253_v38 = vstv %s5972_s19  ;;  %s4073_s19 = sld [smem:[#allocation46 + $0x1]] }
 0x571   :  { %v935_v40 = vadd.f32 1e-05, %v934_v39 }
 0x573   :  { %4948 = vrsqrt.f32 %v935_v40 }
 0x57d   :  { %v4949_v41 = vpop.eup %4948 }
 0x57e   :  { %v937_v43 = vmul.f32 %v4949_v41, %v926_v31 }
 0x580   :  { %v944_v45 = vmul.f32 %v4024_v42, %v937_v43 }
 0x582   :  { %v6182_v46 = vadd.f32 %v4025_v44, %v944_v45 }
 0x584   :  { %v968_v47 = vpack.c.bf16 %v6182_v46, %v6182_v46 }
 0x586   :  { %4422 = vmatmul.mubr.bf16.vlgmr.msra.gmra.mrb[4].mxu1 %v968_v47  ;;  %4442 = vmatmul.mubr.bf16.vlgmr.msra.gmra.mrb[8].mxu0 %v968_v47 }
 0x587   :  { %4447 = vmatprep.mubr.msk.bf16.mxu1 %vm5734_vm0, %v5733_v1  ;;  %4479 = vmatprep.mubr.msk.bf16.mxu0 %vm5734_vm0, %v5733_v1 }
 0x659   :  { %v1051_v48 = vpop.f32.mrb[4].mxu1  ;;  %v1155_v49 = vpop.f32.mrb[8].mxu0 }
 0x65a   :  { %v1166_v50 = vpack.c.bf16 %v1155_v49, %v1155_v49  ;;  %v4423_v51 = vpop.f32.mrb[5].mxu1  ;;  %v4443_v52 = vpop.f32.mrb[9].mxu0  ;;  %v1163_v55 = vpack.c.bf16 %v1051_v48, %v1051_v48  ;;  %v6258_v48 = vld [vmem:[%s6671_s13] sm:$0xf]  ;;  %v6261_v49 = vld [vmem:[%s6671_s13 + $0x4] sm:$0x3] }
 0x65b   :  { %v1054_v53 = vpop.f32.mrb[6].mxu1  ;;  %v1158_v54 = vpop.f32.mrb[10].mxu0  ;;  %v6267_v51 = vunpack.c.l.bf16 %v6261_v49 }
 0x65c   :  { %v1178_v56 = vsel %vm1176_vm3, %v1166_v50, 0  ;;  %v4424_v57 = vpop.f32.mrb[7].mxu1  ;;  %v4444_v58 = vpop.f32.mrb[11].mxu0  ;;  %v1230_v60 = vsel %vm1176_vm3, %v1163_v55, 0  ;;  %v6264_v50 = vunpack.c.l.bf16 %v6258_v48 }
 0x65d   :  { %4446 = vmatpush3.bf16.msra.mxu1 %v1178_v56  ;;  %vm1549_vm8 = vcmp.gt.f32.partialorder %v6267_v51, 0.0 }
 0x65e   :  { %4451 = vmatprep.subr.bf16.mxu1 %v5733_v1  ;;  %vm1548_vm7 = vcmp.gt.f32.partialorder %v6264_v50, 0.0 }
 0x660   :  { %4448 = vmatmul.mubr.msk.bf16.vlgmr.msra.gmra.mrb[8].mxu1 %vm1172_vm4, %v4741_v59 }
 0x661   :  { %4452 = vmatpush3.bf16.msra.mxu1 %v1230_v60  ;;  %4453 = vmatprep.mubr.msk.bf16.mxu1 %vm5734_vm0, %v5733_v1 }
 0x662   :  { %4457 = vmatprep.subr.bf16.mxu1 %v5733_v1 }
 0x66c   :  { %4454 = vmatmul.mubr.msk.bf16.vlgmr.msra.gmra.mrb[8].mxu1 %vm1172_vm4, %v4742_v61 }
 0x66d   :  { %4458 = vmatpush3.bf16.msra.mxu1 %v4743_v62  ;;  %4473 = vmatprep.mubr.msk.bf16.mxu1 %vm5734_vm0, %v5733_v1 }
 0x66e   :  { %4459 = vmatprep.subr.bf16.mxu1 %v5733_v1 }
 0x671   :  { %4460 = vmatpush3.bf16.msra.mxu1 %v4744_v63 }
 0x672   :  { %4461 = vmatprep.subr.bf16.mxu1 %v5733_v1 }
 0x675   :  { %4462 = vmatpush3.bf16.msra.mxu1 %v4745_v0 }
 0x676   :  { %4463 = vmatprep.subr.bf16.mxu1 %v5733_v1 }
 0x679   :  { %4464 = vmatpush3.bf16.msra.mxu1 %v4746_v2 }
 0x67a   :  { %4465 = vmatprep.subr.bf16.mxu1 %v5733_v1 }
 0x67d   :  { %4466 = vmatpush3.bf16.msra.mxu1 %v4747_v3 }
 0x67e   :  { %4467 = vmatprep.subr.bf16.mxu1 %v5733_v1 }
 0x681   :  { %4468 = vmatpush3.bf16.msra.mxu1 %v4748_v4 }
 0x682   :  { %4469 = vmatprep.subr.bf16.mxu1 %v5733_v1 }
 0x685   :  { %4470 = vmatpush3.bf16.msra.mxu1 %v4749_v5 }
 0x686   :  { %4471 = vmatprep.subr.bf16.mxu1 %v5733_v1 }
 0x689   :  { %4472 = vmatpush3.bf16.msra.mxu1 %v4750_v6 }
 0x68a   :  { %4495 = vmatprep.subr.bf16.mxu1 %v5733_v1 }
 0x68c   :  { %4474 = vmatmul.mubr.bf16.vlgmr.msra.gmra.mrb[8].mxu1 %v4751_v7 }
 0x68d   :  { %4511 = vmatprep.mubr.msk.bf16.mxu1 %vm5734_vm0, %v5733_v1 }
 0x75f   :  { %v1379_v8 = vpop.f32.mrb[8].mxu1 }
 0x760   :  { %v4475_v9 = vpop.f32.mrb[9].mxu1  ;;  %v6210_v11 = vmul.f32 0.33333334, %v1379_v8 }
 0x761   :  { %v1382_v10 = vpop.f32.mrb[10].mxu1 }
 0x762   :  { %v6212_v12 = vmul.f32 0.33333334, %v1382_v10  ;;  %v4476_v13 = vpop.f32.mrb[11].mxu1 }
 0x764   :  { %v1417_v14 = vpack.c.bf16 %v6212_v12, %v6210_v11 }
 0x766   :  { %v1429_v15 = vsel %vm1427_vm5, %v1417_v14, 0 }
 0x767   :  { %4478 = vmatpush3.bf16.msra.mxu0 %v1429_v15 }
 0x768   :  { %4483 = vmatprep.subr.bf16.mxu0 %v5733_v1 }
 0x76a   :  { %4480 = vmatmul.mubr.msk.bf16.vlgmr.msra.gmra.mrb[12].mxu0 %vm1423_vm6, %v6217_v16 }
 0x76b   :  { %4485 = vmatprep.mubr.msk.bf16.mxu0 %vm5734_vm0, %v5733_v1 }
 0x83d   :  { %v1465_v17 = vpop.f32.mrb[12].mxu0 }
 0x83e   :  { %v6229_v20 = vadd.f32 %v1465_v17, %v6210_v11  ;;  %v4481_v21 = vpop.f32.mrb[13].mxu0 }
 0x83f   :  { %v1468_v22 = vpop.f32.mrb[14].mxu0 }
 0x840   :  { %v6232_v23 = vadd.f32 %v1468_v22, %v6212_v12  ;;  %v4482_v24 = vpop.f32.mrb[15].mxu0  ;;  %v1493_v25 = vmul.f32 %v6224_v18, %v6229_v20  ;;  %v1480_v26 = vmul.f32 %v6226_v19, %v6229_v20 }
 0x842   :  { %1495 = vadd.xlane.f32.xlu1 %v1493_v25  ;;  %1482 = vadd.xlane.f32.xlu0 %v1480_v26  ;;  %v1494_v27 = vmul.f32 %v6224_v18, %v6232_v23  ;;  %v1481_v28 = vmul.f32 %v6226_v19, %v6232_v23 }
 0x844   :  { %v1497_v29 = vsel %vm1176_vm3, %v1494_v27, 0.0  ;;  %v1484_v30 = vsel %vm1176_vm3, %v1481_v28, 0.0 }
 0x846   :  { %1498 = vadd.xlane.f32.xlu1 %v1497_v29  ;;  %1485 = vadd.xlane.f32.xlu0 %v1484_v30 }
 0x8cf   :  { %v1483_v31 = vpop.xlane.xlu0 %1482  ;;  %v1496_v36 = vpop.xlane.xlu1 %1495 }
 0x8d3   :  { %v1486_v32 = vpop.xlane.xlu0 %1485  ;;  %v1499_v41 = vpop.xlane.xlu1 %1498 }
 0x8d4   :  { %v1500_v33 = vpack.c.bf16 %v1486_v32, %v1483_v31 }
 0x8d6   :  { %v1502_v34 = vsel %vm1427_vm5, %v1500_v33, 0 }
 0x8d7   :  { %4484 = vmatpush3.bf16.msra.mxu0 %v1502_v34 }
 0x8d8   :  { %4489 = vmatprep.subr.bf16.mxu0 %v5733_v1 }
 0x8da   :  { %4486 = vmatmul.mubr.msk.bf16.vlgmr.msra.gmra.mrb[16].mxu0 %vm1423_vm6, %v6217_v16 }
 0x8db   :  { %4491 = vmatprep.mubr.msk.bf16.mxu0 %vm5734_vm0, %v5733_v1 }
 0x9ad   :  { %v1538_v37 = vpop.f32.mrb[16].mxu0 }
 0x9ae   :  { %v1539_v39 = vadd.f32 %v1538_v37, %v1496_v36  ;;  %v4487_v40 = vpop.f32.mrb[17].mxu0 }
 0x9af   :  { %v1541_v42 = vpop.f32.mrb[18].mxu0 }
 0x9b0   :  { %v1546_v43 = vadd.f32 %v6253_v38, %v1539_v39  ;;  %v1542_v44 = vadd.f32 %v1541_v42, %v1499_v41  ;;  %v4488_v45 = vpop.f32.mrb[19].mxu0 }
 0x9b2   :  { %v1547_v47 = vadd.f32 %v6253_v38, %v1542_v44  ;;  %1552 = vperm.xlu0 %4696, %v1546_v43  }
 0x9b4   :  { %1557 = vperm.xlu1 %4697, %v1547_v47  }
 0xa31   :  { %v1553_v52 = vpop.permute.xlu0 %1552 }
 0xa32   :  { %v1560_v53 = vsel %vm1548_vm7, %v1553_v52, -1e+30  ;;  %v6292_v52 = vld [vmem:[#allocation31 + $0x8] sm:$0xff]  }
 0xa33   :  { %v1558_v54 = vpop.permute.xlu1 %1557  ;;  %v1563_v56 = vsel %vm1562_vm9, %v1560_v53, -inf  ;;  %v6296_v53 = vld [vmem:[#allocation31 + $0x10] sm:$0xff]  }
 0xa34   :  { %v1561_v55 = vsel %vm1549_vm8, %v1558_v54, -1e+30  ;;  %v6300_v54 = vld [vmem:[#allocation31 + $0x18] sm:$0xff]  }
 0xa35   :  { %v1565_v57 = vsel %vm1564_vm10, %v1561_v55, -inf  ;;  %v6304_v55 = vld [vmem:[#allocation31 + $0x20] sm:$0xff]  }
 0xa36   :  { %v1566_v58 = vmax.f32 %v1563_v56, %v1565_v57  ;;  %v6308_v56 = vld [vmem:[#allocation31 + $0x28] sm:$0xff]   ;;  %v6312_v57 = vld [vmem:[#allocation31 + $0x30] sm:$0xff]  }
 0xa38   :  { %v1567_v59 = vrot.slane %v1566_v58, 4 }
 0xa3a   :  { %v1568_v60 = vmax.f32 %v1566_v58, %v1567_v59 }
 0xa3c   :  { %v1569_v61 = vrot.slane %v1568_v60, 2 }
 0xa3e   :  { %v1570_v62 = vmax.f32 %v1568_v60, %v1569_v61 }
 0xa40   :  { %v1571_v63 = vrot.slane %v1570_v62, 1 }
 0xa42   :  { %v1572_v0 = vmax.f32 %v1570_v62, %v1571_v63 }
 0xa44   :  { %v1574_v2 = vmul.f32 %v1572_v0, %v6267_v51  ;;  %v1573_v3 = vmul.f32 %v1572_v0, %v6264_v50  ;;  %v1787_v0 = vpack.c.bf16 %v6232_v23, %v6229_v20 }
 0xa46   :  { %v1578_v4 = vsel %vm1564_vm10, %v1574_v2, 0.0  ;;  %v1575_v5 = vsel %vm1562_vm9, %v1573_v3, 0.0  ;;  %v6322_v2 = vld [vmem:[#allocation9] sm:$0x1]  ;;  %v1789_v3 = vsel %vm1427_vm5, %v1787_v0, 0 }
 0xa47   :  { %1579 = vadd.xlane.f32.xlu0 %v1578_v4  ;;  %1576 = vadd.xlane.f32.xlu1 %v1575_v5  ;;  %v6335_v4 = vld [vmem:[#allocation31 + $0x38] sm:$0xff]  }
 0xad4   :  { %v1580_v6 = vpop.xlane.xlu0 %1579  ;;  %v1577_v7 = vpop.xlane.xlu1 %1576 }
 0xad5   :  { %v1581_v8 = vsub.f32 %v1546_v43, %v1577_v7  ;;  %v1582_v9 = vsub.f32 %v1547_v47, %v1580_v6  ;;  %v6289_v47 = vld [vmem:[#allocation31] sm:$0xff]  }
 0xad6   :  { %4496 = vmatpush3.bf16.msra.mxu1 %v6289_v47 }
 0xad7   :  { %v1583_v10 = vmul.f32 1.442695, %v1581_v8  ;;  %v1585_v13 = vmul.f32 1.442695, %v1582_v9  ;;  %4497 = vmatprep.subr.bf16.mxu1 %v5733_v1 }
 0xad9   :  { %4950 = vpow2.f32 %v1583_v10 }
 0xada   :  { %4952 = vpow2.f32 %v1585_v13  ;;  %4498 = vmatpush3.bf16.msra.mxu1 %v6292_v52 }
 0xadb   :  { %4499 = vmatprep.subr.bf16.mxu1 %v5733_v1 }
 0xade   :  { %4500 = vmatpush3.bf16.msra.mxu1 %v6296_v53 }
 0xadf   :  { %4501 = vmatprep.subr.bf16.mxu1 %v5733_v1 }
 0xae2   :  { %4502 = vmatpush3.bf16.msra.mxu1 %v6300_v54 }
 0xae3   :  { %v4951_v14 = vpop.eup %4950  ;;  %4503 = vmatprep.subr.bf16.mxu1 %v5733_v1 }
 0xae4   :  { %1589 = vperm.xlu1 %4697, %v4951_v14   ;;  %v4953_v15 = vpop.eup %4952 }
 0xae6   :  { %4504 = vmatpush3.bf16.msra.mxu1 %v6304_v55 }
 0xae7   :  { %4505 = vmatprep.subr.bf16.mxu1 %v5733_v1 }
 0xae8   :  { %1594 = vperm.xlu1 %4697, %v4953_v15  }
 0xaea   :  { %4506 = vmatpush3.bf16.msra.mxu1 %v6308_v56 }
 0xaeb   :  { %4507 = vmatprep.subr.bf16.mxu1 %v5733_v1 }
 0xaee   :  { %4508 = vmatpush3.bf16.msra.mxu1 %v6312_v57 }
 0xaef   :  { %4509 = vmatprep.subr.bf16.mxu1 %v5733_v1 }
 0xaf2   :  { %4510 = vmatpush3.bf16.msra.mxu1 %v6335_v4 }
 0xaf3   :  { %4553 = vmatprep.subr.bf16.mxu1 %v5733_v1 }
 0xb63   :  { %v1590_v17 = vpop.permute.xlu1 %1589 }
 0xb64   :  { %v1597_v21 = vmul.f32 %v1590_v17, %v6264_v50 }
 0xb66   :  { %v1599_v25 = vsel %vm1562_vm9, %v1597_v21, 0.0 }
 0xb67   :  { %v1595_v22 = vpop.permute.xlu1 %1594 }
 0xb68   :  { %v1598_v24 = vmul.f32 %v1595_v22, %v6267_v51 }
 0xb6a   :  { %v1600_v26 = vsel %vm1564_vm10, %v1598_v24, 0.0 }
 0xb6b   :  { %v1601_v27 = vadd.f32 %v1600_v26, %v1599_v25 }
 0xb6d   :  { %v1602_v28 = vrot.slane %v1601_v27, 4 }
 0xb6f   :  { %v1603_v29 = vadd.f32 %v1602_v28, %v1601_v27 }
 0xb71   :  { %v1604_v30 = vrot.slane %v1603_v29, 2 }
 0xb73   :  { %v1605_v31 = vadd.f32 %v1604_v30, %v1603_v29 }
 0xb75   :  { %v1606_v32 = vrot.slane %v1605_v31, 1 }
 0xb77   :  { %v1607_v33 = vadd.f32 %v1606_v32, %v1605_v31 }
 0xb79   :  { %v1609_v34 = vmul.f32 %v1607_v33, %v6267_v51  ;;  %v1608_v36 = vmul.f32 %v1607_v33, %v6264_v50 }
 0xb7b   :  { %v1613_v37 = vsel %vm1564_vm10, %v1609_v34, 0.0  ;;  %v1610_v39 = vsel %vm1562_vm9, %v1608_v36, 0.0 }
 0xb7c   :  { %1614 = vadd.xlane.f32.xlu0 %v1613_v37  ;;  %1611 = vadd.xlane.f32.xlu1 %v1610_v39 }
 0xc09   :  { %v1612_v40 = vpop.xlane.xlu1 %1611  ;;  %v1615_v41 = vpop.xlane.xlu0 %1614 }
 0xc0a   :  { %4954 = vrcp.f32 %v1612_v40 }
 0xc0b   :  { %4956 = vrcp.f32 %v1615_v41 }
 0xc14   :  { %v4955_v42 = vpop.eup %4954 }
 0xc15   :  { %v1617_v43 = vmul.f32 %v4955_v42, %v4951_v14  ;;  %v4957_v44 = vpop.eup %4956 }
 0xc16   :  { %v1619_v45 = vmul.f32 %v4957_v44, %v4953_v15 }
 0xc17   :  { %1622 = vperm.xlu0 %4696, %v1617_v43  }
 0xc1b   :  { %1627 = vperm.xlu0 %4696, %v1619_v45  }
 0xc96   :  { %v1623_v58 = vpop.permute.xlu0 %1622 }
 0xc97   :  { %v1630_v60 = vmul.f32 %v1623_v58, %v6229_v20 }
 0xc9a   :  { %v1628_v59 = vpop.permute.xlu0 %1627 }
 0xc9b   :  { %v1631_v61 = vmul.f32 %v1628_v59, %v6232_v23 }
 0xc9d   :  { %v1632_v62 = vpack.c.bf16 %v1631_v61, %v1630_v60 }
 0xc9f   :  { %v1637_v63 = vsel %vm1427_vm5, %v1632_v62, 0 }
 0xca0   :  { %4490 = vmatpush3.bf16.msra.mxu0 %v1637_v63 }
 0xca1   :  { %4515 = vmatprep.subr.bf16.mxu0 %v5733_v1 }
 0xca3   :  { %4492 = vmatmul.mubr.msk.bf16.vlgmr.msra.gmra.mrb[20].mxu0 %vm1423_vm6, %v6322_v2 }
 0xca4   :  { %4516 = vmatpush3.bf16.msra.mxu0 %v1789_v3  ;;  %4517 = vmatprep.mubr.msk.bf16.mxu0 %vm5734_vm0, %v5733_v1 }
 0xca5   :  { %4521 = vmatprep.subr.bf16.mxu0 %v5733_v1 }
 0xcab   :  { %4518 = vmatmul.mubr.msk.bf16.vlgmr.msra.gmra.mrb[24].mxu0 %vm1423_vm6, %v6217_v16 }
 0xcac   :  { %4523 = vmatprep.mubr.msk.bf16.mxu0 %vm5734_vm0, %v5733_v1 }
 0xd76   :  { %v1673_v5 = vpop.f32.mrb[20].mxu0 }
 0xd77   :  { %v1679_v6 = vpack.c.bf16 %v1673_v5, %v1673_v5  ;;  %v4493_v7 = vpop.f32.mrb[21].mxu0 }
 0xd78   :  { %v1676_v8 = vpop.f32.mrb[22].mxu0 }
 0xd79   :  { %v4494_v9 = vpop.f32.mrb[23].mxu0  ;;  %4512 = vmatmul.mubr.bf16.vlgmr.msra.gmra.mrb[12].mxu1 %v1679_v6 }
 0xd7a   :  { %4555 = vmatprep.mubr.msk.bf16.mxu1 %vm5734_vm0, %v5733_v1 }
 0xd7e   :  { %v1825_v10 = vpop.f32.mrb[24].mxu0 }
 0xd7f   :  { %v6342_v13 = vadd.f32 %v1825_v10, %v6210_v11  ;;  %v4519_v14 = vpop.f32.mrb[25].mxu0 }
 0xd80   :  { %v1828_v15 = vpop.f32.mrb[26].mxu0 }
 0xd81   :  { %v6345_v17 = vadd.f32 %v1828_v15, %v6212_v12  ;;  %v4520_v21 = vpop.f32.mrb[27].mxu0  ;;  %v1834_v22 = vmul.f32 %v6226_v19, %v6342_v13 }
 0xd83   :  { %1836 = vadd.xlane.f32.xlu0 %v1834_v22  ;;  %v2072_v24 = vpack.c.bf16 %v6345_v17, %v6342_v13  ;;  %v1835_v25 = vmul.f32 %v6226_v19, %v6345_v17  ;;  %v1842_v59 = vmul.f32 %v6224_v18, %v6345_v17 }
 0xd85   :  { %v2074_v26 = vsel %vm1427_vm5, %v2072_v24, 0  ;;  %v1838_v27 = vsel %vm1176_vm3, %v1835_v25, 0.0 }
 0xd86   :  { %4554 = vmatpush3.bf16.msra.mxu1 %v2074_v26  ;;  %1839 = vadd.xlane.f32.xlu1 %v1838_v27 }
 0xd87   :  { %4559 = vmatprep.subr.bf16.mxu1 %v5733_v1 }
 0xd89   :  { %4556 = vmatmul.mubr.msk.bf16.vlgmr.msra.gmra.mrb[16].mxu1 %vm1423_vm6, %v6217_v16 }
 0xd8a   :  { %4561 = vmatprep.mubr.msk.bf16.mxu1 %vm5734_vm0, %v5733_v1 }
 0xe10   :  { %v1837_v28 = vpop.xlane.xlu0 %1836 }
 0xe13   :  { %v1840_v29 = vpop.xlane.xlu1 %1839 }
 0xe14   :  { %v1848_v30 = vpack.c.bf16 %v1840_v29, %v1837_v28 }
 0xe16   :  { %v1850_v31 = vsel %vm1427_vm5, %v1848_v30, 0 }
 0xe17   :  { %4522 = vmatpush3.bf16.msra.mxu0 %v1850_v31 }
 0xe18   :  { %4527 = vmatprep.subr.bf16.mxu0 %v5733_v1 }
 0xe1a   :  { %4524 = vmatmul.mubr.msk.bf16.vlgmr.msra.gmra.mrb[28].mxu0 %vm1423_vm6, %v6217_v16 }
 0xe1b   :  { %4529 = vmatprep.mubr.msk.bf16.mxu0 %vm5734_vm0, %v5733_v1 }
 0xe4c   :  { %v6366_v32 = vpop.f32.mrb[12].mxu1 }
 0xe4d   :  { %v4513_v33 = vpop.f32.mrb[13].mxu1 }
 0xe4e   :  { %v1771_v34 = vpop.f32.mrb[14].mxu1 }
 0xe4f   :  { %v4514_v36 = vpop.f32.mrb[15].mxu1 }
 0xe5c   :  { %v2110_v37 = vpop.f32.mrb[16].mxu1 }
 0xe5d   :  { %v6369_v39 = vadd.f32 %v2110_v37, %v6210_v11  ;;  %v4557_v40 = vpop.f32.mrb[17].mxu1  ;;  %v1841_v11 = vmul.f32 %v6224_v18, %v6342_v13 }
 0xe5e   :  { %v2113_v41 = vpop.f32.mrb[18].mxu1 }
 0xe5f   :  { %v6372_v42 = vadd.f32 %v2113_v41, %v6212_v12  ;;  %v4558_v43 = vpop.f32.mrb[19].mxu1  ;;  %v2119_v44 = vmul.f32 %v6226_v19, %v6369_v39  ;;  %v1845_v12 = vsel %vm1176_vm3, %v1842_v59, 0.0  ;;  %v2126_v60 = vmul.f32 %v6224_v18, %v6369_v39 }
 0xe61   :  { %2121 = vadd.xlane.f32.xlu1 %v2119_v44  ;;  %v2120_v45 = vmul.f32 %v6226_v19, %v6372_v42  ;;  %v2127_v61 = vmul.f32 %v6224_v18, %v6372_v42 }
 0xe63   :  { %v2123_v58 = vsel %vm1176_vm3, %v2120_v45, 0.0  ;;  %v2130_v19 = vsel %vm1176_vm3, %v2127_v61, 0.0 }
 0xe65   :  { %2124 = vadd.xlane.f32.xlu1 %v2123_v58 }
 0xe69   :  { %1843 = vadd.xlane.f32.xlu1 %v1841_v11 }
 0xe6d   :  { %1846 = vadd.xlane.f32.xlu1 %v1845_v12 }
 0xe71   :  { %2128 = vadd.xlane.f32.xlu1 %v2126_v60 }
 0xe75   :  { %2131 = vadd.xlane.f32.xlu1 %v2130_v19 }
 0xeed   :  { %v1886_v62 = vpop.f32.mrb[28].mxu0 }
 0xeee   :  { %v2122_v63 = vpop.xlane.xlu1 %2121  ;;  %v4525_v0 = vpop.f32.mrb[29].mxu0 }
 0xeef   :  { %v1889_v3 = vpop.f32.mrb[30].mxu0 }
 0xef0   :  { %v4526_v5 = vpop.f32.mrb[31].mxu0 }
 0xef2   :  { %v2125_v6 = vpop.xlane.xlu1 %2124 }
 0xef3   :  { %v2133_v7 = vpack.c.bf16 %v2125_v6, %v2122_v63 }
 0xef5   :  { %v2135_v8 = vsel %vm1427_vm5, %v2133_v7, 0 }
 0xef6   :  { %4560 = vmatpush3.bf16.msra.mxu1 %v2135_v8  ;;  %v1844_v9 = vpop.xlane.xlu1 %1843 }
 0xef7   :  { %v1887_v10 = vadd.f32 %v1886_v62, %v1844_v9  ;;  %4565 = vmatprep.subr.bf16.mxu1 %v5733_v1 }
 0xef9   :  { %v6392_v18 = vadd.f32 %v1887_v10, %v6253_v38  ;;  %4562 = vmatmul.mubr.msk.bf16.vlgmr.msra.gmra.mrb[20].mxu1 %vm1423_vm6, %v6217_v16 }
 0xefa   :  { %v1847_v14 = vpop.xlane.xlu1 %1846  ;;  %4567 = vmatprep.mubr.msk.bf16.mxu1 %vm5734_vm0, %v5733_v1 }
 0xefb   :  { %v1890_v15 = vadd.f32 %v1889_v3, %v1847_v14  ;;  %1897 = vperm.xlu0 %4696, %v6392_v18  }
 0xefd   :  { %v1894_v21 = vadd.f32 %v1890_v15, %v6253_v38 }
 0xefe   :  { %v2129_v22 = vpop.xlane.xlu1 %2128 }
 0xeff   :  { %1902 = vperm.xlu1 %4697, %v1894_v21  }
 0xf02   :  { %v2132_v24 = vpop.xlane.xlu1 %2131 }
 0xf7a   :  { %v1898_v26 = vpop.permute.xlu0 %1897 }
 0xf7b   :  { %v1905_v16 = vsel %vm1548_vm7, %v1898_v26, -1e+30 }
 0xf7c   :  { %v1907_v40 = vsel %vm1562_vm9, %v1905_v16, -inf }
 0xf7e   :  { %v1903_v25 = vpop.permute.xlu1 %1902 }
 0xf7f   :  { %v1906_v27 = vsel %vm1549_vm8, %v1903_v25, -1e+30 }
 0xf80   :  { %v1908_v31 = vsel %vm1564_vm10, %v1906_v27, -inf }
 0xf81   :  { %v1909_v41 = vmax.f32 %v1907_v40, %v1908_v31 }
 0xf83   :  { %v1910_v44 = vrot.slane %v1909_v41, 4 }
 0xf85   :  { %v1911_v45 = vmax.f32 %v1909_v41, %v1910_v44 }
 0xf87   :  { %v1912_v58 = vrot.slane %v1911_v45, 2 }
 0xf89   :  { %v1913_v11 = vmax.f32 %v1911_v45, %v1912_v58 }
 0xf8b   :  { %v1914_v59 = vrot.slane %v1913_v11, 1 }
 0xf8d   :  { %v1915_v12 = vmax.f32 %v1913_v11, %v1914_v59 }
 0xf8f   :  { %v1917_v60 = vmul.f32 %v1915_v12, %v6267_v51  ;;  %v1916_v61 = vmul.f32 %v1915_v12, %v6264_v50 }
 0xf91   :  { %v1921_v19 = vsel %vm1564_vm10, %v1917_v60, 0.0  ;;  %v1918_v62 = vsel %vm1562_vm9, %v1916_v61, 0.0 }
 0xfcc   :  { %v2171_v28 = vpop.f32.mrb[20].mxu1 }
 0xfcd   :  { %v2172_v29 = vadd.f32 %v2171_v28, %v2129_v22  ;;  %v4563_v30 = vpop.f32.mrb[21].mxu1 }
 0xfce   :  { %v2174_v33 = vpop.f32.mrb[22].mxu1 }
 0xfcf   :  { %v2178_v34 = vadd.f32 %v2172_v29, %v6253_v38  ;;  %v2175_v36 = vadd.f32 %v2174_v33, %v2132_v24  ;;  %v4564_v37 = vpop.f32.mrb[23].mxu1 }
 0xfd1   :  { %v2179_v43 = vadd.f32 %v2175_v36, %v6253_v38  ;;  %2182 = vperm.xlu1 %4697, %v2178_v34  }
 0xfd3   :  { %2187 = vperm.xlu0 %4696, %v2179_v43  }
 0xff2   :  { %1922 = vadd.xlane.f32.xlu0 %v1921_v19 }
 0xff5   :  { %1919 = vadd.xlane.f32.xlu1 %v1918_v62 }
0x1050   :  { %v2183_v63 = vpop.permute.xlu1 %2182 }
0x1051   :  { %v2190_v38 = vsel %vm1548_vm7, %v2183_v63, -1e+30 }
0x1052   :  { %v2188_v0 = vpop.permute.xlu0 %2187  ;;  %v2192_v5 = vsel %vm1562_vm9, %v2190_v38, -inf }
0x1053   :  { %v2191_v3 = vsel %vm1549_vm8, %v2188_v0, -1e+30 }
0x1054   :  { %v2193_v6 = vsel %vm1564_vm10, %v2191_v3, -inf }
0x1055   :  { %v2194_v7 = vmax.f32 %v2192_v5, %v2193_v6 }
0x1057   :  { %v2195_v8 = vrot.slane %v2194_v7, 4 }
0x1059   :  { %v2196_v9 = vmax.f32 %v2194_v7, %v2195_v8 }
0x105b   :  { %v2197_v10 = vrot.slane %v2196_v9, 2 }
0x105d   :  { %v2198_v14 = vmax.f32 %v2196_v9, %v2197_v10 }
0x105f   :  { %v2199_v15 = vrot.slane %v2198_v14, 1 }
0x1061   :  { %v2200_v22 = vmax.f32 %v2198_v14, %v2199_v15 }
0x1063   :  { %v2202_v24 = vmul.f32 %v2200_v22, %v6267_v51  ;;  %v2201_v25 = vmul.f32 %v2200_v22, %v6264_v50 }
0x1065   :  { %v2206_v26 = vsel %vm1564_vm10, %v2202_v24, 0.0  ;;  %v2203_v27 = vsel %vm1562_vm9, %v2201_v25, 0.0 }
0x1066   :  { %2207 = vadd.xlane.f32.xlu1 %v2206_v26  ;;  %2204 = vadd.xlane.f32.xlu0 %v2203_v27 }
0x107f   :  { %v1923_v28 = vpop.xlane.xlu0 %1922 }
0x1080   :  { %v1925_v16 = vsub.f32 %v1894_v21, %v1923_v28 }
0x1082   :  { %v1928_v29 = vmul.f32 1.442695, %v1925_v16  ;;  %v1920_v30 = vpop.xlane.xlu1 %1919 }
0x1083   :  { %v1924_v31 = vsub.f32 %v6392_v18, %v1920_v30 }
0x1084   :  { %4958 = vpow2.f32 %v1928_v29 }
0x1085   :  { %v1926_v33 = vmul.f32 1.442695, %v1924_v31 }
0x1087   :  { %4960 = vpow2.f32 %v1926_v33 }
0x108e   :  { %v4959_v36 = vpop.eup %4958 }
0x108f   :  { %1937 = vperm.xlu1 %4697, %v4959_v36  }
0x1091   :  { %v4961_v37 = vpop.eup %4960 }
0x1092   :  { %1932 = vperm.xlu0 %4696, %v4961_v37  }
0x10f3   :  { %v2205_v40 = vpop.xlane.xlu0 %2204  ;;  %v2208_v41 = vpop.xlane.xlu1 %2207 }
0x10f4   :  { %v2209_v44 = vsub.f32 %v2178_v34, %v2205_v40  ;;  %v2210_v45 = vsub.f32 %v2179_v43, %v2208_v41 }
0x10f6   :  { %v2211_v58 = vmul.f32 1.442695, %v2209_v44  ;;  %v2213_v11 = vmul.f32 1.442695, %v2210_v45 }
0x10f8   :  { %4962 = vpow2.f32 %v2211_v58 }
0x10f9   :  { %4964 = vpow2.f32 %v2213_v11 }
0x1102   :  { %v4963_v21 = vpop.eup %4962 }
0x1103   :  { %v4965_v59 = vpop.eup %4964  ;;  %2217 = vperm.xlu1 %4697, %v4963_v21  }
0x1104   :  { %2222 = vperm.xlu0 %4696, %v4965_v59  }
0x110e   :  { %v1938_v18 = vpop.permute.xlu1 %1937 }
0x110f   :  { %v1941_v12 = vmul.f32 %v1938_v18, %v6267_v51 }
0x1111   :  { %v1933_v60 = vpop.permute.xlu0 %1932  ;;  %v1943_v19 = vsel %vm1564_vm10, %v1941_v12, 0.0 }
0x1112   :  { %v1940_v61 = vmul.f32 %v1933_v60, %v6264_v50 }
0x1114   :  { %v1942_v62 = vsel %vm1562_vm9, %v1940_v61, 0.0 }
0x1115   :  { %v1944_v34 = vadd.f32 %v1943_v19, %v1942_v62 }
0x1117   :  { %v1945_v43 = vrot.slane %v1944_v34, 4 }
0x1119   :  { %v1946_v63 = vadd.f32 %v1945_v43, %v1944_v34  ;;  %v6439_v43 = vld [vmem:[#allocation33] ss:$0 sm:$0xff] }
0x111b   :  { %v1947_v38 = vrot.slane %v1946_v63, 2 }
0x111d   :  { %v1948_v0 = vadd.f32 %v1947_v38, %v1946_v63  ;;  %v1769_v38 = vadd.f32 %v6439_v43, %v6366_v32 }
0x111f   :  { %v1949_v3 = vrot.slane %v1948_v0, 1 }
0x1121   :  { %v1950_v5 = vadd.f32 %v1949_v3, %v1948_v0  ;;  %v1775_v3 = vlaneseq }
0x1123   :  { %v1952_v6 = vmul.f32 %v1950_v5, %v6267_v51  ;;  %v1951_v7 = vmul.f32 %v1950_v5, %v6264_v50 }
0x1125   :  { %v1956_v8 = vsel %vm1564_vm10, %v1952_v6, 0.0  ;;  %v1953_v9 = vsel %vm1562_vm9, %v1951_v7, 0.0 }
0x1126   :  { %1957 = vadd.xlane.f32.xlu0 %v1956_v8 }
0x1127   :  { %1954 = vadd.xlane.f32.xlu1 %v1953_v9 }
0x1182   :  { %v2218_v10 = vpop.permute.xlu1 %2217 }
0x1183   :  { %v2223_v14 = vpop.permute.xlu0 %2222  ;;  %v2225_v15 = vmul.f32 %v2218_v10, %v6264_v50 }
0x1184   :  { %v2226_v22 = vmul.f32 %v2223_v14, %v6267_v51 }
0x1185   :  { %v2227_v24 = vsel %vm1562_vm9, %v2225_v15, 0.0 }
0x1186   :  { %v2228_v25 = vsel %vm1564_vm10, %v2226_v22, 0.0 }
0x1187   :  { %v2229_v26 = vadd.f32 %v2228_v25, %v2227_v24 }
0x1189   :  { %v2230_v27 = vrot.slane %v2229_v26, 4 }
0x118b   :  { %v2231_v28 = vadd.f32 %v2230_v27, %v2229_v26 }
0x118d   :  { %v2232_v16 = vrot.slane %v2231_v28, 2 }
0x118f   :  { %v2233_v29 = vadd.f32 %v2232_v16, %v2231_v28 }
0x1191   :  { %v2234_v30 = vrot.slane %v2233_v29, 1 }
0x1193   :  { %v2235_v31 = vadd.f32 %v2234_v30, %v2233_v29 }
0x1195   :  { %v2237_v33 = vmul.f32 %v2235_v31, %v6267_v51  ;;  %v2236_v40 = vmul.f32 %v2235_v31, %v6264_v50 }
0x1197   :  { %v2241_v41 = vsel %vm1564_vm10, %v2237_v33, 0.0  ;;  %v2238_v44 = vsel %vm1562_vm9, %v2236_v40, 0.0 }
0x1198   :  { %2242 = vadd.xlane.f32.xlu1 %v2241_v41  ;;  %2239 = vadd.xlane.f32.xlu0 %v2238_v44 }
0x11b3   :  { %v1958_v45 = vpop.xlane.xlu0 %1957 }
0x11b4   :  { %4966 = vrcp.f32 %v1958_v45  ;;  %v1955_v58 = vpop.xlane.xlu1 %1954 }
0x11b5   :  { %4968 = vrcp.f32 %v1955_v58 }
0x11be   :  { %v4967_v11 = vpop.eup %4966 }
0x11bf   :  { %v4969_v18 = vpop.eup %4968  ;;  %v1962_v12 = vmul.f32 %v4967_v11, %v4959_v36 }
0x11c0   :  { %v1960_v60 = vmul.f32 %v4969_v18, %v4961_v37 }
0x11c1   :  { %1970 = vperm.xlu1 %4697, %v1962_v12  }
0x11c2   :  { %1965 = vperm.xlu0 %4696, %v1960_v60  }
0x1225   :  { %v2240_v61 = vpop.xlane.xlu0 %2239  ;;  %v2243_v51 = vpop.xlane.xlu1 %2242 }
0x1226   :  { %4970 = vrcp.f32 %v2240_v61 }
0x1227   :  { %4972 = vrcp.f32 %v2243_v51 }
0x1228   :  { %4974 = vtanh.f32 %v1769_v38  ;;  %v1785_v38 = vstv %s1784_s9 }
0x1230   :  { %v4971_v50 = vpop.eup %4970 }
0x1231   :  { %v4973_v19 = vpop.eup %4972  ;;  %v2245_v62 = vmul.f32 %v4971_v50, %v4963_v21  ;;  %v6446_v21 = vshrl.u32 %v1775_v3, 7 }
0x1232   :  { %v2247_v34 = vmul.f32 %v4973_v19, %v4965_v59  ;;  %v6454_v59 = vld [vmem:[#allocation34] sm:$0x7]  ;;  %v4975_v8 = vpop.eup %4974 }
0x1233   :  { %2250 = vperm.xlu1 %4697, %v2245_v62   ;;  %v6452_v32 = vsub.s32 0, %v6446_v21  ;;  %v6504_v33 = vsub.s32 1, %v6446_v21  ;;  %v2348_v61 = vsub.s32 2, %v6446_v21 }
0x1234   :  { %2255 = vperm.xlu0 %4696, %v2247_v34   ;;  %v2070_v34 = vstv %s4073_s19 }
0x1235   :  { %v1778_v7 = vrot.slane %v6454_v59, %v6452_v32  ;;  %v2064_v40 = vrot.slane %v6454_v59, %v6504_v33  ;;  %v2349_v51 = vrot.slane %v6454_v59, %v2348_v61  ;;  %v4776_v61 = vld [vmem:[%s6672_s21 + $0x44] ss:$8 sps:$4 sm:$0xff]  }
0x1237   :  { %v1779_v9 = vmul.f32 %v4975_v8, %v1778_v7 }
0x1239   :  { %v1781_v10 = vsel %vm1780_vm11, %v1779_v9, 0.0 }
0x1240   :  { %v1971_v63 = vpop.permute.xlu1 %1970 }
0x1241   :  { %v1974_v36 = vmul.f32 %v1971_v63, %v6345_v17  ;;  %v1966_v37 = vpop.permute.xlu0 %1965 }
0x1242   :  { %v1973_v0 = vmul.f32 %v1966_v37, %v6342_v13  ;;  %v2355_v37 = vstv %s4077_s24 }
0x1244   :  { %v1975_v5 = vpack.c.bf16 %v1974_v36, %v1973_v0 }
0x1246   :  { %v1977_v6 = vsel %vm1427_vm5, %v1975_v5, 0 }
0x1247   :  { %4528 = vmatpush3.bf16.msra.mxu0 %v1977_v6 }
0x1248   :  { %4533 = vmatprep.subr.bf16.mxu0 %v5733_v1 }
0x124a   :  { %4530 = vmatmul.mubr.msk.bf16.vlgmr.msra.gmra.mrb[32].mxu0 %vm1423_vm6, %v6322_v2 }
0x124b   :  { %4534 = vmatpush3.bf16.msra.mxu0 %v6289_v47  ;;  %4549 = vmatprep.mubr.msk.bf16.mxu0 %vm5734_vm0, %v5733_v1 }
0x124c   :  { %4535 = vmatprep.subr.bf16.mxu0 %v5733_v1 }
0x124f   :  { %4536 = vmatpush3.bf16.msra.mxu0 %v6292_v52 }
0x1250   :  { %4537 = vmatprep.subr.bf16.mxu0 %v5733_v1 }
0x1253   :  { %4538 = vmatpush3.bf16.msra.mxu0 %v6296_v53 }
0x1254   :  { %4539 = vmatprep.subr.bf16.mxu0 %v5733_v1 }
0x1257   :  { %1782 = vadd.xlane.f32.xlu1 %v1781_v10  ;;  %4540 = vmatpush3.bf16.msra.mxu0 %v6300_v54 }
0x1258   :  { %4541 = vmatprep.subr.bf16.mxu0 %v5733_v1 }
0x125b   :  { %4542 = vmatpush3.bf16.msra.mxu0 %v6304_v55 }
0x125c   :  { %4543 = vmatprep.subr.bf16.mxu0 %v5733_v1 }
0x125f   :  { %4544 = vmatpush3.bf16.msra.mxu0 %v6308_v56 }
0x1260   :  { %4545 = vmatprep.subr.bf16.mxu0 %v5733_v1 }
0x1263   :  { %4546 = vmatpush3.bf16.msra.mxu0 %v6312_v57 }
0x1264   :  { %4547 = vmatprep.subr.bf16.mxu0 %v5733_v1 }
0x1267   :  { %4548 = vmatpush3.bf16.msra.mxu0 %v6335_v4 }
0x1268   :  { %4591 = vmatprep.subr.bf16.mxu0 %v5733_v1 }
0x12b2   :  { %v2251_v14 = vpop.permute.xlu1 %2250 }
0x12b3   :  { %v2256_v15 = vpop.permute.xlu0 %2255  ;;  %v2258_v22 = vmul.f32 %v2251_v14, %v6369_v39 }
0x12b4   :  { %v2259_v24 = vmul.f32 %v2256_v15, %v6372_v42 }
0x12b6   :  { %v2260_v25 = vpack.c.bf16 %v2259_v24, %v2258_v22 }
0x12b8   :  { %v2262_v26 = vsel %vm1427_vm5, %v2260_v25, 0 }
0x12b9   :  { %4566 = vmatpush3.bf16.msra.mxu1 %v2262_v26 }
0x12ba   :  { %4571 = vmatprep.subr.bf16.mxu1 %v5733_v1 }
0x12bc   :  { %4568 = vmatmul.mubr.msk.bf16.vlgmr.msra.gmra.mrb[24].mxu1 %vm1423_vm6, %v6322_v2 }
0x12bd   :  { %4572 = vmatpush3.bf16.msra.mxu1 %v6289_v47  ;;  %4587 = vmatprep.mubr.msk.bf16.mxu1 %vm5734_vm0, %v5733_v1 }
0x12be   :  { %4573 = vmatprep.subr.bf16.mxu1 %v5733_v1 }
0x12c1   :  { %4574 = vmatpush3.bf16.msra.mxu1 %v6292_v52 }
0x12c2   :  { %4575 = vmatprep.subr.bf16.mxu1 %v5733_v1 }
0x12c5   :  { %4576 = vmatpush3.bf16.msra.mxu1 %v6296_v53 }
0x12c6   :  { %4577 = vmatprep.subr.bf16.mxu1 %v5733_v1 }
0x12c9   :  { %4578 = vmatpush3.bf16.msra.mxu1 %v6300_v54 }
0x12ca   :  { %4579 = vmatprep.subr.bf16.mxu1 %v5733_v1 }
0x12cd   :  { %4580 = vmatpush3.bf16.msra.mxu1 %v6304_v55 }
0x12ce   :  { %4581 = vmatprep.subr.bf16.mxu1 %v5733_v1 }
0x12d1   :  { %4582 = vmatpush3.bf16.msra.mxu1 %v6308_v56 }
0x12d2   :  { %4583 = vmatprep.subr.bf16.mxu1 %v5733_v1 }
0x12d5   :  { %4584 = vmatpush3.bf16.msra.mxu1 %v6312_v57 }
0x12d6   :  { %4585 = vmatprep.subr.bf16.mxu1 %v5733_v1 }
0x12d9   :  { %4586 = vmatpush3.bf16.msra.mxu1 %v6335_v4 }
0x131d   :  { %v2013_v47 = vpop.f32.mrb[32].mxu0 }
0x131e   :  { %v2019_v52 = vpack.c.bf16 %v2013_v47, %v2013_v47  ;;  %v4531_v53 = vpop.f32.mrb[33].mxu0  ;;  %v4078_v47 = vcombine.low %v6258_v48, %v6261_v49 }
0x131f   :  { %v2016_v54 = vpop.f32.mrb[34].mxu0 }
0x1320   :  { %4550 = vmatmul.mubr.bf16.vlgmr.msra.gmra.mrb[36].mxu0 %v2019_v52  ;;  %v4532_v2 = vpop.f32.mrb[35].mxu0 }
0x1321   :  { %4593 = vmatprep.mubr.msk.bf16.mxu0 %vm5734_vm0, %v5733_v1 }
0x138f   :  { %v2298_v55 = vpop.f32.mrb[24].mxu1 }
0x1390   :  { %v2304_v27 = vpack.c.bf16 %v2298_v55, %v2298_v55  ;;  %v4569_v56 = vpop.f32.mrb[25].mxu1  ;;  %v5736_v55 = vmov 1  }
0x1391   :  { %v2301_v28 = vpop.f32.mrb[26].mxu1 }
0x1392   :  { %v4570_v16 = vpop.f32.mrb[27].mxu1  ;;  %4588 = vmatmul.mubr.bf16.vlgmr.msra.gmra.mrb[28].mxu1 %v2304_v27  ;;  %v5737_v27 = vmov 2  }
0x13f3   :  { %v2054_v57 = vpop.f32.mrb[36].mxu0 }
0x13f4   :  { %v2055_v29 = vadd.f32 %v6439_v43, %v2054_v57  ;;  %v4551_v30 = vpop.f32.mrb[37].mxu0 }
0x13f5   :  { %v2057_v4 = vpop.f32.mrb[38].mxu0 }
0x13f6   :  { %4976 = vtanh.f32 %v2055_v29  ;;  %v4552_v31 = vpop.f32.mrb[39].mxu0 }
0x1400   :  { %v4977_v41 = vpop.eup %4976 }
0x1401   :  { %v2065_v44 = vmul.f32 %v4977_v41, %v2064_v40 }
0x1403   :  { %v2066_v45 = vsel %vm1780_vm11, %v2065_v44, 0.0 }
0x1404   :  { %2067 = vadd.xlane.f32.xlu0 %v2066_v45 }
0x1465   :  { %v2339_v58 = vpop.f32.mrb[28].mxu1 }
0x1466   :  { %v2340_v11 = vadd.f32 %v6439_v43, %v2339_v58  ;;  %v4589_v18 = vpop.f32.mrb[29].mxu1  ;;  %v1783_v43 = vpop.xlane.xlu1 %1782 }
0x1467   :  { %v2342_v12 = vpop.f32.mrb[30].mxu1  ;;  %v1786_v0 = vadd.f32 %v1785_v38, %v1783_v43  ;;  %v4770_v18 = vld [vmem:[%s6672_s21 + $0x24] ss:$8 sps:$4 sm:$0xff]   ;;  %v4785_v38 = vld [vmem:[%s6672_s21 + $0x74] ss:$8 sps:$4 sm:$0xff]  }
0x1468   :  { %4978 = vtanh.f32 %v2340_v11  ;;  %v4590_v60 = vpop.f32.mrb[31].mxu1  ;;  %v4765_v11 = vld [vmem:[%s6672_s21 + $0x10] ss:$8 sps:$4 sm:$0xff]   ;;  %v4768_v12 = vld [vmem:[%s6672_s21 + $0x20] ss:$8 sps:$4 sm:$0xff]  }
0x1469   :  { %v4773_v60 = vld [vmem:[%s6672_s21 + $0x34] ss:$8 sps:$4 sm:$0xff]  }
0x146a   :  { %v4786_v43 = vld [vmem:[#allocation39] ss:$8 sps:$4 sm:$0xff]  }
0x1472   :  { %v4979_v50 = vpop.eup %4978 }
0x1473   :  { %v2350_v19 = vmul.f32 %v4979_v50, %v2349_v51  ;;  %v4774_v51 = vld [vmem:[%s6672_s21 + $0x40] ss:$8 sps:$4 sm:$0xff]   ;;  %v4779_v50 = vld [vmem:[%s6672_s21 + $0x54] ss:$8 sps:$4 sm:$0xff]  }
0x1475   :  { %v2351_v62 = vsel %vm1780_vm11, %v2350_v19, 0.0  ;;  %v4777_v19 = vld [vmem:[%s6672_s21 + $0x50] ss:$8 sps:$4 sm:$0xff]  }
0x1476   :  { %2352 = vadd.xlane.f32.xlu0 %v2351_v62  ;;  %v4782_v62 = vld [vmem:[%s6672_s21 + $0x64] ss:$8 sps:$4 sm:$0xff]  }
0x1491   :  { %v2068_v63 = vpop.xlane.xlu0 %2067 }
0x1492   :  { %v2071_v36 = vadd.f32 %v2070_v34, %v2068_v63  ;;  %v4780_v34 = vld [vmem:[%s6672_s21 + $0x60] ss:$8 sps:$4 sm:$0xff]   ;;  %v4783_v63 = vld [vmem:[%s6672_s21 + $0x70] ss:$8 sps:$4 sm:$0xff]  }
0x1494   :  { %v2358_v6 = vsel %vm2357_vm12, %v1786_v0, %v2071_v36  ;;  %v4788_v36 = vld [vmem:[#allocation39 + $0x4] ss:$8 sps:$4 sm:$0xff]  }
0x1495   :  { %2976 = vmatprep.subr.bf16.mxu1 %v4788_v36  ;;  %v2563_v36 = vld [vmem:[%s6673_s18] sm:$0x3] }
0x1496   :  { %2977 = vmatpush1.bf16.msra.mxu1 %v4786_v43  ;;  %v4836_v43 = vld [vmem:[#allocation40 + $0x4] ss:$8 sps:$4 sm:$0xff]  }
0x1503   :  { %v2353_v3 = vpop.xlane.xlu0 %2352 }
0x1504   :  { %v2356_v5 = vadd.f32 %v2355_v37, %v2353_v3 }
0x1506   :  { %v2359_v21 = vsel %vm1562_vm9, %v2358_v6, %v2356_v5 }
0x1507   :  { %v2361_v59 = vsel %vm2360_vm13, %v2359_v21, -inf }
0x1508   :  { %2362 = vmax.xlane.f32.xlu1 %v2361_v59 }
0x1595   :  { %v2363_v7 = vpop.xlane.xlu1 %2362 }
0x1596   :  { %v2364_v8 = vsub.f32 %v2359_v21, %v2363_v7 }
0x1598   :  { %v2365_v9 = vmul.f32 1.442695, %v2364_v8 }
0x159a   :  { %4980 = vpow2.f32 %v2365_v9 }
0x15a4   :  { %v4981_v10 = vpop.eup %4980 }
0x15a5   :  { %v2367_v14 = vsel %vm2360_vm13, %v4981_v10, 0.0 }
0x15a6   :  { %2368 = vadd.xlane.f32.xlu0 %v2367_v14 }
0x1633   :  { %v2369_v15 = vpop.xlane.xlu0 %2368 }
0x1634   :  { %4982 = vrcp.f32 %v2369_v15 }
0x163e   :  { %v4983_v22 = vpop.eup %4982 }
0x163f   :  { %v2371_v24 = vmul.f32 %v4983_v22, %v4981_v10 }
0x1641   :  { %v2372_v25 = vpack.c.bf16 %v2371_v24, %v2371_v24 }
0x1643   :  { %v2383_v26 = vsel %vm2381_vm14, %v2372_v25, 0 }
0x1644   :  { %4592 = vmatpush3.bf16.msra.mxu0 %v2383_v26 }
0x1645   :  { %4597 = vmatprep.subr.bf16.mxu0 %v5733_v1 }
0x1647   :  { %4594 = vmatmul.mubr.msk.bf16.vlgmr.msra.gmra.mrb[40].mxu0 %vm1562_vm9, %v4078_v47 }
0x1648   :  { %4599 = vmatprep.mubr.msk.bf16.mxu0 %vm5734_vm0, %v5733_v1 }
0x171a   :  { %v2419_v52 = vpop.f32.mrb[40].mxu0 }
0x171b   :  { %2428 = vperm.xlu1 %4697, %v2419_v52   ;;  %v4595_v53 = vpop.f32.mrb[41].mxu0 }
0x171c   :  { %v2422_v54 = vpop.f32.mrb[42].mxu0 }
0x171d   :  { %2433 = vperm.xlu0 %4696, %v2422_v54   ;;  %v4596_v2 = vpop.f32.mrb[43].mxu0 }
0x171f   :  { %4698 = vset.pattern.permute.xlu1 %v5736_v55  ;;  %v4081_v55 = vld [vmem:[#allocation36] ss:$0 sm:$0xff] }
0x1720   :  { %2439 = vperm.xlu1 %4698, %v2419_v52  }
0x1721   :  { %4699 = vset.pattern.permute.xlu0 %v5737_v27 }
0x1722   :  { %2451 = vperm.xlu0 %4699, %v2419_v52  }
0x1724   :  { %2443 = vperm.xlu1 %4698, %v2422_v54  }
0x1728   :  { %4700 = vset.pattern.permute.xlu1 %v5737_v27 }
0x1729   :  { %2455 = vperm.xlu1 %4700, %v2422_v54  }
0x179a   :  { %v2429_v48 = vpop.permute.xlu1 %2428 }
0x179b   :  { %v2436_v57 = vmul.f32 %v2429_v48, %v6229_v20  ;;  %v4082_v48 = vld [vmem:[#allocation37] ss:$0 sm:$0xff] }
0x179c   :  { %v2434_v49 = vpop.permute.xlu0 %2433 }
0x179d   :  { %v2437_v30 = vmul.f32 %v2434_v49, %v6232_v23  ;;  %v4764_v23 = vld [vmem:[%s6672_s21 + $0x4] ss:$8 sps:$4 sm:$0xff]  }
0x179f   :  { %v2440_v56 = vpop.permute.xlu1 %2439 }
0x17a0   :  { %v2446_v1 = vmul.f32 %v2440_v56, %v6342_v13 }
0x17a1   :  { %v2452_v16 = vpop.permute.xlu0 %2451 }
0x17a2   :  { %v2448_v4 = vadd.f32 %v2446_v1, %v2436_v57  ;;  %v2458_v31 = vmul.f32 %v2452_v16, %v6369_v39  ;;  %v4762_v39 = vld [vmem:[%s6672_s21] ss:$8 sps:$4 sm:$0xff]   ;;  %v4794_v57 = vld [vmem:[#allocation39 + $0x24] ss:$8 sps:$4 sm:$0xff]  }
0x17a3   :  { %v2444_v28 = vpop.permute.xlu1 %2443  ;;  %v4789_v16 = vld [vmem:[#allocation39 + $0x10] ss:$8 sps:$4 sm:$0xff]  }
0x17a4   :  { %v2447_v29 = vmul.f32 %v2444_v28, %v6345_v17  ;;  %v2460_v13 = vadd.f32 %v2458_v31, %v2448_v4  ;;  %v2462_v17 = vld [vmem:[#allocation10] sm:$0xf]  ;;  %v4791_v28 = vld [vmem:[#allocation39 + $0x14] ss:$8 sps:$4 sm:$0xff]   ;;  %v4795_v4 = vld [vmem:[#allocation39 + $0x30] ss:$8 sps:$4 sm:$0xff]  }
0x17a5   :  { %2978 = vmatprep.subr.bf16.mxu1 %v4791_v28  ;;  %v4800_v31 = vld [vmem:[#allocation39 + $0x44] ss:$8 sps:$4 sm:$0xff]  }
0x17a6   :  { %v2449_v41 = vadd.f32 %v2447_v29, %v2437_v30  ;;  %2979 = vmatpush1.bf16.msra.mxu1 %v4789_v16  ;;  %v4792_v29 = vld [vmem:[#allocation39 + $0x20] ss:$8 sps:$4 sm:$0xff]   ;;  %v4797_v30 = vld [vmem:[#allocation39 + $0x34] ss:$8 sps:$4 sm:$0xff]  }
0x17a7   :  { %2980 = vmatprep.subr.bf16.mxu1 %v4794_v57 }
0x17a8   :  { %v2456_v40 = vpop.permute.xlu1 %2455 }
0x17a9   :  { %v2459_v44 = vmul.f32 %v2456_v40, %v6372_v42  ;;  %v4767_v42 = vld [vmem:[%s6672_s21 + $0x14] ss:$8 sps:$4 sm:$0xff]  }
0x17aa   :  { %2981 = vmatpush1.bf16.msra.mxu1 %v4792_v29  ;;  %v4798_v40 = vld [vmem:[#allocation39 + $0x40] ss:$8 sps:$4 sm:$0xff]  }
0x17ab   :  { %v2461_v45 = vadd.f32 %v2459_v44, %v2449_v41  ;;  %2982 = vmatprep.subr.bf16.mxu1 %v4797_v30  ;;  %v4803_v41 = vld [vmem:[#allocation39 + $0x54] ss:$8 sps:$4 sm:$0xff]   ;;  %v4801_v44 = vld [vmem:[#allocation39 + $0x50] ss:$8 sps:$4 sm:$0xff]  }
0x17ad   :  { %v2463_v20 = vpack.c.bf16 %v2461_v45, %v2460_v13  ;;  %v4806_v13 = vld [vmem:[#allocation39 + $0x64] ss:$8 sps:$4 sm:$0xff]   ;;  %v4804_v45 = vld [vmem:[#allocation39 + $0x60] ss:$8 sps:$4 sm:$0xff]  }
0x17ae   :  { %2983 = vmatpush1.bf16.msra.mxu1 %v4795_v4 }
0x17af   :  { %v2468_v58 = vsel %vm1427_vm5, %v2463_v20, 0  ;;  %2984 = vmatprep.subr.bf16.mxu1 %v4800_v31  ;;  %v4809_v20 = vld [vmem:[#allocation39 + $0x74] ss:$8 sps:$4 sm:$0xff]  }
0x17b0   :  { %4598 = vmatpush3.bf16.msra.mxu0 %v2468_v58  ;;  %v4807_v58 = vld [vmem:[#allocation39 + $0x70] ss:$8 sps:$4 sm:$0xff]  }
0x17b1   :  { %2655 = vmatprep.subr.bf16.mxu0 %v4764_v23  ;;  %v4810_v23 = vld [vmem:[#allocation39 + $0x80] ss:$8 sps:$4 sm:$0xff]  }
0x17b2   :  { %2985 = vmatpush1.bf16.msra.mxu1 %v4798_v40 }
0x17b3   :  { %4600 = vmatmul.mubr.msk.bf16.vlgmr.msra.gmra.mrb[44].mxu0 %vm1423_vm6, %v2462_v17  ;;  %2986 = vmatprep.subr.bf16.mxu1 %v4803_v41  ;;  %v4812_v17 = vld [vmem:[#allocation39 + $0x84] ss:$8 sps:$4 sm:$0xff]  }
0x17b4   :  { %2687 = vmatprep.mubr.bf16.mxu0 %v5735_v35  ;;  %2656 = vmatpush1.bf16.msra.mxu0 %v4762_v39  ;;  %v4771_v35 = vld [vmem:[%s6672_s21 + $0x30] ss:$8 sps:$4 sm:$0xff]   ;;  %v4815_v39 = vld [vmem:[#allocation39 + $0x94] ss:$8 sps:$4 sm:$0xff]  }
0x17b5   :  { %2657 = vmatprep.subr.bf16.mxu0 %v4767_v42  ;;  %v4813_v42 = vld [vmem:[#allocation39 + $0x90] ss:$8 sps:$4 sm:$0xff]  }
0x17b6   :  { %2987 = vmatpush1.bf16.msra.mxu1 %v4801_v44 }
0x17b7   :  { %2988 = vmatprep.subr.bf16.mxu1 %v4806_v13 }
0x17b8   :  { %2658 = vmatpush1.bf16.msra.mxu0 %v4765_v11  ;;  %v4818_v11 = vld [vmem:[#allocation39 + $0xa4] ss:$8 sps:$4 sm:$0xff]  }
0x17b9   :  { %2659 = vmatprep.subr.bf16.mxu0 %v4770_v18  ;;  %v4816_v18 = vld [vmem:[#allocation39 + $0xa0] ss:$8 sps:$4 sm:$0xff]  }
0x17ba   :  { %2989 = vmatpush1.bf16.msra.mxu1 %v4804_v45 }
0x17bb   :  { %2990 = vmatprep.subr.bf16.mxu1 %v4809_v20 }
0x17bc   :  { %2660 = vmatpush1.bf16.msra.mxu0 %v4768_v12  ;;  %v4821_v12 = vld [vmem:[#allocation39 + $0xb4] ss:$8 sps:$4 sm:$0xff]  }
0x17bd   :  { %2661 = vmatprep.subr.bf16.mxu0 %v4773_v60  ;;  %v4819_v60 = vld [vmem:[#allocation39 + $0xb0] ss:$8 sps:$4 sm:$0xff]  }
0x17be   :  { %2991 = vmatpush1.bf16.msra.mxu1 %v4807_v58  ;;  %v2696_v58 = vld [vmem:[%s6674_s29] sm:$0x3] }
0x17bf   :  { %2992 = vmatprep.subr.bf16.mxu1 %v4812_v17  ;;  %v2697_v17 = vld [vmem:[%s6675_s5] sm:$0x3] }
0x17c0   :  { %2662 = vmatpush1.bf16.msra.mxu0 %v4771_v35  ;;  %v4824_v35 = vld [vmem:[#allocation39 + $0xc4] ss:$8 sps:$4 sm:$0xff]  }
0x17c1   :  { %2663 = vmatprep.subr.bf16.mxu0 %v4776_v61  ;;  %v4822_v61 = vld [vmem:[#allocation39 + $0xc0] ss:$8 sps:$4 sm:$0xff]  }
0x17c2   :  { %2993 = vmatpush1.bf16.msra.mxu1 %v4810_v23  ;;  %v2740_v23 = vrot.slane %v2696_v58, %v6452_v32 }
0x17c3   :  { %2994 = vmatprep.subr.bf16.mxu1 %v4815_v39 }
0x17c4   :  { %2664 = vmatpush1.bf16.msra.mxu0 %v4774_v51  ;;  %v4827_v51 = vld [vmem:[#allocation39 + $0xd4] ss:$8 sps:$4 sm:$0xff]  }
0x17c5   :  { %2665 = vmatprep.subr.bf16.mxu0 %v4779_v50  ;;  %v4825_v50 = vld [vmem:[#allocation39 + $0xd0] ss:$8 sps:$4 sm:$0xff]  }
0x17c6   :  { %2995 = vmatpush1.bf16.msra.mxu1 %v4813_v42  ;;  %v2744_v42 = vrot.slane %v2696_v58, %v6504_v33 }
0x17c7   :  { %2996 = vmatprep.subr.bf16.mxu1 %v4818_v11 }
0x17c8   :  { %2666 = vmatpush1.bf16.msra.mxu0 %v4777_v19  ;;  %v4828_v19 = vld [vmem:[#allocation39 + $0xe0] ss:$8 sps:$4 sm:$0xff]  }
0x17c9   :  { %2667 = vmatprep.subr.bf16.mxu0 %v4782_v62  ;;  %v4830_v62 = vld [vmem:[#allocation39 + $0xe4] ss:$8 sps:$4 sm:$0xff]  }
0x17ca   :  { %2997 = vmatpush1.bf16.msra.mxu1 %v4816_v18 }
0x17cb   :  { %2998 = vmatprep.subr.bf16.mxu1 %v4821_v12  ;;  %v2753_v12 = vrot.slane %v2697_v17, %v6452_v32 }
0x17cc   :  { %2668 = vmatpush1.bf16.msra.mxu0 %v4780_v34  ;;  %v4833_v34 = vld [vmem:[#allocation39 + $0xf4] ss:$8 sps:$4 sm:$0xff]  }
0x17cd   :  { %2669 = vmatprep.subr.bf16.mxu0 %v4785_v38  ;;  %v4834_v38 = vld [vmem:[#allocation40] ss:$8 sps:$4 sm:$0xff]  }
0x17ce   :  { %2999 = vmatpush1.bf16.msra.mxu1 %v4819_v60 }
0x17cf   :  { %3000 = vmatprep.subr.bf16.mxu1 %v4824_v35  ;;  %v2757_v35 = vrot.slane %v2697_v17, %v6504_v33 }
0x17d0   :  { %2670 = vmatpush1.bf16.msra.mxu0 %v4783_v63  ;;  %v4831_v63 = vld [vmem:[#allocation39 + $0xf0] ss:$8 sps:$4 sm:$0xff]  }
0x17d1   :  { %3297 = vmatprep.subr.bf16.mxu0 %v4836_v43 }
0x17d2   :  { %3001 = vmatpush1.bf16.msra.mxu1 %v4822_v61 }
0x17d3   :  { %3002 = vmatprep.subr.bf16.mxu1 %v4827_v51 }
0x17d6   :  { %3003 = vmatpush1.bf16.msra.mxu1 %v4825_v50  ;;  %v2765_v50 = vstv %s4099_s0 }
0x17d7   :  { %3004 = vmatprep.subr.bf16.mxu1 %v4830_v62 }
0x17da   :  { %3005 = vmatpush1.bf16.msra.mxu1 %v4828_v19 }
0x17db   :  { %3006 = vmatprep.subr.bf16.mxu1 %v4833_v34 }
0x17de   :  { %3007 = vmatpush1.bf16.msra.mxu1 %v4831_v63 }
0x1886   :  { %v2504_v37 = vpop.f32.mrb[44].mxu0 }
0x1887   :  { %v2510_v0 = vadd.f32 %v2504_v37, %v6182_v46  ;;  %v4601_v3 = vpop.f32.mrb[45].mxu0  ;;  %v2568_v37 = vrot.slane %v2563_v36, %v6452_v32 }
0x1888   :  { %v2507_v5 = vpop.f32.mrb[46].mxu0 }
0x1889   :  { %v2513_v6 = vrot.slane %v2510_v0, 4  ;;  %v4602_v21 = vpop.f32.mrb[47].mxu0 }
0x188b   :  { %v2514_v59 = vadd.f32 %v2513_v6, %v2510_v0 }
0x188d   :  { %v2515_v7 = vrot.slane %v2514_v59, 2 }
0x188f   :  { %v2516_v8 = vadd.f32 %v2515_v7, %v2514_v59 }
0x1891   :  { %v2517_v9 = vrot.slane %v2516_v8, 1 }
0x1893   :  { %v2518_v10 = vadd.f32 %v2517_v9, %v2516_v8 }
0x1895   :  { %v2519_v14 = vmul.f32 0.125, %v2518_v10 }
0x1897   :  { %v2520_v15 = vsub.f32 %v2510_v0, %v2519_v14  ;;  %v2572_v0 = vrot.slane %v2563_v36, %v6504_v33 }
0x1899   :  { %v2521_v22 = vmul.f32 %v2520_v15, %v2520_v15 }
0x189b   :  { %v2522_v24 = vrot.slane %v2521_v22, 4 }
0x189d   :  { %v2523_v25 = vadd.f32 %v2522_v24, %v2521_v22 }
0x189f   :  { %v2524_v26 = vrot.slane %v2523_v25, 2 }
0x18a1   :  { %v2525_v47 = vadd.f32 %v2524_v26, %v2523_v25 }
0x18a3   :  { %v2526_v52 = vrot.slane %v2525_v47, 1 }
0x18a5   :  { %v2527_v53 = vadd.f32 %v2526_v52, %v2525_v47 }
0x18a7   :  { %v2528_v54 = vmul.f32 0.125, %v2527_v53 }
0x18a9   :  { %v2529_v46 = vadd.f32 1e-05, %v2528_v54 }
0x18ab   :  { %4984 = vrsqrt.f32 %v2529_v46 }
0x18b5   :  { %v4985_v2 = vpop.eup %4984 }
0x18b6   :  { %v2531_v27 = vmul.f32 %v4985_v2, %v2520_v15 }
0x18b8   :  { %v2538_v49 = vmul.f32 %v4081_v55, %v2531_v27 }
0x18ba   :  { %v2545_v56 = vadd.f32 %v4082_v48, %v2538_v49 }
0x18bc   :  { %v2562_v1 = vpack.c.bf16 %v2545_v56, %v2545_v56 }
0x18be   :  { %2688 = vmatmul.mubr.bf16.vlgmr.msra.gmra.mrb[48].mxu0 %v2562_v1 }
0x18bf   :  { %3298 = vmatpush1.bf16.msra.mxu0 %v4834_v38 }
0x1991   :  { %v2689_v3 = vpop.f32.mrb[48].mxu0 }
0x1992   :  { %v6549_v5 = vadd.f32 %v2689_v3, %v2568_v37  ;;  %v2691_v6 = vpop.f32.mrb[49].mxu0  ;;  %v4837_v3 = vld [vmem:[#allocation40 + $0x10] ss:$8 sps:$4 sm:$0xff]  }
0x1993   :  { %v6551_v21 = vadd.f32 %v2691_v6, %v2572_v0  ;;  %v2693_v59 = vpop.f32.mrb[50].mxu0  ;;  %v4839_v0 = vld [vmem:[#allocation40 + $0x14] ss:$8 sps:$4 sm:$0xff]   ;;  %v4842_v6 = vld [vmem:[#allocation40 + $0x24] ss:$8 sps:$4 sm:$0xff]  }
0x1994   :  { %v2698_v7 = vrot.slane %v6549_v5, 4  ;;  %v2694_v8 = vpop.f32.mrb[51].mxu0  ;;  %3299 = vmatprep.subr.bf16.mxu0 %v4839_v0  ;;  %v4840_v59 = vld [vmem:[#allocation40 + $0x20] ss:$8 sps:$4 sm:$0xff]  }
0x1995   :  { %v2704_v9 = vrot.slane %v6551_v21, 4  ;;  %3300 = vmatpush1.bf16.msra.mxu0 %v4837_v3  ;;  %v4843_v8 = vld [vmem:[#allocation40 + $0x30] ss:$8 sps:$4 sm:$0xff]  }
0x1996   :  { %v2699_v10 = vadd.f32 %v2698_v7, %v6549_v5  ;;  %3301 = vmatprep.subr.bf16.mxu0 %v4842_v6  ;;  %v4845_v7 = vld [vmem:[#allocation40 + $0x34] ss:$8 sps:$4 sm:$0xff]  }
0x1997   :  { %v2705_v14 = vadd.f32 %v2704_v9, %v6551_v21  ;;  %v4848_v9 = vld [vmem:[#allocation40 + $0x44] ss:$8 sps:$4 sm:$0xff]  }
0x1998   :  { %v2700_v15 = vrot.slane %v2699_v10, 2 }
0x1999   :  { %v2706_v22 = vrot.slane %v2705_v14, 2  ;;  %3302 = vmatpush1.bf16.msra.mxu0 %v4840_v59 }
0x199a   :  { %v2701_v24 = vadd.f32 %v2700_v15, %v2699_v10  ;;  %3303 = vmatprep.subr.bf16.mxu0 %v4845_v7  ;;  %v4846_v10 = vld [vmem:[#allocation40 + $0x40] ss:$8 sps:$4 sm:$0xff]   ;;  %v4849_v15 = vld [vmem:[#allocation40 + $0x50] ss:$8 sps:$4 sm:$0xff]  }
0x199b   :  { %v2707_v25 = vadd.f32 %v2706_v22, %v2705_v14  ;;  %v4851_v14 = vld [vmem:[#allocation40 + $0x54] ss:$8 sps:$4 sm:$0xff]   ;;  %v4854_v22 = vld [vmem:[#allocation40 + $0x64] ss:$8 sps:$4 sm:$0xff]  }
0x199c   :  { %v2702_v26 = vrot.slane %v2701_v24, 1 }
0x199d   :  { %v2708_v47 = vrot.slane %v2707_v25, 1  ;;  %3304 = vmatpush1.bf16.msra.mxu0 %v4843_v8 }
0x199e   :  { %v2703_v52 = vadd.f32 %v2702_v26, %v2701_v24  ;;  %3305 = vmatprep.subr.bf16.mxu0 %v4848_v9  ;;  %v4852_v24 = vld [vmem:[#allocation40 + $0x60] ss:$8 sps:$4 sm:$0xff]   ;;  %v4855_v26 = vld [vmem:[#allocation40 + $0x70] ss:$8 sps:$4 sm:$0xff]  }
0x199f   :  { %v2709_v53 = vadd.f32 %v2708_v47, %v2707_v25  ;;  %v4857_v25 = vld [vmem:[#allocation40 + $0x74] ss:$8 sps:$4 sm:$0xff]   ;;  %v4860_v47 = vld [vmem:[#allocation40 + $0x84] ss:$8 sps:$4 sm:$0xff]  }
0x19a0   :  { %v2710_v54 = vmul.f32 0.125, %v2703_v52  ;;  %v4858_v52 = vld [vmem:[#allocation40 + $0x80] ss:$8 sps:$4 sm:$0xff]  }
0x19a1   :  { %v2711_v46 = vmul.f32 0.125, %v2709_v53  ;;  %3306 = vmatpush1.bf16.msra.mxu0 %v4846_v10  ;;  %v4863_v53 = vld [vmem:[#allocation40 + $0x94] ss:$8 sps:$4 sm:$0xff]  }
0x19a2   :  { %v2712_v2 = vsub.f32 %v6549_v5, %v2710_v54  ;;  %3307 = vmatprep.subr.bf16.mxu0 %v4851_v14  ;;  %v4861_v54 = vld [vmem:[#allocation40 + $0x90] ss:$8 sps:$4 sm:$0xff]  }
0x19a3   :  { %v2713_v55 = vsub.f32 %v6551_v21, %v2711_v46  ;;  %v4866_v46 = vld [vmem:[#allocation40 + $0xa4] ss:$8 sps:$4 sm:$0xff]  }
0x19a4   :  { %v2714_v27 = vmul.f32 %v2712_v2, %v2712_v2 }
0x19a5   :  { %v2715_v48 = vmul.f32 %v2713_v55, %v2713_v55  ;;  %3308 = vmatpush1.bf16.msra.mxu0 %v4849_v15 }
0x19a6   :  { %v2716_v49 = vrot.slane %v2714_v27, 4  ;;  %3309 = vmatprep.subr.bf16.mxu0 %v4854_v22 }
0x19a7   :  { %v2722_v56 = vrot.slane %v2715_v48, 4 }
0x19a8   :  { %v2717_v1 = vadd.f32 %v2716_v49, %v2714_v27  ;;  %v4867_v27 = vld [vmem:[#allocation40 + $0xb0] ss:$8 sps:$4 sm:$0xff]   ;;  %v4870_v49 = vld [vmem:[#allocation40 + $0xc0] ss:$8 sps:$4 sm:$0xff]  }
0x19a9   :  { %v2723_v28 = vadd.f32 %v2722_v56, %v2715_v48  ;;  %3310 = vmatpush1.bf16.msra.mxu0 %v4852_v24  ;;  %v4872_v48 = vld [vmem:[#allocation40 + $0xc4] ss:$8 sps:$4 sm:$0xff]   ;;  %v4875_v56 = vld [vmem:[#allocation40 + $0xd4] ss:$8 sps:$4 sm:$0xff]  }
0x19aa   :  { %v2718_v16 = vrot.slane %v2717_v1, 2  ;;  %3311 = vmatprep.subr.bf16.mxu0 %v4857_v25 }
0x19ab   :  { %v2724_v57 = vrot.slane %v2723_v28, 2 }
0x19ac   :  { %v2719_v29 = vadd.f32 %v2718_v16, %v2717_v1  ;;  %v4873_v1 = vld [vmem:[#allocation40 + $0xd0] ss:$8 sps:$4 sm:$0xff]   ;;  %v4876_v16 = vld [vmem:[#allocation40 + $0xe0] ss:$8 sps:$4 sm:$0xff]  }
0x19ad   :  { %v2725_v30 = vadd.f32 %v2724_v57, %v2723_v28  ;;  %3312 = vmatpush1.bf16.msra.mxu0 %v4855_v26  ;;  %v4878_v28 = vld [vmem:[#allocation40 + $0xe4] ss:$8 sps:$4 sm:$0xff]   ;;  %v4881_v57 = vld [vmem:[#allocation40 + $0xf4] ss:$8 sps:$4 sm:$0xff]   ;;  %v3017_v26 = vld [vmem:[%s6677_s27] sm:$0x3] }
0x19ae   :  { %v2720_v4 = vrot.slane %v2719_v29, 1  ;;  %3313 = vmatprep.subr.bf16.mxu0 %v4860_v47  ;;  %v3018_v47 = vld [vmem:[%s6678_s22] sm:$0x3] }
0x19af   :  { %v2726_v31 = vrot.slane %v2725_v30, 1 }
0x19b0   :  { %v2721_v40 = vadd.f32 %v2720_v4, %v2719_v29  ;;  %v4879_v29 = vld [vmem:[#allocation40 + $0xf0] ss:$8 sps:$4 sm:$0xff]  }
0x19b1   :  { %v2727_v41 = vadd.f32 %v2726_v31, %v2725_v30  ;;  %3314 = vmatpush1.bf16.msra.mxu0 %v4858_v52  ;;  %v2804_v30 = vld [vmem:[%s6676_s6] sm:$0x3]  ;;  %v3061_v52 = vrot.slane %v3017_v26, %v6452_v32 }
0x19b2   :  { %v2728_v44 = vmul.f32 0.125, %v2721_v40  ;;  %3315 = vmatprep.subr.bf16.mxu0 %v4863_v53  ;;  %v2809_v4 = vrot.slane %v2804_v30, %v6452_v32  ;;  %v2813_v31 = vrot.slane %v2804_v30, %v6504_v33 }
0x19b3   :  { %v2729_v13 = vmul.f32 0.125, %v2727_v41 }
0x19b4   :  { %v2730_v45 = vadd.f32 1e-05, %v2728_v44 }
0x19b5   :  { %v2731_v20 = vadd.f32 1e-05, %v2729_v13  ;;  %3316 = vmatpush1.bf16.msra.mxu0 %v4861_v54  ;;  %v3065_v54 = vrot.slane %v3017_v26, %v6504_v33 }
0x19b6   :  { %4986 = vrsqrt.f32 %v2730_v45  ;;  %3317 = vmatprep.subr.bf16.mxu0 %v4866_v46 }
0x19b7   :  { %4988 = vrsqrt.f32 %v2731_v20 }
0x19c0   :  { %v4987_v39 = vpop.eup %4986 }
0x19c1   :  { %v4989_v11 = vpop.eup %4988  ;;  %v2734_v18 = vmul.f32 %v4987_v39, %v2712_v2  ;;  %v4864_v2 = vld [vmem:[#allocation40 + $0xa0] ss:$8 sps:$4 sm:$0xff]  }
0x19c2   :  { %v2735_v60 = vmul.f32 %v4989_v11, %v2713_v55  ;;  %3318 = vmatpush1.bf16.msra.mxu0 %v4864_v2  ;;  %v4869_v55 = vld [vmem:[#allocation40 + $0xb4] ss:$8 sps:$4 sm:$0xff]  }
0x19c3   :  { %v2747_v61 = vmul.f32 %v2740_v23, %v2734_v18  ;;  %3319 = vmatprep.subr.bf16.mxu0 %v4869_v55  ;;  %v3074_v55 = vrot.slane %v3018_v47, %v6452_v32 }
0x19c4   :  { %v2748_v51 = vmul.f32 %v2744_v42, %v2735_v60 }
0x19c5   :  { %v2760_v19 = vadd.f32 %v2753_v12, %v2747_v61 }
0x19c6   :  { %v2761_v62 = vadd.f32 %v2757_v35, %v2748_v51  ;;  %3320 = vmatpush1.bf16.msra.mxu0 %v4867_v27 }
0x19c7   :  { %v2766_v34 = vmul.f32 %v2765_v50, %v2760_v19  ;;  %vm2763_vm15 = vcmp.gt.f32.partialorder %v2760_v19, 0.0  ;;  %3321 = vmatprep.subr.bf16.mxu0 %v4872_v48  ;;  %v3078_v48 = vrot.slane %v3018_v47, %v6504_v33 }
0x19c8   :  { %vm2764_vm0 = vcmp.gt.f32.partialorder %v2761_v62, 0.0  ;;  %v2767_v63 = vmul.f32 %v2765_v50, %v2761_v62 }
0x19c9   :  { %v2768_v38 = vsel %vm2763_vm15, %v2760_v19, %v2766_v34 }
0x19ca   :  { %v2769_v43 = vsel %vm2764_vm0, %v2761_v62, %v2767_v63  ;;  %v2802_v37 = vpack.c.bf16 %v2768_v38, %v2768_v38  ;;  %3322 = vmatpush1.bf16.msra.mxu0 %v4870_v49 }
0x19cb   :  { %v2803_v36 = vpack.c.bf16 %v2769_v43, %v2769_v43  ;;  %3323 = vmatprep.subr.bf16.mxu0 %v4875_v56 }
0x19cd   :  { %3008 = vmatprep.mubr.bf16.mxu1 %v2803_v36 }
0x19ce   :  { %3009 = vmatmul.mubr.bf16.vlgmr.msra.gmra.mrb[32].mxu1 %v2802_v37  ;;  %3324 = vmatpush1.bf16.msra.mxu0 %v4873_v1  ;;  %v3086_v1 = vstv %s4132_s23 }
0x19cf   :  { %3325 = vmatprep.subr.bf16.mxu0 %v4878_v28 }
0x19d2   :  { %3326 = vmatpush1.bf16.msra.mxu0 %v4876_v16 }
0x19d3   :  { %3327 = vmatprep.subr.bf16.mxu0 %v4881_v57 }
0x19d6   :  { %3328 = vmatpush1.bf16.msra.mxu0 %v4879_v29 }
0x1aa1   :  { %v3010_v40 = vpop.f32.mrb[32].mxu1 }
0x1aa2   :  { %v3011_v41 = vadd.f32 %v3010_v40, %v2809_v4  ;;  %v3012_v44 = vpop.f32.mrb[33].mxu1 }
0x1aa3   :  { %v3013_v13 = vadd.f32 %v3012_v44, %v2813_v31  ;;  %v3014_v45 = vpop.f32.mrb[34].mxu1  ;;  %v4882_v44 = vld [vmem:[#allocation42] ss:$8 sps:$4 sm:$0xff]  }
0x1aa4   :  { %v3019_v20 = vrot.slane %v3011_v41, 4  ;;  %v3015_v58 = vpop.f32.mrb[35].mxu1  ;;  %v4885_v45 = vld [vmem:[#allocation42 + $0x10] ss:$8 sps:$4 sm:$0xff]  }
0x1aa5   :  { %v3025_v17 = vrot.slane %v3013_v13, 4  ;;  %v4888_v58 = vld [vmem:[#allocation42 + $0x20] ss:$8 sps:$4 sm:$0xff]  }
0x1aa6   :  { %v3020_v23 = vadd.f32 %v3019_v20, %v3011_v41  ;;  %v4890_v20 = vld [vmem:[#allocation42 + $0x24] ss:$8 sps:$4 sm:$0xff]  }
0x1aa7   :  { %v3026_v39 = vadd.f32 %v3025_v17, %v3013_v13  ;;  %v4893_v17 = vld [vmem:[#allocation42 + $0x34] ss:$8 sps:$4 sm:$0xff]  }
0x1aa8   :  { %v3021_v42 = vrot.slane %v3020_v23, 2 }
0x1aa9   :  { %v3027_v11 = vrot.slane %v3026_v39, 2 }
0x1aaa   :  { %v3022_v18 = vadd.f32 %v3021_v42, %v3020_v23  ;;  %v4891_v23 = vld [vmem:[#allocation42 + $0x30] ss:$8 sps:$4 sm:$0xff]   ;;  %v4894_v42 = vld [vmem:[#allocation42 + $0x40] ss:$8 sps:$4 sm:$0xff]  }
0x1aab   :  { %v3028_v12 = vadd.f32 %v3027_v11, %v3026_v39  ;;  %v4896_v39 = vld [vmem:[#allocation42 + $0x44] ss:$8 sps:$4 sm:$0xff]   ;;  %v4899_v11 = vld [vmem:[#allocation42 + $0x54] ss:$8 sps:$4 sm:$0xff]  }
0x1aac   :  { %v3023_v60 = vrot.slane %v3022_v18, 1 }
0x1aad   :  { %v3029_v35 = vrot.slane %v3028_v12, 1 }
0x1aae   :  { %v3024_v61 = vadd.f32 %v3023_v60, %v3022_v18  ;;  %v4897_v18 = vld [vmem:[#allocation42 + $0x50] ss:$8 sps:$4 sm:$0xff]   ;;  %v4900_v60 = vld [vmem:[#allocation42 + $0x60] ss:$8 sps:$4 sm:$0xff]  }
0x1aaf   :  { %v3030_v51 = vadd.f32 %v3029_v35, %v3028_v12  ;;  %v4902_v12 = vld [vmem:[#allocation42 + $0x64] ss:$8 sps:$4 sm:$0xff]   ;;  %v4905_v35 = vld [vmem:[#allocation42 + $0x74] ss:$8 sps:$4 sm:$0xff]  }
0x1ab0   :  { %v3031_v50 = vmul.f32 0.125, %v3024_v61  ;;  %v4903_v61 = vld [vmem:[#allocation42 + $0x70] ss:$8 sps:$4 sm:$0xff]  }
0x1ab1   :  { %v3032_v19 = vmul.f32 0.125, %v3030_v51  ;;  %v4908_v51 = vld [vmem:[#allocation42 + $0x84] ss:$8 sps:$4 sm:$0xff]  }
0x1ab2   :  { %v3033_v62 = vsub.f32 %v3011_v41, %v3031_v50  ;;  %v4884_v41 = vld [vmem:[#allocation42 + $0x4] ss:$8 sps:$4 sm:$0xff]   ;;  %v4906_v50 = vld [vmem:[#allocation42 + $0x80] ss:$8 sps:$4 sm:$0xff]  }
0x1ab3   :  { %v3034_v34 = vsub.f32 %v3013_v13, %v3032_v19  ;;  %3622 = vmatprep.subr.bf16.mxu1 %v4884_v41  ;;  %v4887_v13 = vld [vmem:[#allocation42 + $0x14] ss:$8 sps:$4 sm:$0xff]  }
0x1ab4   :  { %v3035_v63 = vmul.f32 %v3033_v62, %v3033_v62  ;;  %3623 = vmatpush1.bf16.msra.mxu1 %v4882_v44  ;;  %v4911_v19 = vld [vmem:[#allocation42 + $0x94] ss:$8 sps:$4 sm:$0xff]  }
0x1ab5   :  { %v3036_v38 = vmul.f32 %v3034_v34, %v3034_v34  ;;  %3624 = vmatprep.subr.bf16.mxu1 %v4887_v13 }
0x1ab6   :  { %v3037_v43 = vrot.slane %v3035_v63, 4 }
0x1ab7   :  { %v3043_v36 = vrot.slane %v3036_v38, 4 }
0x1ab8   :  { %v3038_v37 = vadd.f32 %v3037_v43, %v3035_v63  ;;  %3625 = vmatpush1.bf16.msra.mxu1 %v4885_v45  ;;  %v4912_v63 = vld [vmem:[#allocation42 + $0xa0] ss:$8 sps:$4 sm:$0xff]   ;;  %v4915_v43 = vld [vmem:[#allocation42 + $0xb0] ss:$8 sps:$4 sm:$0xff]  }
0x1ab9   :  { %v3044_v0 = vadd.f32 %v3043_v36, %v3036_v38  ;;  %3626 = vmatprep.subr.bf16.mxu1 %v4890_v20  ;;  %v4917_v38 = vld [vmem:[#allocation42 + $0xb4] ss:$8 sps:$4 sm:$0xff]   ;;  %v4920_v36 = vld [vmem:[#allocation42 + $0xc4] ss:$8 sps:$4 sm:$0xff]  }
0x1aba   :  { %v3039_v3 = vrot.slane %v3038_v37, 2 }
0x1abb   :  { %v3045_v6 = vrot.slane %v3044_v0, 2 }
0x1abc   :  { %v3040_v59 = vadd.f32 %v3039_v3, %v3038_v37  ;;  %3627 = vmatpush1.bf16.msra.mxu1 %v4888_v58  ;;  %v4918_v37 = vld [vmem:[#allocation42 + $0xc0] ss:$8 sps:$4 sm:$0xff]   ;;  %v4921_v3 = vld [vmem:[#allocation42 + $0xd0] ss:$8 sps:$4 sm:$0xff]  }
0x1abd   :  { %v3046_v7 = vadd.f32 %v3045_v6, %v3044_v0  ;;  %3628 = vmatprep.subr.bf16.mxu1 %v4893_v17  ;;  %v4923_v0 = vld [vmem:[#allocation42 + $0xd4] ss:$8 sps:$4 sm:$0xff]   ;;  %v4926_v6 = vld [vmem:[#allocation42 + $0xe4] ss:$8 sps:$4 sm:$0xff]  }
0x1abe   :  { %v3041_v8 = vrot.slane %v3040_v59, 1 }
0x1abf   :  { %v3047_v9 = vrot.slane %v3046_v7, 1 }
0x1ac0   :  { %v3042_v10 = vadd.f32 %v3041_v8, %v3040_v59  ;;  %3629 = vmatpush1.bf16.msra.mxu1 %v4891_v23  ;;  %v4924_v59 = vld [vmem:[#allocation42 + $0xe0] ss:$8 sps:$4 sm:$0xff]   ;;  %v4927_v8 = vld [vmem:[#allocation42 + $0xf0] ss:$8 sps:$4 sm:$0xff]  }
0x1ac1   :  { %v3048_v14 = vadd.f32 %v3047_v9, %v3046_v7  ;;  %3630 = vmatprep.subr.bf16.mxu1 %v4896_v39  ;;  %v4929_v7 = vld [vmem:[#allocation42 + $0xf4] ss:$8 sps:$4 sm:$0xff]   ;;  %v3125_v9 = vld [vmem:[%s6679_s3] sm:$0x3] }
0x1ac2   :  { %v3049_v15 = vmul.f32 0.125, %v3042_v10  ;;  %v3130_v10 = vrot.slane %v3125_v9, %v6452_v32 }
0x1ac3   :  { %v3050_v22 = vmul.f32 0.125, %v3048_v14  ;;  %v3134_v14 = vrot.slane %v3125_v9, %v6504_v33 }
0x1ac4   :  { %v3051_v24 = vadd.f32 1e-05, %v3049_v15  ;;  %3631 = vmatpush1.bf16.msra.mxu1 %v4894_v42 }
0x1ac5   :  { %v3052_v25 = vadd.f32 1e-05, %v3050_v22  ;;  %3632 = vmatprep.subr.bf16.mxu1 %v4899_v11 }
0x1ac6   :  { %4990 = vrsqrt.f32 %v3051_v24 }
0x1ac7   :  { %4992 = vrsqrt.f32 %v3052_v25 }
0x1ac8   :  { %3633 = vmatpush1.bf16.msra.mxu1 %v4897_v18 }
0x1ac9   :  { %3634 = vmatprep.subr.bf16.mxu1 %v4902_v12 }
0x1acc   :  { %3635 = vmatpush1.bf16.msra.mxu1 %v4900_v60 }
0x1acd   :  { %3636 = vmatprep.subr.bf16.mxu1 %v4905_v35 }
0x1ad0   :  { %v4991_v53 = vpop.eup %4990  ;;  %3637 = vmatpush1.bf16.msra.mxu1 %v4903_v61 }
0x1ad1   :  { %v4993_v46 = vpop.eup %4992  ;;  %v3055_v2 = vmul.f32 %v4991_v53, %v3033_v62  ;;  %3638 = vmatprep.subr.bf16.mxu1 %v4908_v51  ;;  %v4909_v62 = vld [vmem:[#allocation42 + $0x90] ss:$8 sps:$4 sm:$0xff]  }
0x1ad2   :  { %v3056_v27 = vmul.f32 %v4993_v46, %v3034_v34  ;;  %v4914_v34 = vld [vmem:[#allocation42 + $0xa4] ss:$8 sps:$4 sm:$0xff]  }
0x1ad3   :  { %v3068_v49 = vmul.f32 %v3061_v52, %v3055_v2 }
0x1ad4   :  { %v3069_v56 = vmul.f32 %v3065_v54, %v3056_v27  ;;  %3639 = vmatpush1.bf16.msra.mxu1 %v4906_v50  ;;  %v3342_v50 = vld [vmem:[%s6680_s26] sm:$0x3] }
0x1ad5   :  { %v3081_v28 = vadd.f32 %v3074_v55, %v3068_v49  ;;  %3640 = vmatprep.subr.bf16.mxu1 %v4911_v19  ;;  %v3343_v19 = vld [vmem:[%s6681_s20] sm:$0x3] }
0x1ad6   :  { %v3082_v16 = vadd.f32 %v3078_v48, %v3069_v56 }
0x1ad7   :  { %v3087_v57 = vmul.f32 %v3086_v1, %v3081_v28  ;;  %vm3084_vm1 = vcmp.gt.f32.partialorder %v3081_v28, 0.0 }
0x1ad8   :  { %vm3085_vm2 = vcmp.gt.f32.partialorder %v3082_v16, 0.0  ;;  %v3088_v29 = vmul.f32 %v3086_v1, %v3082_v16  ;;  %3641 = vmatpush1.bf16.msra.mxu1 %v4909_v62  ;;  %v3386_v62 = vrot.slane %v3342_v50, %v6452_v32 }
0x1ad9   :  { %v3089_v30 = vsel %vm3084_vm1, %v3081_v28, %v3087_v57  ;;  %3642 = vmatprep.subr.bf16.mxu1 %v4914_v34 }
0x1ada   :  { %v3090_v4 = vsel %vm3085_vm2, %v3082_v16, %v3088_v29  ;;  %v3123_v40 = vpack.c.bf16 %v3089_v30, %v3089_v30 }
0x1adb   :  { %v3124_v31 = vpack.c.bf16 %v3090_v4, %v3090_v4 }
0x1adc   :  { %3643 = vmatpush1.bf16.msra.mxu1 %v4912_v63  ;;  %v3390_v63 = vrot.slane %v3342_v50, %v6504_v33 }
0x1add   :  { %3329 = vmatprep.mubr.bf16.mxu0 %v3124_v31  ;;  %3644 = vmatprep.subr.bf16.mxu1 %v4917_v38 }
0x1ade   :  { %3330 = vmatmul.mubr.bf16.vlgmr.msra.gmra.mrb[52].mxu0 %v3123_v40 }
0x1ae0   :  { %3645 = vmatpush1.bf16.msra.mxu1 %v4915_v43 }
0x1ae1   :  { %3646 = vmatprep.subr.bf16.mxu1 %v4920_v36  ;;  %v3399_v36 = vrot.slane %v3343_v19, %v6452_v32 }
0x1ae4   :  { %3647 = vmatpush1.bf16.msra.mxu1 %v4918_v37 }
0x1ae5   :  { %3648 = vmatprep.subr.bf16.mxu1 %v4923_v0  ;;  %v3403_v0 = vrot.slane %v3343_v19, %v6504_v33 }
0x1ae8   :  { %3649 = vmatpush1.bf16.msra.mxu1 %v4921_v3 }
0x1ae9   :  { %3650 = vmatprep.subr.bf16.mxu1 %v4926_v6 }
0x1aec   :  { %3651 = vmatpush1.bf16.msra.mxu1 %v4924_v59  ;;  %v3411_v59 = vstv %s4165_s1 }
0x1aed   :  { %3652 = vmatprep.subr.bf16.mxu1 %v4929_v7 }
0x1af0   :  { %3653 = vmatpush1.bf16.msra.mxu1 %v4927_v8 }
0x1bb1   :  { %v3331_v15 = vpop.f32.mrb[52].mxu0 }
0x1bb2   :  { %v3332_v22 = vadd.f32 %v3331_v15, %v3130_v10  ;;  %v3333_v24 = vpop.f32.mrb[53].mxu0 }
0x1bb3   :  { %v3334_v25 = vadd.f32 %v3333_v24, %v3134_v14  ;;  %v3335_v26 = vpop.f32.mrb[54].mxu0 }
0x1bb4   :  { %v3338_v47 = vadd.f32 %v3332_v22, %v6549_v5  ;;  %v3336_v52 = vpop.f32.mrb[55].mxu0  ;;  %v4931_v26 = vld [vmem:[#allocation43] sm:$0xff]  }
0x1bb5   :  { %v3339_v53 = vadd.f32 %v3334_v25, %v6551_v21  ;;  %v4930_v25 = vld [vmem:[#allocation43 + $0x40] sm:$0xff]   ;;  %v4933_v52 = vld [vmem:[#allocation43 + $0x8] sm:$0xff]  }
0x1bb6   :  { %v6579_v54 = vmul.f32 0.5, %v3338_v47  ;;  %4323 = vmatprep.subr.bf16.mxu0 %v4930_v25  ;;  %v4932_v47 = vld [vmem:[#allocation43 + $0x48] sm:$0xff]  }
0x1bb7   :  { %v6581_v46 = vmul.f32 0.5, %v3339_v53  ;;  %4324 = vmatpush3.bf16.msra.mxu0 %v4931_v26  ;;  %v4934_v53 = vld [vmem:[#allocation43 + $0x50] sm:$0xff]  }
0x1bb8   :  { %v3344_v2 = vrot.slane %v6579_v54, 4  ;;  %4325 = vmatprep.subr.bf16.mxu0 %v4932_v47  ;;  %v3667_v26 = vld [vmem:[%s6683_s25] sm:$0x3] }
0x1bb9   :  { %v3350_v55 = vrot.slane %v6581_v46, 4  ;;  %v3668_v47 = vld [vmem:[%s6684_s4] sm:$0x3] }
0x1bba   :  { %v3345_v27 = vadd.f32 %v3344_v2, %v6579_v54  ;;  %v4935_v2 = vld [vmem:[#allocation43 + $0x10] sm:$0xff]  }
0x1bbb   :  { %v3351_v48 = vadd.f32 %v3350_v55, %v6581_v46  ;;  %4326 = vmatpush3.bf16.msra.mxu0 %v4933_v52  ;;  %v4936_v55 = vld [vmem:[#allocation43 + $0x58] sm:$0xff]   ;;  %v3711_v52 = vrot.slane %v3667_v26, %v6452_v32 }
0x1bbc   :  { %v3346_v49 = vrot.slane %v3345_v27, 2  ;;  %4327 = vmatprep.subr.bf16.mxu0 %v4934_v53 }
0x1bbd   :  { %v3352_v56 = vrot.slane %v3351_v48, 2 }
0x1bbe   :  { %v3347_v1 = vadd.f32 %v3346_v49, %v3345_v27  ;;  %v4937_v27 = vld [vmem:[#allocation43 + $0x18] sm:$0xff]   ;;  %v4939_v49 = vld [vmem:[#allocation43 + $0x20] sm:$0xff]  }
0x1bbf   :  { %v3353_v28 = vadd.f32 %v3352_v56, %v3351_v48  ;;  %4328 = vmatpush3.bf16.msra.mxu0 %v4935_v2  ;;  %v4938_v48 = vld [vmem:[#allocation43 + $0x60] sm:$0xff]   ;;  %v4940_v56 = vld [vmem:[#allocation43 + $0x68] sm:$0xff]   ;;  %v3715_v2 = vrot.slane %v3667_v26, %v6504_v33 }
0x1bc0   :  { %v3348_v5 = vrot.slane %v3347_v1, 1  ;;  %4329 = vmatprep.subr.bf16.mxu0 %v4936_v55 }
0x1bc1   :  { %v3354_v16 = vrot.slane %v3353_v28, 1 }
0x1bc2   :  { %v3349_v57 = vadd.f32 %v3348_v5, %v3347_v1  ;;  %v4941_v1 = vld [vmem:[#allocation43 + $0x28] sm:$0xff]   ;;  %v4943_v5 = vld [vmem:[#allocation43 + $0x30] sm:$0xff]  }
0x1bc3   :  { %v3355_v21 = vadd.f32 %v3354_v16, %v3353_v28  ;;  %4330 = vmatpush3.bf16.msra.mxu0 %v4937_v27  ;;  %v4942_v28 = vld [vmem:[#allocation43 + $0x70] sm:$0xff]   ;;  %v4944_v16 = vld [vmem:[#allocation43 + $0x78] sm:$0xff]  }
0x1bc4   :  { %v3356_v29 = vmul.f32 0.125, %v3349_v57  ;;  %4331 = vmatprep.subr.bf16.mxu0 %v4938_v48  ;;  %v4945_v57 = vld [vmem:[#allocation43 + $0x38] sm:$0xff]   ;;  %v3724_v48 = vrot.slane %v3668_v47, %v6452_v32 }
0x1bc5   :  { %v3357_v30 = vmul.f32 0.125, %v3355_v21  ;;  %v3450_v21 = vld [vmem:[%s6682_s14] sm:$0x3] }
0x1bc6   :  { %v3358_v4 = vsub.f32 %v6579_v54, %v3356_v29  ;;  %v3455_v29 = vrot.slane %v3450_v21, %v6452_v32 }
0x1bc7   :  { %v3359_v31 = vsub.f32 %v6581_v46, %v3357_v30  ;;  %4332 = vmatpush3.bf16.msra.mxu0 %v4939_v49  ;;  %v3459_v30 = vrot.slane %v3450_v21, %v6504_v33 }
0x1bc8   :  { %v3360_v40 = vmul.f32 %v3358_v4, %v3358_v4  ;;  %4333 = vmatprep.subr.bf16.mxu0 %v4940_v56  ;;  %v3728_v56 = vrot.slane %v3668_v47, %v6504_v33 }
0x1bc9   :  { %v3361_v41 = vmul.f32 %v3359_v31, %v3359_v31 }
0x1bca   :  { %v3362_v44 = vrot.slane %v3360_v40, 4 }
0x1bcb   :  { %v3368_v13 = vrot.slane %v3361_v41, 4  ;;  %4334 = vmatpush3.bf16.msra.mxu0 %v4941_v1 }
0x1bcc   :  { %v3363_v45 = vadd.f32 %v3362_v44, %v3360_v40  ;;  %4335 = vmatprep.subr.bf16.mxu0 %v4942_v28 }
0x1bcd   :  { %v3369_v20 = vadd.f32 %v3368_v13, %v3361_v41 }
0x1bce   :  { %v3364_v58 = vrot.slane %v3363_v45, 2 }
0x1bcf   :  { %v3370_v17 = vrot.slane %v3369_v20, 2  ;;  %4336 = vmatpush3.bf16.msra.mxu0 %v4943_v5  ;;  %v3736_v5 = vstv %s4198_s17 }
0x1bd0   :  { %v3365_v23 = vadd.f32 %v3364_v58, %v3363_v45  ;;  %4337 = vmatprep.subr.bf16.mxu0 %v4944_v16 }
0x1bd1   :  { %v3371_v39 = vadd.f32 %v3370_v17, %v3369_v20 }
0x1bd2   :  { %v3366_v42 = vrot.slane %v3365_v23, 1 }
0x1bd3   :  { %v3372_v11 = vrot.slane %v3371_v39, 1  ;;  %4338 = vmatpush3.bf16.msra.mxu0 %v4945_v57 }
0x1bd4   :  { %v3367_v18 = vadd.f32 %v3366_v42, %v3365_v23 }
0x1bd5   :  { %v3373_v12 = vadd.f32 %v3372_v11, %v3371_v39 }
0x1bd6   :  { %v3374_v60 = vmul.f32 0.125, %v3367_v18 }
0x1bd7   :  { %v3375_v35 = vmul.f32 0.125, %v3373_v12 }
0x1bd8   :  { %v3376_v61 = vadd.f32 1e-05, %v3374_v60 }
0x1bd9   :  { %v3377_v51 = vadd.f32 1e-05, %v3375_v35 }
0x1bda   :  { %4994 = vrsqrt.f32 %v3376_v61 }
0x1bdb   :  { %4996 = vrsqrt.f32 %v3377_v51 }
0x1be4   :  { %v4995_v34 = vpop.eup %4994 }
0x1be5   :  { %v4997_v38 = vpop.eup %4996  ;;  %v3380_v43 = vmul.f32 %v4995_v34, %v3358_v4 }
0x1be6   :  { %v3381_v37 = vmul.f32 %v4997_v38, %v3359_v31 }
0x1be7   :  { %v3393_v3 = vmul.f32 %v3386_v62, %v3380_v43 }
0x1be8   :  { %v3394_v6 = vmul.f32 %v3390_v63, %v3381_v37 }
0x1be9   :  { %v3406_v7 = vadd.f32 %v3399_v36, %v3393_v3 }
0x1bea   :  { %v3407_v8 = vadd.f32 %v3403_v0, %v3394_v6 }
0x1beb   :  { %v3412_v9 = vmul.f32 %v3411_v59, %v3406_v7  ;;  %vm3409_vm3 = vcmp.gt.f32.partialorder %v3406_v7, 0.0 }
0x1bec   :  { %vm3410_vm4 = vcmp.gt.f32.partialorder %v3407_v8, 0.0  ;;  %v3413_v10 = vmul.f32 %v3411_v59, %v3407_v8 }
0x1bed   :  { %v3414_v14 = vsel %vm3409_vm3, %v3406_v7, %v3412_v9 }
0x1bee   :  { %v3415_v15 = vsel %vm3410_vm4, %v3407_v8, %v3413_v10  ;;  %v3448_v24 = vpack.c.bf16 %v3414_v14, %v3414_v14 }
0x1bef   :  { %v3449_v22 = vpack.c.bf16 %v3415_v15, %v3415_v15 }
0x1bf1   :  { %3654 = vmatprep.mubr.bf16.mxu1 %v3449_v22 }
0x1bf2   :  { %3655 = vmatmul.mubr.bf16.vlgmr.msra.gmra.mrb[36].mxu1 %v3448_v24 }
0x1cc5   :  { %v3656_v4 = vpop.f32.mrb[36].mxu1 }
0x1cc6   :  { %v3657_v31 = vadd.f32 %v3656_v4, %v3455_v29  ;;  %v3658_v40 = vpop.f32.mrb[37].mxu1 }
0x1cc7   :  { %v3659_v41 = vadd.f32 %v3658_v40, %v3459_v30  ;;  %v3660_v44 = vpop.f32.mrb[38].mxu1 }
0x1cc8   :  { %v3663_v13 = vadd.f32 %v3657_v31, %v6579_v54  ;;  %v3661_v45 = vpop.f32.mrb[39].mxu1  ;;  %v4199_v44 = vld [vmem:[%s6685_s28] ss:$0 sm:$0xff] }
0x1cc9   :  { %v3664_v20 = vadd.f32 %v3659_v41, %v6581_v46 }
0x1cca   :  { %v3665_v58 = vmul.f32 0.5, %v3663_v13 }
0x1ccb   :  { %v3666_v17 = vmul.f32 0.5, %v3664_v20 }
0x1ccc   :  { %v3669_v23 = vrot.slane %v3665_v58, 4 }
0x1ccd   :  { %v3675_v39 = vrot.slane %v3666_v17, 4 }
0x1cce   :  { %v3670_v42 = vadd.f32 %v3669_v23, %v3665_v58 }
0x1ccf   :  { %v3676_v11 = vadd.f32 %v3675_v39, %v3666_v17 }
0x1cd0   :  { %v3671_v18 = vrot.slane %v3670_v42, 2 }
0x1cd1   :  { %v3677_v12 = vrot.slane %v3676_v11, 2 }
0x1cd2   :  { %v3672_v60 = vadd.f32 %v3671_v18, %v3670_v42 }
0x1cd3   :  { %v3678_v35 = vadd.f32 %v3677_v12, %v3676_v11 }
0x1cd4   :  { %v3673_v61 = vrot.slane %v3672_v60, 1 }
0x1cd5   :  { %v3679_v51 = vrot.slane %v3678_v35, 1 }
0x1cd6   :  { %v3674_v50 = vadd.f32 %v3673_v61, %v3672_v60 }
0x1cd7   :  { %v3680_v19 = vadd.f32 %v3679_v51, %v3678_v35 }
0x1cd8   :  { %v3681_v62 = vmul.f32 0.125, %v3674_v50 }
0x1cd9   :  { %v3682_v34 = vmul.f32 0.125, %v3680_v19 }
0x1cda   :  { %v3683_v54 = vsub.f32 %v3665_v58, %v3681_v62 }
0x1cdb   :  { %v3684_v63 = vsub.f32 %v3666_v17, %v3682_v34 }
0x1cdc   :  { %v3685_v38 = vmul.f32 %v3683_v54, %v3683_v54 }
0x1cdd   :  { %v3686_v46 = vmul.f32 %v3684_v63, %v3684_v63 }
0x1cde   :  { %v3687_v43 = vrot.slane %v3685_v38, 4 }
0x1cdf   :  { %v3693_v36 = vrot.slane %v3686_v46, 4 }
0x1ce0   :  { %v3688_v37 = vadd.f32 %v3687_v43, %v3685_v38 }
0x1ce1   :  { %v3694_v0 = vadd.f32 %v3693_v36, %v3686_v46 }
0x1ce2   :  { %v3689_v3 = vrot.slane %v3688_v37, 2 }
0x1ce3   :  { %v3695_v6 = vrot.slane %v3694_v0, 2 }
0x1ce4   :  { %v3690_v59 = vadd.f32 %v3689_v3, %v3688_v37 }
0x1ce5   :  { %v3696_v7 = vadd.f32 %v3695_v6, %v3694_v0 }
0x1ce6   :  { %v3691_v8 = vrot.slane %v3690_v59, 1 }
0x1ce7   :  { %v3697_v9 = vrot.slane %v3696_v7, 1 }
0x1ce8   :  { %v3692_v10 = vadd.f32 %v3691_v8, %v3690_v59 }
0x1ce9   :  { %v3698_v14 = vadd.f32 %v3697_v9, %v3696_v7 }
0x1cea   :  { %v3699_v15 = vmul.f32 0.125, %v3692_v10 }
0x1ceb   :  { %v3700_v22 = vmul.f32 0.125, %v3698_v14 }
0x1cec   :  { %v3701_v24 = vadd.f32 1e-05, %v3699_v15 }
0x1ced   :  { %v3702_v25 = vadd.f32 1e-05, %v3700_v22 }
0x1cee   :  { %4998 = vrsqrt.f32 %v3701_v24 }
0x1cef   :  { %5000 = vrsqrt.f32 %v3702_v25 }
0x1cf8   :  { %v4999_v53 = vpop.eup %4998 }
0x1cf9   :  { %v5001_v55 = vpop.eup %5000  ;;  %v3705_v27 = vmul.f32 %v4999_v53, %v3683_v54 }
0x1cfa   :  { %v3706_v49 = vmul.f32 %v5001_v55, %v3684_v63 }
0x1cfb   :  { %v3718_v1 = vmul.f32 %v3711_v52, %v3705_v27 }
0x1cfc   :  { %v3719_v28 = vmul.f32 %v3715_v2, %v3706_v49 }
0x1cfd   :  { %v3731_v16 = vadd.f32 %v3724_v48, %v3718_v1 }
0x1cfe   :  { %v3732_v57 = vadd.f32 %v3728_v56, %v3719_v28 }
0x1cff   :  { %v3737_v21 = vmul.f32 %v3736_v5, %v3731_v16  ;;  %vm3734_vm5 = vcmp.gt.f32.partialorder %v3731_v16, 0.0 }
0x1d00   :  { %vm3735_vm6 = vcmp.gt.f32.partialorder %v3732_v57, 0.0  ;;  %v3738_v29 = vmul.f32 %v3736_v5, %v3732_v57 }
0x1d01   :  { %v3739_v30 = vsel %vm3734_vm5, %v3731_v16, %v3737_v21 }
0x1d02   :  { %v3740_v4 = vsel %vm3735_vm6, %v3732_v57, %v3738_v29  ;;  %v3773_v40 = vpack.c.bf16 %v3739_v30, %v3739_v30 }
0x1d03   :  { %v3774_v31 = vpack.c.bf16 %v3740_v4, %v3740_v4 }
0x1d05   :  { %3910 = vmatprep.mubr.bf16.mxu0 %v3774_v31 }
0x1d06   :  { %3911 = vmatmul.mubr.bf16.vlgmr.msra.gmra.mrb[56].mxu0 %v3773_v40 }
0x1dd9   :  { %v4339_v32 = vpop.f32.mrb[56].mxu0 }
0x1dda   :  { %v4340_v41 = vpop.f32.mrb[57].mxu0 }
0x1ddb   :  { %v4341_v33 = vadd.f32 %v4340_v41, %v4339_v32  ;;  %v4342_v13 = vpop.f32.mrb[58].mxu0 }
0x1ddc   :  { %v4343_v45 = vpop.f32.mrb[59].mxu0 }
0x1ddd   :  { %v3913_v20 = vadd.f32 %v4341_v33, %v4199_v44 }
0x1ddf   :  { %3918 = vst [vmem:[#allocation48] sm:$0xff] %v3913_v20 }
0x1de0   :  { %5609 = shalt.err (!%p5606_p12)
}
0x1de1   :  { %s5610_s8 = scalar_lea.hbm %s5982_s30, 128 }
0x1de2   :  { %p5611_p13 = scmp.ne.s32.totalorder %s5982_s30, %s5610_s8  ;;  %p5614_p0 = scmp.lt.u32.totalorder %s5610_s8, %s5982_s30 }
0x1de4   :  { %p5616_p1 = pnand %p5614_p0, %p5611_p13 }
0x1de6   :  { %5619 = shalt.err (!%p5616_p1)
}
0x1de7   :  { %3928 = dma.vmem_to_hbm [thread:$0]  %s3926_s10, 128, %s5982_s30, [#allocation5]  }
0x1de8   :  { %5652 = dma.done.wait [#allocation5], 128  }
0x1de9   :  { %5653 = vsyncadd [#allocation5], 4294967168 }
0x1dea   :  { %3932 = vsyncpa [#allocation4], 1 }
0x1deb   :  { %3933 = vsyncpa [#allocation8], 1 }
0x1dec   :  { %3934 = vsyncpa [#allocation11], 1 }
0x1ded   :  { %3935 = vsyncpa [#allocation14], 1 }
0x1dee   :  { %3936 = vsyncpa [#allocation17], 1 }
0x1def   :  { %3937 = vsyncpa [#allocation20], 1 }
0x1df0   :  { %3938 = vsyncpa [#allocation23], 1 }
0x1df1   :  { %3939 = vsyncpa [#allocation26], 1 }
0x1df2   :  { %3940 = vsyncpa [#allocation29], 1 }
0x1df3   :  { %3941 = vsyncpa [#allocation32], 1 }
0x1df4   :  { %3942 = vsyncpa [#allocation35], 1 }
0x1df5   :  { %3943 = vsyncpa [#allocation38], 1 }
0x1df6   :  { %3944 = vsyncpa [#allocation41], 1 }
0x1df7   :  { %3945 = vsyncpa [#allocation44], 1 }
0x1df8   :  { %3946 = vsyncpa [#allocation5], 1 }
0x1df9   :  { %3947 = vsyncpa [#allocation6], 1 }
0x1dfa   :  { %3948 = vsyncpa [#allocation47], 1 }

</bundles_post_ra>
